<compile_context>
chip_gen: v5e
topology: v5e:2x2
jax: 0.10.0
libtpu: 0.0.40
codegen_flags: <defaults>
</compile_context>

<pallas_src>
import jax
import jax.numpy as jnp
from jax.experimental import pallas as pl
from jax.experimental.pallas import tpu as pltpu


_CANDIDATE_COLS = (1024, 512, 256, 128)   # lane-dense widths (multiples of 128)
_TARGET_BLOCK_BYTES = 4 * 1024 * 1024     # ~4 MiB blocks (~86% of HBM roofline)
_VMEM_LIMIT_BYTES = 48 * 1024 * 1024      # explicit scoped-VMEM limit (v7x-safe)
_MIN_PALLAS_ELEMS = 2 * 1024 * 1024       # below this, fused XLA add is faster


def _add_kernel(a_ref, b_ref, o_ref):
    # Elementwise add of the current [tile_r, cols] VMEM blocks.
    o_ref[...] = a_ref[...] + b_ref[...]


def update_unit(target: jax.Array, source: jax.Array, *,
                donate_target: bool = False) -> jax.Array:
    """Pallas implementation of UpdateUnit.forward(target, source)."""
    assert target.shape == source.shape, (
        "source dimension must be equal to target dimension"
    )
    assert target.dtype == source.dtype

    orig_shape = target.shape
    total = int(target.size)

    # Small/medium problems: pallas_call fixed overhead dominates -> fused add.
    if total < _MIN_PALLAS_ELEMS:
        return target + source

    # Lane-dense column width that divides the flat size exactly -> zero-copy
    # reshapes on both sides of the kernel (no pad, no slice).
    cols = next((c for c in _CANDIDATE_COLS if total % c == 0), None)
    if cols is None:
        # Ragged total: a padded Pallas path would re-copy both inputs and the
        # output, losing to XLA's fused add on a mem-bound op.
        return target + source

    itemsize = jnp.dtype(target.dtype).itemsize
    rows = total // cols
    t2 = target.reshape(rows, cols)   # bitcast, no HBM traffic
    s2 = source.reshape(rows, cols)

    # Row tile: ~_TARGET_BLOCK_BYTES per block, a multiple of 32 sublanes, and
    # an even number of grid steps so both v7x TensorCores stay balanced.
    tile_r = _TARGET_BLOCK_BYTES // (cols * itemsize)
    tile_r = max(32, (tile_r // 32) * 32)
    n_blocks = pl.cdiv(rows, tile_r)
    if rows > 32:
        n_blocks = max(n_blocks, 2)
        if n_blocks % 2:
            n_blocks += 1
    tile_r = min(tile_r, max(32, ((pl.cdiv(rows, n_blocks) + 31) // 32) * 32))
    grid = (pl.cdiv(rows, tile_r),)

    out2 = pl.pallas_call(
        _add_kernel,
        out_shape=jax.ShapeDtypeStruct((rows, cols), target.dtype),
        grid_spec=pltpu.PrefetchScalarGridSpec(
            num_scalar_prefetch=0,
            grid=grid,
            in_specs=[
                pl.BlockSpec((tile_r, cols), lambda i: (i, 0)),
                pl.BlockSpec((tile_r, cols), lambda i: (i, 0)),
            ],
            out_specs=pl.BlockSpec((tile_r, cols), lambda i: (i, 0)),
        ),
        compiler_params=pltpu.CompilerParams(
            dimension_semantics=("parallel",),
            vmem_limit_bytes=_VMEM_LIMIT_BYTES,
        ),
        cost_estimate=pl.CostEstimate(
            flops=total,
            transcendentals=0,
            bytes_accessed=3 * total * itemsize,
        ),
        input_output_aliases=({0: 0} if donate_target else {}),
    )(t2, s2)

    return out2.reshape(orig_shape)


if __name__ == "__main__":
    key = jax.random.PRNGKey(0)
    k1, k2, k3, k4 = jax.random.split(key, 4)

    # 1) Small, module-consistent shape (N relation features of dim 32).
    #    Takes the fused-XLA fallback path.
    N0, D0 = 8, 32
    t0 = jax.random.normal(k1, (N0, D0), dtype=jnp.float32)
    s0 = jax.random.normal(k2, (N0, D0), dtype=jnp.float32)
    o0 = jax.block_until_ready(update_unit(t0, s0))
    assert o0.shape == (N0, D0) and o0.dtype == t0.dtype
    assert jnp.array_equal(o0, t0 + s0)

    # 2) Larger shape exercising the Pallas path: 70000*32 = 2,240,000 elems
    #    (> threshold), divisible by 512 but not 1024, so it also exercises the
    #    divisor-based column choice, the even-grid split, and a ragged
    #    trailing row block (no padding anywhere).
    N1, D1 = 70000, 32
    t1 = jax.random.normal(k3, (N1, D1), dtype=jnp.float32)
    s1 = jax.random.normal(k4, (N1, D1), dtype=jnp.float32)
    o1 = jax.block_until_ready(update_unit(t1, s1))
    assert o1.shape == (N1, D1) and o1.dtype == t1.dtype
    assert jnp.array_equal(o1, t1 + s1)

    print("KERNEL_OK")
</pallas_src>

<mosaic_0001>
module attributes {stable_mosaic.version = 11 : i64} {
  func.func @_add_kernel(%arg0: i32, %arg1: memref<1120x512xf32, #tpu.memory_space<vmem>>, %arg2: memref<1120x512xf32, #tpu.memory_space<vmem>>, %arg3: memref<1120x512xf32, #tpu.memory_space<vmem>>) attributes {dimension_semantics = [#tpu.dimension_semantics<parallel>], iteration_bounds = array<i64: 4>, scalar_prefetch = 0 : i64, scratch_operands = 0 : i64, tpu.core_type = #tpu.core_type<tc>, window_params = [{transform_indices = @transform_0, window_bounds = array<i64: 1120, 512>}, {transform_indices = @transform_1, window_bounds = array<i64: 1120, 512>}, {transform_indices = @transform_2, window_bounds = array<i64: 1120, 512>}]} {
    %c0 = arith.constant 0 : index
    %c0_0 = arith.constant 0 : index
    %0 = vector.load %arg1[%c0, %c0_0] : memref<1120x512xf32, #tpu.memory_space<vmem>>, vector<1120x512xf32>
    %c0_1 = arith.constant 0 : index
    %c0_2 = arith.constant 0 : index
    %1 = vector.load %arg2[%c0_1, %c0_2] : memref<1120x512xf32, #tpu.memory_space<vmem>>, vector<1120x512xf32>
    %2 = arith.addf %0, %1 : vector<1120x512xf32>
    %c0_3 = arith.constant 0 : index
    %c0_4 = arith.constant 0 : index
    %3 = vector.load %arg3[%c0_3, %c0_4] : memref<1120x512xf32, #tpu.memory_space<vmem>>, vector<1120x512xf32>
    tpu.vector_store %arg3[%c0_3, %c0_4], %2 {strides = array<i32>} : memref<1120x512xf32, #tpu.memory_space<vmem>>, vector<1120x512xf32>,
    return
  }
  func.func @transform_0(%arg0: i32) -> (i32, i32) {
    %c0_i32 = arith.constant 0 : i32
    %c0_i32_0 = arith.constant 0 : i32
    return %arg0, %c0_i32 : i32, i32
  }
  func.func @transform_1(%arg0: i32) -> (i32, i32) {
    %c0_i32 = arith.constant 0 : i32
    %c0_i32_0 = arith.constant 0 : i32
    return %arg0, %c0_i32 : i32, i32
  }
  func.func @transform_2(%arg0: i32) -> (i32, i32) {
    %c0_i32 = arith.constant 0 : i32
    %c0_i32_0 = arith.constant 0 : i32
    return %arg0, %c0_i32 : i32, i32
  }
}

</mosaic_0001>

<bundles_post_ra>
// kernel: tpu_custom_call.1
= control target key start
LH: loop header
LB: loop body
LE: loop exit
PB: predicated region body
PF: predicated region fallthrough
CT: control target
= control target key end

     0   :  { %7 = vsyncpa [#allocation3], 0  ;;  %s4791_s0 = inlined_call_operand.hbm [shape: f32[4375,512], index: 0, kind: input, shape index: {}]   ;;  %s4792_s1 = inlined_call_operand.hbm [shape: f32[4375,512], index: 1, kind: input, shape index: {}]   ;;  %s4793_s2 = inlined_call_operand.hbm [shape: f32[4375,512], index: 2, kind: output, shape index: {}]  }
   0x1   :  { %9 = vsyncpa [#allocation3 + $0x1], 0 }
   0x2   :  { %10 = vsyncpa [#allocation6], 0 }
   0x3   :  { %12 = vsyncpa [#allocation6 + $0x1], 0 }
   0x4   :  { %13 = vsyncpa [#allocation4], 0 }
   0x5   :  { %15 = vsyncpa [#allocation4 + $0x1], 0  ;;  %s2876_s9 = smov 0   ;;  %s2878_s10 = smov 0  }
   0x6   :  { %s2880_s11 = smov 0   ;;  %s2882_s12 = smov 0  }
   0x7 LB: > { %s2897_s13 = sadd.s32 4294967295, %s2850_s12   ;;  %s2603_s14 = sadd.s32 4294967294, %s2850_s12   ;;  %s2850_s12 = sphi %s2882_s12, %s4805_s12   ;;  %s2846_s11 = sphi %s2880_s11, %s4804_s11   ;;  %s2842_s10 = sphi %s2878_s10, %s4803_s10   ;;  %s2838_s9 = sphi %s2876_s9, %s4802_s9  }
   0x8   : > { %s2901_s15 = sadd.s32 1, %s2850_s12   ;;  %s28_s16 = sadd.s32 1, %s2846_s11 }
   0x9   : > { %s25_s17 = ssub.s32 %s2850_s12, %s2901_s15  ;;  %p35_p0 = scmp.ne.s32.totalorder %s2846_s11, %s2842_s10 }
   0xa   : > { %p26_p1 = scmp.eq.s32.totalorder %s25_s17, 0  ;;  %p36_p2 = scmp.eq.s32.totalorder %s2850_s12, 0 }
   0xb   : > { %p41_p3 = scmp.ne.s32.totalorder %s2842_s10, %s2838_s9  ;;  %p42_p4 = scmp.eq.s32.totalorder %s2897_s13, 0 }
   0xc   : > { %s2913_s18 = scalar_select %p26_p1, %s2846_s11, %s28_s16  }
   0xd   : > { %p2915_p5 = por %p36_p2, %p35_p0  ;;  %p2919_p6 = por %p42_p4, %p41_p3 }
   0xe   : > { %p91_p7 = scmp.eq.s32.totalorder %s2897_s13, 3  ;;  %p97_p8 = scmp.eq.s32.totalorder %s2603_s14, 3 }
   0xf   : > { %p2605_p11 = scmp.ge.s32.totalorder %s2850_s12, 4 }
  0x10   : > { %p2924_p9 = por %p91_p7, %p35_p0  ;;  %p2928_p10 = por %p97_p8, %p41_p3 }
  0x11   : > { %113 = sbr.rel (%p2605_p11) target bundleno = 98 (0x62), region = 16 }
  0x12   : > { %s4797_s22 = scalar_select %p2928_p10, 1, 0 }
  0x16   : > { %116 = sbr.rel (!%p2915_p5) target bundleno = 60 (0x3c), region = 20  ;;  %s117_s23 = sand.u32 (%p2915_p5), 1, %s2846_s11  }
  0x17   : > { %s122_s24 = smul.u32 (%p2915_p5), 140, %s2850_s12  ;;  %s2940_s30 = scalar_lea.sflag (%p2915_p5), [#allocation3], %s117_s23 }
  0x18   : > { %s2642_s25 = smul.u32 (%p2915_p5), 4480, %s117_s23 }
  0x19   : > { %s123_s26 = ssub.s32 (%p2915_p5), 547, %s122_s24 }
  0x1a   : > { %p124_p12 = scmp.lt.s32.totalorder (%p2915_p5), %s123_s26, 140  ;;  %s121_s3 = scalar_lea.vmem (%p2915_p5), [#allocation2], %s2642_s25 }
  0x1c   : > { %s4807_s26 = smov (!%p124_p12, %s123_s26), 140 }
  0x1d   : > { %s2630_s27 = sshll.u32 %s4807_s26, 5 }
  0x1e   : > { %s128_s28 = ssub.s32 4480, %s2630_s27 }
  0x1f   : > { %s129_s29 = sshll.u32 %s128_s28, 4 }
  0x20   : > { %130 = vsyncadd %s2940_s30, %s129_s29  ;;  %p2943_p13 = scmp.ne.s32.totalorder %s2630_s27, 0  ;;  %s2639_s5 = smul.u32 4480, %s2850_s12 }
  0x21   : > { %s2948_s6 = sshll.u32 %s121_s3, 4  ;;  %s2612_s7 = sshll.u32 %s4807_s26, 9  ;;  %s139_s6 = int_to_ptr.vmem [resolvable:$true] %s2948_s6 }
  0x22   : > { %s134_s16 = scalar_lea.hbm %s4791_s0, %s2639_s5  ;;  %s2693_s24 = sshrl.u32 %s2612_s7, 4 }
  0x23   : > { %s136_s17 = sshll.u32 %s134_s16, 4  ;;  %s2702_s29 = scalar_lea.hbm %s4791_s0, 17504  ;;  %s2955_s17 = int_to_ptr.hbm [resolvable:$true] %s136_s17 }
  0x24   : > { %s2691_s23 = sshra.s32 %s2955_s17, 4  ;;  %s2692_s23 = int_to_ptr.hbm [resolvable:$true] %s2691_s23 }
  0x25   : > { %s2698_s25 = scalar_lea.hbm %s2692_s23, %s2693_s24  ;;  %p2703_p3 = scmp.lt.s32.totalorder %s2692_s23, %s4791_s0 }
  0x26   : > { %p2699_p0 = scmp.ne.s32.totalorder %s2692_s23, %s2698_s25  ;;  %p2704_p4 = scmp.lt.s32.totalorder %s2702_s29, %s2698_s25 }
  0x28   : > { %p2700_p1 = pnand %p2699_p0, %p2943_p13  ;;  %p2705_p7 = por %p2704_p4, %p2703_p3 }
  0x2a   : > { %p2701_p2 = pneg %p2700_p1 }
  0x2c   : > { %p2706_p8 = pnand %p2705_p7, %p2701_p2 }
  0x2e   : > { %2709 = shalt.err (!%p2706_p8)
}
  0x2f   : > { %s2710_s8 = sshra.s32 %s139_s6, 4  ;;  %s2852_s16 = smov [#allocation2]   ;;  %s2711_s8 = int_to_ptr.vmem [resolvable:$true] %s2710_s8 }
  0x30   : > { %s2717_s14 = scalar_lea.vmem %s2711_s8, %s2693_s24  ;;  %s2721_s27 = scalar_lea.vmem %s2852_s16, 8960 }
  0x31   : > { %p2718_p11 = scmp.ne.s32.totalorder %s2711_s8, %s2717_s14  ;;  %p2723_p1 = scmp.lt.s32.totalorder %s2721_s27, %s2717_s14 }
  0x33   : > { %p2719_p12 = pnand %p2718_p11, %p2943_p13 }
  0x35   : > { %p2720_p0 = pneg %p2719_p12 }
  0x37   : > { %p2725_p10 = pnand %p2723_p1, %p2720_p0 }
  0x39   : > { %2728 = shalt.err (!%p2725_p10)
}
  0x3a   : > { %s2853_s23 = smov 512   ;;  %s2854_s25 = smov 32  }
  0x3b   : > { %144 = dma.hbm_to_vmem [thread:$0]  (%p2943_p13), %s2955_s17, %s2612_s7, %s139_s6, %s2940_s30, %s2853_s23, %s2853_s23, %s2854_s25  }
  0x3c PF: > { %147 = sbr.rel (!%p2915_p5) target bundleno = 98 (0x62), region = 24  ;;  %s148_s24 = sand.u32 (%p2915_p5), 1, %s2846_s11  }
  0x3d   : > { %s153_s28 = smul.u32 (%p2915_p5), 140, %s2850_s12  ;;  %s2987_s14 = scalar_lea.sflag (%p2915_p5), [#allocation6], %s148_s24 }
  0x3e   : > { %s2643_s29 = smul.u32 (%p2915_p5), 4480, %s148_s24 }
  0x3f   : > { %s154_s3 = ssub.s32 (%p2915_p5), 547, %s153_s28 }
  0x40   : > { %p155_p10 = scmp.lt.s32.totalorder (%p2915_p5), %s154_s3, 140  ;;  %s152_s26 = scalar_lea.vmem (%p2915_p5), [#allocation5], %s2643_s29 }
  0x42   : > { %s4809_s3 = smov (!%p155_p10, %s154_s3), 140 }
  0x43   : > { %s2633_s5 = sshll.u32 %s4809_s3, 5 }
  0x44   : > { %s159_s8 = ssub.s32 4480, %s2633_s5 }
  0x45   : > { %s160_s4 = sshll.u32 %s159_s8, 4 }
  0x46   : > { %161 = vsyncadd %s2987_s14, %s160_s4  ;;  %p2990_p5 = scmp.ne.s32.totalorder %s2633_s5, 0  ;;  %s2640_s30 = smul.u32 4480, %s2850_s12 }
  0x47   : > { %s2995_s6 = sshll.u32 %s152_s26, 4  ;;  %s2619_s7 = sshll.u32 %s4809_s3, 9  ;;  %s170_s6 = int_to_ptr.vmem [resolvable:$true] %s2995_s6 }
  0x48   : > { %s165_s27 = scalar_lea.hbm %s4792_s1, %s2640_s30  ;;  %s2732_s24 = sshrl.u32 %s2619_s7, 4 }
  0x49   : > { %s167_s23 = sshll.u32 %s165_s27, 4  ;;  %s2741_s8 = scalar_lea.hbm %s4792_s1, 17504  ;;  %s3002_s23 = int_to_ptr.hbm [resolvable:$true] %s167_s23 }
  0x4a   : > { %s2730_s25 = sshra.s32 %s3002_s23, 4  ;;  %s2731_s25 = int_to_ptr.hbm [resolvable:$true] %s2730_s25 }
  0x4b   : > { %s2737_s28 = scalar_lea.hbm %s2731_s25, %s2732_s24  ;;  %p2742_p4 = scmp.lt.s32.totalorder %s2731_s25, %s4792_s1 }
  0x4c   : > { %p2738_p13 = scmp.ne.s32.totalorder %s2731_s25, %s2737_s28  ;;  %p2743_p7 = scmp.lt.s32.totalorder %s2741_s8, %s2737_s28 }
  0x4e   : > { %p2739_p2 = pnand %p2738_p13, %p2990_p5  ;;  %p2744_p8 = por %p2743_p7, %p2742_p4 }
  0x50   : > { %p2740_p3 = pneg %p2739_p2 }
  0x52   : > { %p2745_p11 = pnand %p2744_p8, %p2740_p3 }
  0x54   : > { %2748 = shalt.err (!%p2745_p11)
}
  0x55   : > { %s2749_s30 = sshra.s32 %s170_s6, 4  ;;  %s2855_s16 = smov [#allocation5]   ;;  %s2750_s30 = int_to_ptr.vmem [resolvable:$true] %s2749_s30 }
  0x56   : > { %s2756_s17 = scalar_lea.vmem %s2750_s30, %s2732_s24  ;;  %s2760_s27 = scalar_lea.vmem %s2855_s16, 8960 }
  0x57   : > { %p2757_p12 = scmp.ne.s32.totalorder %s2750_s30, %s2756_s17  ;;  %p2762_p10 = scmp.lt.s32.totalorder %s2760_s27, %s2756_s17 }
  0x59   : > { %p2758_p0 = pnand %p2757_p12, %p2990_p5 }
  0x5b   : > { %p2759_p1 = pneg %p2758_p0 }
  0x5d   : > { %p2764_p13 = pnand %p2762_p10, %p2759_p1 }
  0x5f   : > { %2767 = shalt.err (!%p2764_p13)
}
  0x60   : > { %s2856_s25 = smov 512   ;;  %s2857_s28 = smov 32  }
  0x61   : > { %175 = dma.hbm_to_vmem [thread:$0]  (%p2990_p5), %s3002_s23, %s2619_s7, %s170_s6, %s2987_s14, %s2856_s25, %s2856_s25, %s2857_s28  }
  0x62 PF: > { %p2620_p2 = scmp.ge.s32.totalorder %s2850_s12, 1  ;;  %p177_p3 = scmp.lt.s32.totalorder %s2850_s12, 5 }
  0x64   : > { %p178_p4 = pnand %p2620_p2, %p177_p3 }
  0x65   : > { %s3030_s24 = sand.u32 (!%p178_p4), 1, %s2842_s10  }
  0x66   : > { %181 = sbr.rel (%p178_p4) target bundleno = 705 (0x2c1), region = 28  ;;  %s184_s5 = scalar_lea.sflag (!%p178_p4), [#allocation3], %s3030_s24 }
  0x67   : > { %s2644_s29 = smul.u32 (!%p178_p4), 4480, %s3030_s24 }
  0x69   : > { %s3034_s19 = scalar_lea.vmem (!%p178_p4), [#allocation2], %s2644_s29 }
  0x6b   : > { %2825 = dma.done.wait (%p2919_p6), %s184_s5, 71680  }
  0x6c   : > { %2827 = vsyncadd (%p2919_p6), %s184_s5, 4294895616  ;;  %s194_s3 = scalar_lea.sflag [#allocation6], %s3030_s24  ;;  %s3041_s14 = scalar_lea.vmem [#allocation5], %s2644_s29 }
  0x6d   : > { %2829 = dma.done.wait (%p2919_p6), %s194_s3, 71680  }
  0x6e   : > { %2831 = vsyncadd (%p2919_p6), %s194_s3, 4294895616  ;;  %v242_v0 = vld [vmem:[%s3034_s19] sm:$0xff]  ;;  %v243_v2 = vld [vmem:[%s3034_s19 + $0x8] sm:$0xff]  ;;  %s3056_s20 = scalar_lea.vmem [#allocation7], %s2644_s29  ;;  %s2483_s6 = scalar_lea.sflag [#allocation4], %s3030_s24 }
  0x6f   : > { %v802_v1 = vld [vmem:[%s3041_s14] sm:$0xff]  ;;  %v803_v4 = vld [vmem:[%s3041_s14 + $0x8] sm:$0xff]  ;;  %v244_v5 = vld [vmem:[%s3034_s19 + $0x10] sm:$0xff]  ;;  %s2490_s7 = smul.u32 (%p2924_p9), 140, %s2897_s13 }
  0x70   : > { %v1362_v3 = vadd.f32 %v802_v1, %v242_v0  ;;  %v804_v6 = vld [vmem:[%s3041_s14 + $0x10] sm:$0xff]  ;;  %v1363_v7 = vadd.f32 %v803_v4, %v243_v2  ;;  %v245_v9 = vld [vmem:[%s3034_s19 + $0x18] sm:$0xff]  ;;  %v246_v11 = vld [vmem:[%s3034_s19 + $0x20] sm:$0xff] }
  0x71   : > { %v1364_v8 = vadd.f32 %v804_v6, %v244_v5  ;;  %v805_v10 = vld [vmem:[%s3041_s14 + $0x18] sm:$0xff]  ;;  %v806_v13 = vld [vmem:[%s3041_s14 + $0x20] sm:$0xff]  ;;  %v247_v14 = vld [vmem:[%s3034_s19 + $0x28] sm:$0xff]  ;;  %s2491_s23 = ssub.s32 (%p2924_p9), 547, %s2490_s7 }
  0x72   : > { %1922 = vst [vmem:[%s3056_s20] sm:$0xff] %v1362_v3  ;;  %v1365_v12 = vadd.f32 %v805_v10, %v245_v9  ;;  %v807_v15 = vld [vmem:[%s3041_s14 + $0x28] sm:$0xff]  ;;  %v1366_v16 = vadd.f32 %v806_v13, %v246_v11  ;;  %v248_v18 = vld [vmem:[%s3034_s19 + $0x30] sm:$0xff]  ;;  %v249_v20 = vld [vmem:[%s3034_s19 + $0x38] sm:$0xff]  ;;  %p2492_p6 = scmp.lt.s32.totalorder (%p2924_p9), %s2491_s23, 140 }
  0x73   : > { %1923 = vst [vmem:[%s3056_s20 + $0x8] sm:$0xff] %v1363_v7  ;;  %v1367_v17 = vadd.f32 %v807_v15, %v247_v14  ;;  %v808_v19 = vld [vmem:[%s3041_s14 + $0x30] sm:$0xff]  ;;  %v809_v22 = vld [vmem:[%s3041_s14 + $0x38] sm:$0xff]  ;;  %v250_v23 = vld [vmem:[%s3034_s19 + $0x40] sm:$0xff] }
  0x74   : > { %1924 = vst [vmem:[%s3056_s20 + $0x10] sm:$0xff] %v1364_v8  ;;  %v1368_v21 = vadd.f32 %v808_v19, %v248_v18  ;;  %v810_v24 = vld [vmem:[%s3041_s14 + $0x40] sm:$0xff]  ;;  %v1369_v25 = vadd.f32 %v809_v22, %v249_v20  ;;  %v251_v26 = vld [vmem:[%s3034_s19 + $0x48] sm:$0xff]  ;;  %v252_v28 = vld [vmem:[%s3034_s19 + $0x50] sm:$0xff] }
  0x75   : > { %1925 = vst [vmem:[%s3056_s20 + $0x18] sm:$0xff] %v1365_v12  ;;  %v811_v27 = vld [vmem:[%s3041_s14 + $0x48] sm:$0xff]  ;;  %v1370_v29 = vadd.f32 %v810_v24, %v250_v23  ;;  %v812_v30 = vld [vmem:[%s3041_s14 + $0x50] sm:$0xff]  ;;  %v253_v31 = vld [vmem:[%s3034_s19 + $0x58] sm:$0xff] }
  0x76   : > { %1926 = vst [vmem:[%s3056_s20 + $0x20] sm:$0xff] %v1366_v16  ;;  %v813_v32 = vld [vmem:[%s3041_s14 + $0x58] sm:$0xff]  ;;  %v1371_v33 = vadd.f32 %v811_v27, %v251_v26  ;;  %v254_v34 = vld [vmem:[%s3034_s19 + $0x60] sm:$0xff]  ;;  %v1372_v36 = vadd.f32 %v812_v30, %v252_v28  ;;  %v255_v37 = vld [vmem:[%s3034_s19 + $0x68] sm:$0xff] }
  0x77   : > { %1927 = vst [vmem:[%s3056_s20 + $0x28] sm:$0xff] %v1367_v17  ;;  %v814_v35 = vld [vmem:[%s3041_s14 + $0x60] sm:$0xff]  ;;  %v815_v38 = vld [vmem:[%s3041_s14 + $0x68] sm:$0xff]  ;;  %v1373_v39 = vadd.f32 %v813_v32, %v253_v31  ;;  %v256_v40 = vld [vmem:[%s3034_s19 + $0x70] sm:$0xff] }
  0x78   : > { %1928 = vst [vmem:[%s3056_s20 + $0x30] sm:$0xff] %v1368_v21  ;;  %v816_v41 = vld [vmem:[%s3041_s14 + $0x70] sm:$0xff]  ;;  %v1374_v42 = vadd.f32 %v814_v35, %v254_v34  ;;  %v257_v43 = vld [vmem:[%s3034_s19 + $0x78] sm:$0xff]  ;;  %v1375_v45 = vadd.f32 %v815_v38, %v255_v37  ;;  %v258_v46 = vld [vmem:[%s3034_s19 + $0x80] sm:$0xff] }
  0x79   : > { %1929 = vst [vmem:[%s3056_s20 + $0x38] sm:$0xff] %v1369_v25  ;;  %v817_v44 = vld [vmem:[%s3041_s14 + $0x78] sm:$0xff]  ;;  %v818_v47 = vld [vmem:[%s3041_s14 + $0x80] sm:$0xff]  ;;  %v1376_v48 = vadd.f32 %v816_v41, %v256_v40  ;;  %v259_v49 = vld [vmem:[%s3034_s19 + $0x88] sm:$0xff] }
  0x7a   : > { %1930 = vst [vmem:[%s3056_s20 + $0x40] sm:$0xff] %v1370_v29  ;;  %v819_v50 = vld [vmem:[%s3041_s14 + $0x88] sm:$0xff]  ;;  %v1377_v51 = vadd.f32 %v817_v44, %v257_v43  ;;  %v260_v52 = vld [vmem:[%s3034_s19 + $0x90] sm:$0xff]  ;;  %v1378_v54 = vadd.f32 %v818_v47, %v258_v46  ;;  %v261_v55 = vld [vmem:[%s3034_s19 + $0x98] sm:$0xff] }
  0x7b   : > { %1931 = vst [vmem:[%s3056_s20 + $0x48] sm:$0xff] %v1371_v33  ;;  %v820_v53 = vld [vmem:[%s3041_s14 + $0x90] sm:$0xff]  ;;  %v821_v56 = vld [vmem:[%s3041_s14 + $0x98] sm:$0xff]  ;;  %v1379_v57 = vadd.f32 %v819_v50, %v259_v49  ;;  %v262_v58 = vld [vmem:[%s3034_s19 + $0xa0] sm:$0xff] }
  0x7c   : > { %1932 = vst [vmem:[%s3056_s20 + $0x50] sm:$0xff] %v1372_v36  ;;  %v822_v59 = vld [vmem:[%s3041_s14 + $0xa0] sm:$0xff]  ;;  %v1380_v60 = vadd.f32 %v820_v53, %v260_v52  ;;  %v263_v61 = vld [vmem:[%s3034_s19 + $0xa8] sm:$0xff]  ;;  %v1381_v63 = vadd.f32 %v821_v56, %v261_v55  ;;  %v264_v0 = vld [vmem:[%s3034_s19 + $0xb0] sm:$0xff] }
  0x7d   : > { %1933 = vst [vmem:[%s3056_s20 + $0x58] sm:$0xff] %v1373_v39  ;;  %v823_v62 = vld [vmem:[%s3041_s14 + $0xa8] sm:$0xff]  ;;  %v824_v1 = vld [vmem:[%s3041_s14 + $0xb0] sm:$0xff]  ;;  %v1382_v2 = vadd.f32 %v822_v59, %v262_v58  ;;  %v265_v3 = vld [vmem:[%s3034_s19 + $0xb8] sm:$0xff] }
  0x7e   : > { %1934 = vst [vmem:[%s3056_s20 + $0x60] sm:$0xff] %v1374_v42  ;;  %v825_v4 = vld [vmem:[%s3041_s14 + $0xb8] sm:$0xff]  ;;  %v1383_v5 = vadd.f32 %v823_v62, %v263_v61  ;;  %v266_v6 = vld [vmem:[%s3034_s19 + $0xc0] sm:$0xff]  ;;  %v1384_v8 = vadd.f32 %v824_v1, %v264_v0  ;;  %v267_v9 = vld [vmem:[%s3034_s19 + $0xc8] sm:$0xff] }
  0x7f   : > { %1935 = vst [vmem:[%s3056_s20 + $0x68] sm:$0xff] %v1375_v45  ;;  %v826_v7 = vld [vmem:[%s3041_s14 + $0xc0] sm:$0xff]  ;;  %v827_v10 = vld [vmem:[%s3041_s14 + $0xc8] sm:$0xff]  ;;  %v1385_v11 = vadd.f32 %v825_v4, %v265_v3  ;;  %v268_v12 = vld [vmem:[%s3034_s19 + $0xd0] sm:$0xff] }
  0x80   : > { %1936 = vst [vmem:[%s3056_s20 + $0x70] sm:$0xff] %v1376_v48  ;;  %v828_v13 = vld [vmem:[%s3041_s14 + $0xd0] sm:$0xff]  ;;  %v1386_v14 = vadd.f32 %v826_v7, %v266_v6  ;;  %v269_v15 = vld [vmem:[%s3034_s19 + $0xd8] sm:$0xff]  ;;  %v1387_v17 = vadd.f32 %v827_v10, %v267_v9  ;;  %v270_v18 = vld [vmem:[%s3034_s19 + $0xe0] sm:$0xff] }
  0x81   : > { %1937 = vst [vmem:[%s3056_s20 + $0x78] sm:$0xff] %v1377_v51  ;;  %v829_v16 = vld [vmem:[%s3041_s14 + $0xd8] sm:$0xff]  ;;  %v830_v19 = vld [vmem:[%s3041_s14 + $0xe0] sm:$0xff]  ;;  %v1388_v20 = vadd.f32 %v828_v13, %v268_v12  ;;  %v271_v21 = vld [vmem:[%s3034_s19 + $0xe8] sm:$0xff] }
  0x82   : > { %1938 = vst [vmem:[%s3056_s20 + $0x80] sm:$0xff] %v1378_v54  ;;  %v831_v22 = vld [vmem:[%s3041_s14 + $0xe8] sm:$0xff]  ;;  %v1389_v23 = vadd.f32 %v829_v16, %v269_v15  ;;  %v272_v24 = vld [vmem:[%s3034_s19 + $0xf0] sm:$0xff]  ;;  %v1390_v26 = vadd.f32 %v830_v19, %v270_v18  ;;  %v273_v27 = vld [vmem:[%s3034_s19 + $0xf8] sm:$0xff] }
  0x83   : > { %1939 = vst [vmem:[%s3056_s20 + $0x88] sm:$0xff] %v1379_v57  ;;  %v832_v25 = vld [vmem:[%s3041_s14 + $0xf0] sm:$0xff]  ;;  %v833_v28 = vld [vmem:[%s3041_s14 + $0xf8] sm:$0xff]  ;;  %v1391_v29 = vadd.f32 %v831_v22, %v271_v21  ;;  %v274_v30 = vld [vmem:[%s3034_s19 + $0x100] sm:$0xff] }
  0x84   : > { %1940 = vst [vmem:[%s3056_s20 + $0x90] sm:$0xff] %v1380_v60  ;;  %v834_v31 = vld [vmem:[%s3041_s14 + $0x100] sm:$0xff]  ;;  %v1392_v32 = vadd.f32 %v832_v25, %v272_v24  ;;  %v275_v33 = vld [vmem:[%s3034_s19 + $0x108] sm:$0xff]  ;;  %v1393_v35 = vadd.f32 %v833_v28, %v273_v27  ;;  %v276_v36 = vld [vmem:[%s3034_s19 + $0x110] sm:$0xff] }
  0x85   : > { %1941 = vst [vmem:[%s3056_s20 + $0x98] sm:$0xff] %v1381_v63  ;;  %v835_v34 = vld [vmem:[%s3041_s14 + $0x108] sm:$0xff]  ;;  %v836_v37 = vld [vmem:[%s3041_s14 + $0x110] sm:$0xff]  ;;  %v1394_v38 = vadd.f32 %v834_v31, %v274_v30  ;;  %v277_v39 = vld [vmem:[%s3034_s19 + $0x118] sm:$0xff] }
  0x86   : > { %1942 = vst [vmem:[%s3056_s20 + $0xa0] sm:$0xff] %v1382_v2  ;;  %v837_v40 = vld [vmem:[%s3041_s14 + $0x118] sm:$0xff]  ;;  %v1395_v41 = vadd.f32 %v835_v34, %v275_v33  ;;  %v278_v42 = vld [vmem:[%s3034_s19 + $0x120] sm:$0xff]  ;;  %v1396_v44 = vadd.f32 %v836_v37, %v276_v36  ;;  %v279_v45 = vld [vmem:[%s3034_s19 + $0x128] sm:$0xff] }
  0x87   : > { %1943 = vst [vmem:[%s3056_s20 + $0xa8] sm:$0xff] %v1383_v5  ;;  %v838_v43 = vld [vmem:[%s3041_s14 + $0x120] sm:$0xff]  ;;  %v839_v46 = vld [vmem:[%s3041_s14 + $0x128] sm:$0xff]  ;;  %v1397_v47 = vadd.f32 %v837_v40, %v277_v39  ;;  %v280_v48 = vld [vmem:[%s3034_s19 + $0x130] sm:$0xff] }
  0x88   : > { %1944 = vst [vmem:[%s3056_s20 + $0xb0] sm:$0xff] %v1384_v8  ;;  %v840_v49 = vld [vmem:[%s3041_s14 + $0x130] sm:$0xff]  ;;  %v1398_v50 = vadd.f32 %v838_v43, %v278_v42  ;;  %v281_v51 = vld [vmem:[%s3034_s19 + $0x138] sm:$0xff]  ;;  %v1399_v53 = vadd.f32 %v839_v46, %v279_v45  ;;  %v282_v54 = vld [vmem:[%s3034_s19 + $0x140] sm:$0xff] }
  0x89   : > { %1945 = vst [vmem:[%s3056_s20 + $0xb8] sm:$0xff] %v1385_v11  ;;  %v841_v52 = vld [vmem:[%s3041_s14 + $0x138] sm:$0xff]  ;;  %v842_v55 = vld [vmem:[%s3041_s14 + $0x140] sm:$0xff]  ;;  %v1400_v56 = vadd.f32 %v840_v49, %v280_v48  ;;  %v283_v57 = vld [vmem:[%s3034_s19 + $0x148] sm:$0xff] }
  0x8a   : > { %1946 = vst [vmem:[%s3056_s20 + $0xc0] sm:$0xff] %v1386_v14  ;;  %v843_v58 = vld [vmem:[%s3041_s14 + $0x148] sm:$0xff]  ;;  %v1401_v59 = vadd.f32 %v841_v52, %v281_v51  ;;  %v284_v60 = vld [vmem:[%s3034_s19 + $0x150] sm:$0xff]  ;;  %v1402_v62 = vadd.f32 %v842_v55, %v282_v54  ;;  %v285_v63 = vld [vmem:[%s3034_s19 + $0x158] sm:$0xff] }
  0x8b   : > { %1947 = vst [vmem:[%s3056_s20 + $0xc8] sm:$0xff] %v1387_v17  ;;  %v844_v61 = vld [vmem:[%s3041_s14 + $0x150] sm:$0xff]  ;;  %v845_v0 = vld [vmem:[%s3041_s14 + $0x158] sm:$0xff]  ;;  %v1403_v1 = vadd.f32 %v843_v58, %v283_v57  ;;  %v286_v2 = vld [vmem:[%s3034_s19 + $0x160] sm:$0xff] }
  0x8c   : > { %1948 = vst [vmem:[%s3056_s20 + $0xd0] sm:$0xff] %v1388_v20  ;;  %v846_v3 = vld [vmem:[%s3041_s14 + $0x160] sm:$0xff]  ;;  %v1404_v4 = vadd.f32 %v844_v61, %v284_v60  ;;  %v287_v5 = vld [vmem:[%s3034_s19 + $0x168] sm:$0xff]  ;;  %v1405_v7 = vadd.f32 %v845_v0, %v285_v63  ;;  %v288_v8 = vld [vmem:[%s3034_s19 + $0x170] sm:$0xff] }
  0x8d   : > { %1949 = vst [vmem:[%s3056_s20 + $0xd8] sm:$0xff] %v1389_v23  ;;  %v847_v6 = vld [vmem:[%s3041_s14 + $0x168] sm:$0xff]  ;;  %v848_v9 = vld [vmem:[%s3041_s14 + $0x170] sm:$0xff]  ;;  %v1406_v10 = vadd.f32 %v846_v3, %v286_v2  ;;  %v289_v11 = vld [vmem:[%s3034_s19 + $0x178] sm:$0xff] }
  0x8e   : > { %1950 = vst [vmem:[%s3056_s20 + $0xe0] sm:$0xff] %v1390_v26  ;;  %v849_v12 = vld [vmem:[%s3041_s14 + $0x178] sm:$0xff]  ;;  %v1407_v13 = vadd.f32 %v847_v6, %v287_v5  ;;  %v290_v14 = vld [vmem:[%s3034_s19 + $0x180] sm:$0xff]  ;;  %v1408_v16 = vadd.f32 %v848_v9, %v288_v8  ;;  %v291_v17 = vld [vmem:[%s3034_s19 + $0x188] sm:$0xff] }
  0x8f   : > { %1951 = vst [vmem:[%s3056_s20 + $0xe8] sm:$0xff] %v1391_v29  ;;  %v850_v15 = vld [vmem:[%s3041_s14 + $0x180] sm:$0xff]  ;;  %v851_v18 = vld [vmem:[%s3041_s14 + $0x188] sm:$0xff]  ;;  %v1409_v19 = vadd.f32 %v849_v12, %v289_v11  ;;  %v292_v20 = vld [vmem:[%s3034_s19 + $0x190] sm:$0xff] }
  0x90   : > { %1952 = vst [vmem:[%s3056_s20 + $0xf0] sm:$0xff] %v1392_v32  ;;  %v852_v21 = vld [vmem:[%s3041_s14 + $0x190] sm:$0xff]  ;;  %v1410_v22 = vadd.f32 %v850_v15, %v290_v14  ;;  %v293_v23 = vld [vmem:[%s3034_s19 + $0x198] sm:$0xff]  ;;  %v1411_v25 = vadd.f32 %v851_v18, %v291_v17  ;;  %v294_v26 = vld [vmem:[%s3034_s19 + $0x1a0] sm:$0xff] }
  0x91   : > { %1953 = vst [vmem:[%s3056_s20 + $0xf8] sm:$0xff] %v1393_v35  ;;  %v853_v24 = vld [vmem:[%s3041_s14 + $0x198] sm:$0xff]  ;;  %v854_v27 = vld [vmem:[%s3041_s14 + $0x1a0] sm:$0xff]  ;;  %v1412_v28 = vadd.f32 %v852_v21, %v292_v20  ;;  %v295_v29 = vld [vmem:[%s3034_s19 + $0x1a8] sm:$0xff] }
  0x92   : > { %1954 = vst [vmem:[%s3056_s20 + $0x100] sm:$0xff] %v1394_v38  ;;  %v855_v30 = vld [vmem:[%s3041_s14 + $0x1a8] sm:$0xff]  ;;  %v1413_v31 = vadd.f32 %v853_v24, %v293_v23  ;;  %v296_v32 = vld [vmem:[%s3034_s19 + $0x1b0] sm:$0xff]  ;;  %v1414_v34 = vadd.f32 %v854_v27, %v294_v26  ;;  %v297_v35 = vld [vmem:[%s3034_s19 + $0x1b8] sm:$0xff] }
  0x93   : > { %1955 = vst [vmem:[%s3056_s20 + $0x108] sm:$0xff] %v1395_v41  ;;  %v856_v33 = vld [vmem:[%s3041_s14 + $0x1b0] sm:$0xff]  ;;  %v857_v36 = vld [vmem:[%s3041_s14 + $0x1b8] sm:$0xff]  ;;  %v1415_v37 = vadd.f32 %v855_v30, %v295_v29  ;;  %v298_v38 = vld [vmem:[%s3034_s19 + $0x1c0] sm:$0xff] }
  0x94   : > { %1956 = vst [vmem:[%s3056_s20 + $0x110] sm:$0xff] %v1396_v44  ;;  %v858_v39 = vld [vmem:[%s3041_s14 + $0x1c0] sm:$0xff]  ;;  %v1416_v40 = vadd.f32 %v856_v33, %v296_v32  ;;  %v299_v41 = vld [vmem:[%s3034_s19 + $0x1c8] sm:$0xff]  ;;  %v1417_v43 = vadd.f32 %v857_v36, %v297_v35  ;;  %v300_v44 = vld [vmem:[%s3034_s19 + $0x1d0] sm:$0xff] }
  0x95   : > { %1957 = vst [vmem:[%s3056_s20 + $0x118] sm:$0xff] %v1397_v47  ;;  %v859_v42 = vld [vmem:[%s3041_s14 + $0x1c8] sm:$0xff]  ;;  %v860_v45 = vld [vmem:[%s3041_s14 + $0x1d0] sm:$0xff]  ;;  %v1418_v46 = vadd.f32 %v858_v39, %v298_v38  ;;  %v301_v47 = vld [vmem:[%s3034_s19 + $0x1d8] sm:$0xff] }
  0x96   : > { %1958 = vst [vmem:[%s3056_s20 + $0x120] sm:$0xff] %v1398_v50  ;;  %v861_v48 = vld [vmem:[%s3041_s14 + $0x1d8] sm:$0xff]  ;;  %v1419_v49 = vadd.f32 %v859_v42, %v299_v41  ;;  %v302_v50 = vld [vmem:[%s3034_s19 + $0x1e0] sm:$0xff]  ;;  %v1420_v52 = vadd.f32 %v860_v45, %v300_v44  ;;  %v863_v54 = vld [vmem:[%s3041_s14 + $0x1e8] sm:$0xff] }
  0x97   : > { %1959 = vst [vmem:[%s3056_s20 + $0x128] sm:$0xff] %v1399_v53  ;;  %v862_v51 = vld [vmem:[%s3041_s14 + $0x1e0] sm:$0xff]  ;;  %v303_v53 = vld [vmem:[%s3034_s19 + $0x1e8] sm:$0xff]  ;;  %v1421_v55 = vadd.f32 %v861_v48, %v301_v47  ;;  %v864_v57 = vld [vmem:[%s3041_s14 + $0x1f0] sm:$0xff] }
  0x98   : > { %1960 = vst [vmem:[%s3056_s20 + $0x130] sm:$0xff] %v1400_v56  ;;  %v304_v56 = vld [vmem:[%s3034_s19 + $0x1f0] sm:$0xff]  ;;  %v1422_v58 = vadd.f32 %v862_v51, %v302_v50  ;;  %v865_v60 = vld [vmem:[%s3041_s14 + $0x1f8] sm:$0xff]  ;;  %v1423_v61 = vadd.f32 %v863_v54, %v303_v53  ;;  %v866_v63 = vld [vmem:[%s3041_s14 + $0x200] sm:$0xff] }
  0x99   : > { %1961 = vst [vmem:[%s3056_s20 + $0x138] sm:$0xff] %v1401_v59  ;;  %v305_v59 = vld [vmem:[%s3034_s19 + $0x1f8] sm:$0xff]  ;;  %v1424_v0 = vadd.f32 %v864_v57, %v304_v56  ;;  %v867_v2 = vld [vmem:[%s3041_s14 + $0x208] sm:$0xff]  ;;  %v868_v5 = vld [vmem:[%s3041_s14 + $0x210] sm:$0xff] }
  0x9a   : > { %1962 = vst [vmem:[%s3056_s20 + $0x140] sm:$0xff] %v1402_v62  ;;  %v306_v62 = vld [vmem:[%s3034_s19 + $0x200] sm:$0xff]  ;;  %v1425_v3 = vadd.f32 %v865_v60, %v305_v59  ;;  %v869_v8 = vld [vmem:[%s3041_s14 + $0x218] sm:$0xff]  ;;  %v871_v14 = vld [vmem:[%s3041_s14 + $0x228] sm:$0xff] }
  0x9b   : > { %1963 = vst [vmem:[%s3056_s20 + $0x148] sm:$0xff] %v1403_v1  ;;  %v307_v1 = vld [vmem:[%s3034_s19 + $0x208] sm:$0xff]  ;;  %v1426_v6 = vadd.f32 %v866_v63, %v306_v62  ;;  %v870_v11 = vld [vmem:[%s3041_s14 + $0x220] sm:$0xff]  ;;  %v872_v17 = vld [vmem:[%s3041_s14 + $0x230] sm:$0xff] }
  0x9c   : > { %1964 = vst [vmem:[%s3056_s20 + $0x150] sm:$0xff] %v1404_v4  ;;  %v308_v4 = vld [vmem:[%s3034_s19 + $0x210] sm:$0xff]  ;;  %v1427_v9 = vadd.f32 %v867_v2, %v307_v1  ;;  %v873_v20 = vld [vmem:[%s3041_s14 + $0x238] sm:$0xff]  ;;  %v874_v23 = vld [vmem:[%s3041_s14 + $0x240] sm:$0xff] }
  0x9d   : > { %1965 = vst [vmem:[%s3056_s20 + $0x158] sm:$0xff] %v1405_v7  ;;  %v309_v7 = vld [vmem:[%s3034_s19 + $0x218] sm:$0xff]  ;;  %v1428_v12 = vadd.f32 %v868_v5, %v308_v4  ;;  %v875_v26 = vld [vmem:[%s3041_s14 + $0x248] sm:$0xff]  ;;  %v876_v29 = vld [vmem:[%s3041_s14 + $0x250] sm:$0xff] }
  0x9e   : > { %1966 = vst [vmem:[%s3056_s20 + $0x160] sm:$0xff] %v1406_v10  ;;  %v310_v10 = vld [vmem:[%s3034_s19 + $0x220] sm:$0xff]  ;;  %v1429_v15 = vadd.f32 %v869_v8, %v309_v7  ;;  %v877_v32 = vld [vmem:[%s3041_s14 + $0x258] sm:$0xff]  ;;  %v879_v38 = vld [vmem:[%s3041_s14 + $0x268] sm:$0xff] }
  0x9f   : > { %1967 = vst [vmem:[%s3056_s20 + $0x168] sm:$0xff] %v1407_v13  ;;  %v311_v13 = vld [vmem:[%s3034_s19 + $0x228] sm:$0xff]  ;;  %v1430_v18 = vadd.f32 %v870_v11, %v310_v10  ;;  %v878_v35 = vld [vmem:[%s3041_s14 + $0x260] sm:$0xff]  ;;  %v880_v41 = vld [vmem:[%s3041_s14 + $0x270] sm:$0xff] }
  0xa0   : > { %1968 = vst [vmem:[%s3056_s20 + $0x170] sm:$0xff] %v1408_v16  ;;  %v312_v16 = vld [vmem:[%s3034_s19 + $0x230] sm:$0xff]  ;;  %v1431_v21 = vadd.f32 %v871_v14, %v311_v13  ;;  %v881_v44 = vld [vmem:[%s3041_s14 + $0x278] sm:$0xff]  ;;  %v882_v47 = vld [vmem:[%s3041_s14 + $0x280] sm:$0xff] }
  0xa1   : > { %1969 = vst [vmem:[%s3056_s20 + $0x178] sm:$0xff] %v1409_v19  ;;  %v313_v19 = vld [vmem:[%s3034_s19 + $0x238] sm:$0xff]  ;;  %v1432_v24 = vadd.f32 %v872_v17, %v312_v16  ;;  %v883_v50 = vld [vmem:[%s3041_s14 + $0x288] sm:$0xff]  ;;  %v884_v53 = vld [vmem:[%s3041_s14 + $0x290] sm:$0xff] }
  0xa2   : > { %1970 = vst [vmem:[%s3056_s20 + $0x180] sm:$0xff] %v1410_v22  ;;  %v314_v22 = vld [vmem:[%s3034_s19 + $0x240] sm:$0xff]  ;;  %v1433_v27 = vadd.f32 %v873_v20, %v313_v19  ;;  %v885_v56 = vld [vmem:[%s3041_s14 + $0x298] sm:$0xff]  ;;  %v887_v62 = vld [vmem:[%s3041_s14 + $0x2a8] sm:$0xff] }
  0xa3   : > { %1971 = vst [vmem:[%s3056_s20 + $0x188] sm:$0xff] %v1411_v25  ;;  %v315_v25 = vld [vmem:[%s3034_s19 + $0x248] sm:$0xff]  ;;  %v1434_v30 = vadd.f32 %v874_v23, %v314_v22  ;;  %v886_v59 = vld [vmem:[%s3041_s14 + $0x2a0] sm:$0xff]  ;;  %v888_v1 = vld [vmem:[%s3041_s14 + $0x2b0] sm:$0xff] }
  0xa4   : > { %1972 = vst [vmem:[%s3056_s20 + $0x190] sm:$0xff] %v1412_v28  ;;  %v316_v28 = vld [vmem:[%s3034_s19 + $0x250] sm:$0xff]  ;;  %v1435_v33 = vadd.f32 %v875_v26, %v315_v25  ;;  %v889_v4 = vld [vmem:[%s3041_s14 + $0x2b8] sm:$0xff]  ;;  %v890_v7 = vld [vmem:[%s3041_s14 + $0x2c0] sm:$0xff] }
  0xa5   : > { %1973 = vst [vmem:[%s3056_s20 + $0x198] sm:$0xff] %v1413_v31  ;;  %v317_v31 = vld [vmem:[%s3034_s19 + $0x258] sm:$0xff]  ;;  %v1436_v36 = vadd.f32 %v876_v29, %v316_v28  ;;  %v891_v10 = vld [vmem:[%s3041_s14 + $0x2c8] sm:$0xff]  ;;  %v892_v13 = vld [vmem:[%s3041_s14 + $0x2d0] sm:$0xff] }
  0xa6   : > { %1974 = vst [vmem:[%s3056_s20 + $0x1a0] sm:$0xff] %v1414_v34  ;;  %v318_v34 = vld [vmem:[%s3034_s19 + $0x260] sm:$0xff]  ;;  %v1437_v39 = vadd.f32 %v877_v32, %v317_v31  ;;  %v893_v16 = vld [vmem:[%s3041_s14 + $0x2d8] sm:$0xff]  ;;  %v895_v22 = vld [vmem:[%s3041_s14 + $0x2e8] sm:$0xff] }
  0xa7   : > { %1975 = vst [vmem:[%s3056_s20 + $0x1a8] sm:$0xff] %v1415_v37  ;;  %v319_v37 = vld [vmem:[%s3034_s19 + $0x268] sm:$0xff]  ;;  %v1438_v42 = vadd.f32 %v878_v35, %v318_v34  ;;  %v894_v19 = vld [vmem:[%s3041_s14 + $0x2e0] sm:$0xff]  ;;  %v896_v25 = vld [vmem:[%s3041_s14 + $0x2f0] sm:$0xff] }
  0xa8   : > { %1976 = vst [vmem:[%s3056_s20 + $0x1b0] sm:$0xff] %v1416_v40  ;;  %v320_v40 = vld [vmem:[%s3034_s19 + $0x270] sm:$0xff]  ;;  %v1439_v45 = vadd.f32 %v879_v38, %v319_v37  ;;  %v897_v28 = vld [vmem:[%s3041_s14 + $0x2f8] sm:$0xff]  ;;  %v898_v31 = vld [vmem:[%s3041_s14 + $0x300] sm:$0xff] }
  0xa9   : > { %1977 = vst [vmem:[%s3056_s20 + $0x1b8] sm:$0xff] %v1417_v43  ;;  %v321_v43 = vld [vmem:[%s3034_s19 + $0x278] sm:$0xff]  ;;  %v1440_v48 = vadd.f32 %v880_v41, %v320_v40  ;;  %v899_v34 = vld [vmem:[%s3041_s14 + $0x308] sm:$0xff]  ;;  %v900_v37 = vld [vmem:[%s3041_s14 + $0x310] sm:$0xff] }
  0xaa   : > { %1978 = vst [vmem:[%s3056_s20 + $0x1c0] sm:$0xff] %v1418_v46  ;;  %v322_v46 = vld [vmem:[%s3034_s19 + $0x280] sm:$0xff]  ;;  %v1441_v51 = vadd.f32 %v881_v44, %v321_v43  ;;  %v901_v40 = vld [vmem:[%s3041_s14 + $0x318] sm:$0xff] }
  0xab   : > { %1979 = vst [vmem:[%s3056_s20 + $0x1c8] sm:$0xff] %v1419_v49  ;;  %v323_v49 = vld [vmem:[%s3034_s19 + $0x288] sm:$0xff]  ;;  %v1442_v54 = vadd.f32 %v882_v47, %v322_v46  ;;  %v902_v43 = vld [vmem:[%s3041_s14 + $0x320] sm:$0xff] }
  0xac   : > { %1980 = vst [vmem:[%s3056_s20 + $0x1d0] sm:$0xff] %v1420_v52  ;;  %v324_v52 = vld [vmem:[%s3034_s19 + $0x290] sm:$0xff]  ;;  %v1443_v57 = vadd.f32 %v883_v50, %v323_v49  ;;  %v903_v46 = vld [vmem:[%s3041_s14 + $0x328] sm:$0xff] }
  0xad   : > { %1981 = vst [vmem:[%s3056_s20 + $0x1d8] sm:$0xff] %v1421_v55  ;;  %v325_v55 = vld [vmem:[%s3034_s19 + $0x298] sm:$0xff]  ;;  %v1444_v60 = vadd.f32 %v884_v53, %v324_v52  ;;  %v904_v49 = vld [vmem:[%s3041_s14 + $0x330] sm:$0xff] }
  0xae   : > { %1982 = vst [vmem:[%s3056_s20 + $0x1e0] sm:$0xff] %v1422_v58  ;;  %v326_v58 = vld [vmem:[%s3034_s19 + $0x2a0] sm:$0xff]  ;;  %v1445_v63 = vadd.f32 %v885_v56, %v325_v55  ;;  %v905_v52 = vld [vmem:[%s3041_s14 + $0x338] sm:$0xff] }
  0xaf   : > { %1983 = vst [vmem:[%s3056_s20 + $0x1e8] sm:$0xff] %v1423_v61  ;;  %v327_v61 = vld [vmem:[%s3034_s19 + $0x2a8] sm:$0xff]  ;;  %v1446_v2 = vadd.f32 %v886_v59, %v326_v58  ;;  %v906_v55 = vld [vmem:[%s3041_s14 + $0x340] sm:$0xff] }
  0xb0   : > { %1984 = vst [vmem:[%s3056_s20 + $0x1f0] sm:$0xff] %v1424_v0  ;;  %v328_v0 = vld [vmem:[%s3034_s19 + $0x2b0] sm:$0xff]  ;;  %v1447_v5 = vadd.f32 %v887_v62, %v327_v61  ;;  %v907_v58 = vld [vmem:[%s3041_s14 + $0x348] sm:$0xff] }
  0xb1   : > { %1985 = vst [vmem:[%s3056_s20 + $0x1f8] sm:$0xff] %v1425_v3  ;;  %v329_v3 = vld [vmem:[%s3034_s19 + $0x2b8] sm:$0xff]  ;;  %v1448_v8 = vadd.f32 %v888_v1, %v328_v0  ;;  %v908_v61 = vld [vmem:[%s3041_s14 + $0x350] sm:$0xff] }
  0xb2   : > { %1986 = vst [vmem:[%s3056_s20 + $0x200] sm:$0xff] %v1426_v6  ;;  %v330_v6 = vld [vmem:[%s3034_s19 + $0x2c0] sm:$0xff]  ;;  %v1449_v11 = vadd.f32 %v889_v4, %v329_v3  ;;  %v909_v0 = vld [vmem:[%s3041_s14 + $0x358] sm:$0xff] }
  0xb3   : > { %1987 = vst [vmem:[%s3056_s20 + $0x208] sm:$0xff] %v1427_v9  ;;  %v331_v9 = vld [vmem:[%s3034_s19 + $0x2c8] sm:$0xff]  ;;  %v1450_v14 = vadd.f32 %v890_v7, %v330_v6  ;;  %v910_v3 = vld [vmem:[%s3041_s14 + $0x360] sm:$0xff] }
  0xb4   : > { %1988 = vst [vmem:[%s3056_s20 + $0x210] sm:$0xff] %v1428_v12  ;;  %v332_v12 = vld [vmem:[%s3034_s19 + $0x2d0] sm:$0xff]  ;;  %v1451_v17 = vadd.f32 %v891_v10, %v331_v9  ;;  %v911_v6 = vld [vmem:[%s3041_s14 + $0x368] sm:$0xff] }
  0xb5   : > { %1989 = vst [vmem:[%s3056_s20 + $0x218] sm:$0xff] %v1429_v15  ;;  %v333_v15 = vld [vmem:[%s3034_s19 + $0x2d8] sm:$0xff]  ;;  %v1452_v20 = vadd.f32 %v892_v13, %v332_v12  ;;  %v912_v9 = vld [vmem:[%s3041_s14 + $0x370] sm:$0xff] }
  0xb6   : > { %1990 = vst [vmem:[%s3056_s20 + $0x220] sm:$0xff] %v1430_v18  ;;  %v334_v18 = vld [vmem:[%s3034_s19 + $0x2e0] sm:$0xff]  ;;  %v1453_v23 = vadd.f32 %v893_v16, %v333_v15  ;;  %v913_v12 = vld [vmem:[%s3041_s14 + $0x378] sm:$0xff] }
  0xb7   : > { %1991 = vst [vmem:[%s3056_s20 + $0x228] sm:$0xff] %v1431_v21  ;;  %v335_v21 = vld [vmem:[%s3034_s19 + $0x2e8] sm:$0xff]  ;;  %v1454_v26 = vadd.f32 %v894_v19, %v334_v18  ;;  %v914_v15 = vld [vmem:[%s3041_s14 + $0x380] sm:$0xff] }
  0xb8   : > { %1992 = vst [vmem:[%s3056_s20 + $0x230] sm:$0xff] %v1432_v24  ;;  %v336_v24 = vld [vmem:[%s3034_s19 + $0x2f0] sm:$0xff]  ;;  %v1455_v29 = vadd.f32 %v895_v22, %v335_v21  ;;  %v915_v18 = vld [vmem:[%s3041_s14 + $0x388] sm:$0xff] }
  0xb9   : > { %1993 = vst [vmem:[%s3056_s20 + $0x238] sm:$0xff] %v1433_v27  ;;  %v337_v27 = vld [vmem:[%s3034_s19 + $0x2f8] sm:$0xff]  ;;  %v1456_v32 = vadd.f32 %v896_v25, %v336_v24  ;;  %v916_v21 = vld [vmem:[%s3041_s14 + $0x390] sm:$0xff] }
  0xba   : > { %1994 = vst [vmem:[%s3056_s20 + $0x240] sm:$0xff] %v1434_v30  ;;  %v338_v30 = vld [vmem:[%s3034_s19 + $0x300] sm:$0xff]  ;;  %v1457_v35 = vadd.f32 %v897_v28, %v337_v27  ;;  %v917_v24 = vld [vmem:[%s3041_s14 + $0x398] sm:$0xff] }
  0xbb   : > { %1995 = vst [vmem:[%s3056_s20 + $0x248] sm:$0xff] %v1435_v33  ;;  %v339_v33 = vld [vmem:[%s3034_s19 + $0x308] sm:$0xff]  ;;  %v1458_v38 = vadd.f32 %v898_v31, %v338_v30  ;;  %v918_v27 = vld [vmem:[%s3041_s14 + $0x3a0] sm:$0xff] }
  0xbc   : > { %1996 = vst [vmem:[%s3056_s20 + $0x250] sm:$0xff] %v1436_v36  ;;  %v340_v36 = vld [vmem:[%s3034_s19 + $0x310] sm:$0xff]  ;;  %v1459_v41 = vadd.f32 %v899_v34, %v339_v33  ;;  %v919_v30 = vld [vmem:[%s3041_s14 + $0x3a8] sm:$0xff] }
  0xbd   : > { %1997 = vst [vmem:[%s3056_s20 + $0x258] sm:$0xff] %v1437_v39  ;;  %v341_v39 = vld [vmem:[%s3034_s19 + $0x318] sm:$0xff]  ;;  %v1460_v44 = vadd.f32 %v900_v37, %v340_v36  ;;  %v920_v33 = vld [vmem:[%s3041_s14 + $0x3b0] sm:$0xff] }
  0xbe   : > { %1998 = vst [vmem:[%s3056_s20 + $0x260] sm:$0xff] %v1438_v42  ;;  %v342_v42 = vld [vmem:[%s3034_s19 + $0x320] sm:$0xff]  ;;  %v1461_v47 = vadd.f32 %v901_v40, %v341_v39  ;;  %v921_v36 = vld [vmem:[%s3041_s14 + $0x3b8] sm:$0xff] }
  0xbf   : > { %1999 = vst [vmem:[%s3056_s20 + $0x268] sm:$0xff] %v1439_v45  ;;  %v343_v45 = vld [vmem:[%s3034_s19 + $0x328] sm:$0xff]  ;;  %v1462_v50 = vadd.f32 %v902_v43, %v342_v42  ;;  %v922_v39 = vld [vmem:[%s3041_s14 + $0x3c0] sm:$0xff] }
  0xc0   : > { %2000 = vst [vmem:[%s3056_s20 + $0x270] sm:$0xff] %v1440_v48  ;;  %v344_v48 = vld [vmem:[%s3034_s19 + $0x330] sm:$0xff]  ;;  %v1463_v53 = vadd.f32 %v903_v46, %v343_v45  ;;  %v923_v42 = vld [vmem:[%s3041_s14 + $0x3c8] sm:$0xff] }
  0xc1   : > { %2001 = vst [vmem:[%s3056_s20 + $0x278] sm:$0xff] %v1441_v51  ;;  %v345_v51 = vld [vmem:[%s3034_s19 + $0x338] sm:$0xff]  ;;  %v1464_v56 = vadd.f32 %v904_v49, %v344_v48  ;;  %v924_v45 = vld [vmem:[%s3041_s14 + $0x3d0] sm:$0xff] }
  0xc2   : > { %2002 = vst [vmem:[%s3056_s20 + $0x280] sm:$0xff] %v1442_v54  ;;  %v346_v54 = vld [vmem:[%s3034_s19 + $0x340] sm:$0xff]  ;;  %v1465_v59 = vadd.f32 %v905_v52, %v345_v51  ;;  %v925_v48 = vld [vmem:[%s3041_s14 + $0x3d8] sm:$0xff] }
  0xc3   : > { %2003 = vst [vmem:[%s3056_s20 + $0x288] sm:$0xff] %v1443_v57  ;;  %v347_v57 = vld [vmem:[%s3034_s19 + $0x348] sm:$0xff]  ;;  %v1466_v62 = vadd.f32 %v906_v55, %v346_v54  ;;  %v926_v51 = vld [vmem:[%s3041_s14 + $0x3e0] sm:$0xff] }
  0xc4   : > { %2004 = vst [vmem:[%s3056_s20 + $0x290] sm:$0xff] %v1444_v60  ;;  %v348_v60 = vld [vmem:[%s3034_s19 + $0x350] sm:$0xff]  ;;  %v1467_v1 = vadd.f32 %v907_v58, %v347_v57  ;;  %v927_v54 = vld [vmem:[%s3041_s14 + $0x3e8] sm:$0xff] }
  0xc5   : > { %2005 = vst [vmem:[%s3056_s20 + $0x298] sm:$0xff] %v1445_v63  ;;  %v349_v63 = vld [vmem:[%s3034_s19 + $0x358] sm:$0xff]  ;;  %v1468_v4 = vadd.f32 %v908_v61, %v348_v60  ;;  %v928_v57 = vld [vmem:[%s3041_s14 + $0x3f0] sm:$0xff] }
  0xc6   : > { %2006 = vst [vmem:[%s3056_s20 + $0x2a0] sm:$0xff] %v1446_v2  ;;  %v350_v2 = vld [vmem:[%s3034_s19 + $0x360] sm:$0xff]  ;;  %v1469_v7 = vadd.f32 %v909_v0, %v349_v63  ;;  %v929_v60 = vld [vmem:[%s3041_s14 + $0x3f8] sm:$0xff] }
  0xc7   : > { %2007 = vst [vmem:[%s3056_s20 + $0x2a8] sm:$0xff] %v1447_v5  ;;  %v351_v5 = vld [vmem:[%s3034_s19 + $0x368] sm:$0xff]  ;;  %v1470_v10 = vadd.f32 %v910_v3, %v350_v2  ;;  %v930_v63 = vld [vmem:[%s3041_s14 + $0x400] sm:$0xff] }
  0xc8   : > { %2008 = vst [vmem:[%s3056_s20 + $0x2b0] sm:$0xff] %v1448_v8  ;;  %v352_v8 = vld [vmem:[%s3034_s19 + $0x370] sm:$0xff]  ;;  %v1471_v13 = vadd.f32 %v911_v6, %v351_v5  ;;  %v931_v2 = vld [vmem:[%s3041_s14 + $0x408] sm:$0xff] }
  0xc9   : > { %2009 = vst [vmem:[%s3056_s20 + $0x2b8] sm:$0xff] %v1449_v11  ;;  %v353_v11 = vld [vmem:[%s3034_s19 + $0x378] sm:$0xff]  ;;  %v1472_v16 = vadd.f32 %v912_v9, %v352_v8  ;;  %v932_v5 = vld [vmem:[%s3041_s14 + $0x410] sm:$0xff] }
  0xca   : > { %2010 = vst [vmem:[%s3056_s20 + $0x2c0] sm:$0xff] %v1450_v14  ;;  %v354_v14 = vld [vmem:[%s3034_s19 + $0x380] sm:$0xff]  ;;  %v1473_v19 = vadd.f32 %v913_v12, %v353_v11  ;;  %v933_v8 = vld [vmem:[%s3041_s14 + $0x418] sm:$0xff] }
  0xcb   : > { %2011 = vst [vmem:[%s3056_s20 + $0x2c8] sm:$0xff] %v1451_v17  ;;  %v355_v17 = vld [vmem:[%s3034_s19 + $0x388] sm:$0xff]  ;;  %v1474_v22 = vadd.f32 %v914_v15, %v354_v14  ;;  %v934_v11 = vld [vmem:[%s3041_s14 + $0x420] sm:$0xff] }
  0xcc   : > { %2012 = vst [vmem:[%s3056_s20 + $0x2d0] sm:$0xff] %v1452_v20  ;;  %v356_v20 = vld [vmem:[%s3034_s19 + $0x390] sm:$0xff]  ;;  %v1475_v25 = vadd.f32 %v915_v18, %v355_v17  ;;  %v935_v14 = vld [vmem:[%s3041_s14 + $0x428] sm:$0xff] }
  0xcd   : > { %2013 = vst [vmem:[%s3056_s20 + $0x2d8] sm:$0xff] %v1453_v23  ;;  %v357_v23 = vld [vmem:[%s3034_s19 + $0x398] sm:$0xff]  ;;  %v1476_v28 = vadd.f32 %v916_v21, %v356_v20  ;;  %v936_v17 = vld [vmem:[%s3041_s14 + $0x430] sm:$0xff] }
  0xce   : > { %2014 = vst [vmem:[%s3056_s20 + $0x2e0] sm:$0xff] %v1454_v26  ;;  %v358_v26 = vld [vmem:[%s3034_s19 + $0x3a0] sm:$0xff]  ;;  %v1477_v31 = vadd.f32 %v917_v24, %v357_v23  ;;  %v937_v20 = vld [vmem:[%s3041_s14 + $0x438] sm:$0xff] }
  0xcf   : > { %2015 = vst [vmem:[%s3056_s20 + $0x2e8] sm:$0xff] %v1455_v29  ;;  %v359_v29 = vld [vmem:[%s3034_s19 + $0x3a8] sm:$0xff]  ;;  %v1478_v34 = vadd.f32 %v918_v27, %v358_v26  ;;  %v938_v23 = vld [vmem:[%s3041_s14 + $0x440] sm:$0xff] }
  0xd0   : > { %2016 = vst [vmem:[%s3056_s20 + $0x2f0] sm:$0xff] %v1456_v32  ;;  %v360_v32 = vld [vmem:[%s3034_s19 + $0x3b0] sm:$0xff]  ;;  %v1479_v37 = vadd.f32 %v919_v30, %v359_v29  ;;  %v939_v26 = vld [vmem:[%s3041_s14 + $0x448] sm:$0xff] }
  0xd1   : > { %2017 = vst [vmem:[%s3056_s20 + $0x2f8] sm:$0xff] %v1457_v35  ;;  %v361_v35 = vld [vmem:[%s3034_s19 + $0x3b8] sm:$0xff]  ;;  %v1480_v40 = vadd.f32 %v920_v33, %v360_v32  ;;  %v940_v29 = vld [vmem:[%s3041_s14 + $0x450] sm:$0xff] }
  0xd2   : > { %2018 = vst [vmem:[%s3056_s20 + $0x300] sm:$0xff] %v1458_v38  ;;  %v362_v38 = vld [vmem:[%s3034_s19 + $0x3c0] sm:$0xff]  ;;  %v1481_v43 = vadd.f32 %v921_v36, %v361_v35  ;;  %v941_v32 = vld [vmem:[%s3041_s14 + $0x458] sm:$0xff] }
  0xd3   : > { %2019 = vst [vmem:[%s3056_s20 + $0x308] sm:$0xff] %v1459_v41  ;;  %v363_v41 = vld [vmem:[%s3034_s19 + $0x3c8] sm:$0xff]  ;;  %v1482_v46 = vadd.f32 %v922_v39, %v362_v38  ;;  %v942_v35 = vld [vmem:[%s3041_s14 + $0x460] sm:$0xff] }
  0xd4   : > { %2020 = vst [vmem:[%s3056_s20 + $0x310] sm:$0xff] %v1460_v44  ;;  %v364_v44 = vld [vmem:[%s3034_s19 + $0x3d0] sm:$0xff]  ;;  %v1483_v49 = vadd.f32 %v923_v42, %v363_v41  ;;  %v943_v38 = vld [vmem:[%s3041_s14 + $0x468] sm:$0xff] }
  0xd5   : > { %2021 = vst [vmem:[%s3056_s20 + $0x318] sm:$0xff] %v1461_v47  ;;  %v365_v47 = vld [vmem:[%s3034_s19 + $0x3d8] sm:$0xff]  ;;  %v1484_v52 = vadd.f32 %v924_v45, %v364_v44  ;;  %v944_v41 = vld [vmem:[%s3041_s14 + $0x470] sm:$0xff] }
  0xd6   : > { %2022 = vst [vmem:[%s3056_s20 + $0x320] sm:$0xff] %v1462_v50  ;;  %v366_v50 = vld [vmem:[%s3034_s19 + $0x3e0] sm:$0xff]  ;;  %v1485_v55 = vadd.f32 %v925_v48, %v365_v47  ;;  %v945_v44 = vld [vmem:[%s3041_s14 + $0x478] sm:$0xff] }
  0xd7   : > { %2023 = vst [vmem:[%s3056_s20 + $0x328] sm:$0xff] %v1463_v53  ;;  %v367_v53 = vld [vmem:[%s3034_s19 + $0x3e8] sm:$0xff]  ;;  %v1486_v58 = vadd.f32 %v926_v51, %v366_v50  ;;  %v946_v47 = vld [vmem:[%s3041_s14 + $0x480] sm:$0xff] }
  0xd8   : > { %2024 = vst [vmem:[%s3056_s20 + $0x330] sm:$0xff] %v1464_v56  ;;  %v368_v56 = vld [vmem:[%s3034_s19 + $0x3f0] sm:$0xff]  ;;  %v1487_v61 = vadd.f32 %v927_v54, %v367_v53  ;;  %v947_v50 = vld [vmem:[%s3041_s14 + $0x488] sm:$0xff] }
  0xd9   : > { %2025 = vst [vmem:[%s3056_s20 + $0x338] sm:$0xff] %v1465_v59  ;;  %v369_v59 = vld [vmem:[%s3034_s19 + $0x3f8] sm:$0xff]  ;;  %v1488_v0 = vadd.f32 %v928_v57, %v368_v56  ;;  %v948_v53 = vld [vmem:[%s3041_s14 + $0x490] sm:$0xff] }
  0xda   : > { %2026 = vst [vmem:[%s3056_s20 + $0x340] sm:$0xff] %v1466_v62  ;;  %v370_v62 = vld [vmem:[%s3034_s19 + $0x400] sm:$0xff]  ;;  %v1489_v3 = vadd.f32 %v929_v60, %v369_v59  ;;  %v949_v56 = vld [vmem:[%s3041_s14 + $0x498] sm:$0xff] }
  0xdb   : > { %2027 = vst [vmem:[%s3056_s20 + $0x348] sm:$0xff] %v1467_v1  ;;  %v371_v1 = vld [vmem:[%s3034_s19 + $0x408] sm:$0xff]  ;;  %v1490_v6 = vadd.f32 %v930_v63, %v370_v62  ;;  %v950_v59 = vld [vmem:[%s3041_s14 + $0x4a0] sm:$0xff] }
  0xdc   : > { %2028 = vst [vmem:[%s3056_s20 + $0x350] sm:$0xff] %v1468_v4  ;;  %v372_v4 = vld [vmem:[%s3034_s19 + $0x410] sm:$0xff]  ;;  %v1491_v9 = vadd.f32 %v931_v2, %v371_v1  ;;  %v951_v62 = vld [vmem:[%s3041_s14 + $0x4a8] sm:$0xff] }
  0xdd   : > { %2029 = vst [vmem:[%s3056_s20 + $0x358] sm:$0xff] %v1469_v7  ;;  %v373_v7 = vld [vmem:[%s3034_s19 + $0x418] sm:$0xff]  ;;  %v1492_v12 = vadd.f32 %v932_v5, %v372_v4  ;;  %v952_v1 = vld [vmem:[%s3041_s14 + $0x4b0] sm:$0xff] }
  0xde   : > { %2030 = vst [vmem:[%s3056_s20 + $0x360] sm:$0xff] %v1470_v10  ;;  %v374_v10 = vld [vmem:[%s3034_s19 + $0x420] sm:$0xff]  ;;  %v1493_v15 = vadd.f32 %v933_v8, %v373_v7  ;;  %v953_v4 = vld [vmem:[%s3041_s14 + $0x4b8] sm:$0xff] }
  0xdf   : > { %2031 = vst [vmem:[%s3056_s20 + $0x368] sm:$0xff] %v1471_v13  ;;  %v375_v13 = vld [vmem:[%s3034_s19 + $0x428] sm:$0xff]  ;;  %v1494_v18 = vadd.f32 %v934_v11, %v374_v10  ;;  %v954_v7 = vld [vmem:[%s3041_s14 + $0x4c0] sm:$0xff] }
  0xe0   : > { %2032 = vst [vmem:[%s3056_s20 + $0x370] sm:$0xff] %v1472_v16  ;;  %v376_v16 = vld [vmem:[%s3034_s19 + $0x430] sm:$0xff]  ;;  %v1495_v21 = vadd.f32 %v935_v14, %v375_v13  ;;  %v955_v10 = vld [vmem:[%s3041_s14 + $0x4c8] sm:$0xff] }
  0xe1   : > { %2033 = vst [vmem:[%s3056_s20 + $0x378] sm:$0xff] %v1473_v19  ;;  %v377_v19 = vld [vmem:[%s3034_s19 + $0x438] sm:$0xff]  ;;  %v1496_v24 = vadd.f32 %v936_v17, %v376_v16  ;;  %v956_v13 = vld [vmem:[%s3041_s14 + $0x4d0] sm:$0xff] }
  0xe2   : > { %2034 = vst [vmem:[%s3056_s20 + $0x380] sm:$0xff] %v1474_v22  ;;  %v378_v22 = vld [vmem:[%s3034_s19 + $0x440] sm:$0xff]  ;;  %v1497_v27 = vadd.f32 %v937_v20, %v377_v19  ;;  %v957_v16 = vld [vmem:[%s3041_s14 + $0x4d8] sm:$0xff] }
  0xe3   : > { %2035 = vst [vmem:[%s3056_s20 + $0x388] sm:$0xff] %v1475_v25  ;;  %v379_v25 = vld [vmem:[%s3034_s19 + $0x448] sm:$0xff]  ;;  %v1498_v30 = vadd.f32 %v938_v23, %v378_v22  ;;  %v958_v19 = vld [vmem:[%s3041_s14 + $0x4e0] sm:$0xff] }
  0xe4   : > { %2036 = vst [vmem:[%s3056_s20 + $0x390] sm:$0xff] %v1476_v28  ;;  %v380_v28 = vld [vmem:[%s3034_s19 + $0x450] sm:$0xff]  ;;  %v1499_v33 = vadd.f32 %v939_v26, %v379_v25  ;;  %v959_v22 = vld [vmem:[%s3041_s14 + $0x4e8] sm:$0xff] }
  0xe5   : > { %2037 = vst [vmem:[%s3056_s20 + $0x398] sm:$0xff] %v1477_v31  ;;  %v381_v31 = vld [vmem:[%s3034_s19 + $0x458] sm:$0xff]  ;;  %v1500_v36 = vadd.f32 %v940_v29, %v380_v28  ;;  %v960_v25 = vld [vmem:[%s3041_s14 + $0x4f0] sm:$0xff] }
  0xe6   : > { %2038 = vst [vmem:[%s3056_s20 + $0x3a0] sm:$0xff] %v1478_v34  ;;  %v382_v34 = vld [vmem:[%s3034_s19 + $0x460] sm:$0xff]  ;;  %v1501_v39 = vadd.f32 %v941_v32, %v381_v31  ;;  %v961_v28 = vld [vmem:[%s3041_s14 + $0x4f8] sm:$0xff] }
  0xe7   : > { %2039 = vst [vmem:[%s3056_s20 + $0x3a8] sm:$0xff] %v1479_v37  ;;  %v383_v37 = vld [vmem:[%s3034_s19 + $0x468] sm:$0xff]  ;;  %v1502_v42 = vadd.f32 %v942_v35, %v382_v34  ;;  %v962_v31 = vld [vmem:[%s3041_s14 + $0x500] sm:$0xff] }
  0xe8   : > { %2040 = vst [vmem:[%s3056_s20 + $0x3b0] sm:$0xff] %v1480_v40  ;;  %v384_v40 = vld [vmem:[%s3034_s19 + $0x470] sm:$0xff]  ;;  %v1503_v45 = vadd.f32 %v943_v38, %v383_v37  ;;  %v963_v34 = vld [vmem:[%s3041_s14 + $0x508] sm:$0xff] }
  0xe9   : > { %2041 = vst [vmem:[%s3056_s20 + $0x3b8] sm:$0xff] %v1481_v43  ;;  %v385_v43 = vld [vmem:[%s3034_s19 + $0x478] sm:$0xff]  ;;  %v1504_v48 = vadd.f32 %v944_v41, %v384_v40  ;;  %v964_v37 = vld [vmem:[%s3041_s14 + $0x510] sm:$0xff] }
  0xea   : > { %2042 = vst [vmem:[%s3056_s20 + $0x3c0] sm:$0xff] %v1482_v46  ;;  %v386_v46 = vld [vmem:[%s3034_s19 + $0x480] sm:$0xff]  ;;  %v1505_v51 = vadd.f32 %v945_v44, %v385_v43  ;;  %v965_v40 = vld [vmem:[%s3041_s14 + $0x518] sm:$0xff] }
  0xeb   : > { %2043 = vst [vmem:[%s3056_s20 + $0x3c8] sm:$0xff] %v1483_v49  ;;  %v387_v49 = vld [vmem:[%s3034_s19 + $0x488] sm:$0xff]  ;;  %v1506_v54 = vadd.f32 %v946_v47, %v386_v46  ;;  %v966_v43 = vld [vmem:[%s3041_s14 + $0x520] sm:$0xff] }
  0xec   : > { %2044 = vst [vmem:[%s3056_s20 + $0x3d0] sm:$0xff] %v1484_v52  ;;  %v388_v52 = vld [vmem:[%s3034_s19 + $0x490] sm:$0xff]  ;;  %v1507_v57 = vadd.f32 %v947_v50, %v387_v49  ;;  %v967_v46 = vld [vmem:[%s3041_s14 + $0x528] sm:$0xff] }
  0xed   : > { %2045 = vst [vmem:[%s3056_s20 + $0x3d8] sm:$0xff] %v1485_v55  ;;  %v389_v55 = vld [vmem:[%s3034_s19 + $0x498] sm:$0xff]  ;;  %v1508_v60 = vadd.f32 %v948_v53, %v388_v52  ;;  %v968_v49 = vld [vmem:[%s3041_s14 + $0x530] sm:$0xff] }
  0xee   : > { %2046 = vst [vmem:[%s3056_s20 + $0x3e0] sm:$0xff] %v1486_v58  ;;  %v390_v58 = vld [vmem:[%s3034_s19 + $0x4a0] sm:$0xff]  ;;  %v1509_v63 = vadd.f32 %v949_v56, %v389_v55  ;;  %v969_v52 = vld [vmem:[%s3041_s14 + $0x538] sm:$0xff] }
  0xef   : > { %2047 = vst [vmem:[%s3056_s20 + $0x3e8] sm:$0xff] %v1487_v61  ;;  %v391_v61 = vld [vmem:[%s3034_s19 + $0x4a8] sm:$0xff]  ;;  %v1510_v2 = vadd.f32 %v950_v59, %v390_v58  ;;  %v970_v55 = vld [vmem:[%s3041_s14 + $0x540] sm:$0xff] }
  0xf0   : > { %2048 = vst [vmem:[%s3056_s20 + $0x3f0] sm:$0xff] %v1488_v0  ;;  %v392_v0 = vld [vmem:[%s3034_s19 + $0x4b0] sm:$0xff]  ;;  %v1511_v5 = vadd.f32 %v951_v62, %v391_v61  ;;  %v971_v58 = vld [vmem:[%s3041_s14 + $0x548] sm:$0xff] }
  0xf1   : > { %2049 = vst [vmem:[%s3056_s20 + $0x3f8] sm:$0xff] %v1489_v3  ;;  %v393_v3 = vld [vmem:[%s3034_s19 + $0x4b8] sm:$0xff]  ;;  %v1512_v8 = vadd.f32 %v952_v1, %v392_v0  ;;  %v972_v61 = vld [vmem:[%s3041_s14 + $0x550] sm:$0xff] }
  0xf2   : > { %2050 = vst [vmem:[%s3056_s20 + $0x400] sm:$0xff] %v1490_v6  ;;  %v394_v6 = vld [vmem:[%s3034_s19 + $0x4c0] sm:$0xff]  ;;  %v1513_v11 = vadd.f32 %v953_v4, %v393_v3  ;;  %v973_v0 = vld [vmem:[%s3041_s14 + $0x558] sm:$0xff] }
  0xf3   : > { %2051 = vst [vmem:[%s3056_s20 + $0x408] sm:$0xff] %v1491_v9  ;;  %v395_v9 = vld [vmem:[%s3034_s19 + $0x4c8] sm:$0xff]  ;;  %v1514_v14 = vadd.f32 %v954_v7, %v394_v6  ;;  %v974_v3 = vld [vmem:[%s3041_s14 + $0x560] sm:$0xff] }
  0xf4   : > { %2052 = vst [vmem:[%s3056_s20 + $0x410] sm:$0xff] %v1492_v12  ;;  %v396_v12 = vld [vmem:[%s3034_s19 + $0x4d0] sm:$0xff]  ;;  %v1515_v17 = vadd.f32 %v955_v10, %v395_v9  ;;  %v975_v6 = vld [vmem:[%s3041_s14 + $0x568] sm:$0xff] }
  0xf5   : > { %2053 = vst [vmem:[%s3056_s20 + $0x418] sm:$0xff] %v1493_v15  ;;  %v397_v15 = vld [vmem:[%s3034_s19 + $0x4d8] sm:$0xff]  ;;  %v1516_v20 = vadd.f32 %v956_v13, %v396_v12  ;;  %v976_v9 = vld [vmem:[%s3041_s14 + $0x570] sm:$0xff] }
  0xf6   : > { %2054 = vst [vmem:[%s3056_s20 + $0x420] sm:$0xff] %v1494_v18  ;;  %v398_v18 = vld [vmem:[%s3034_s19 + $0x4e0] sm:$0xff]  ;;  %v1517_v23 = vadd.f32 %v957_v16, %v397_v15  ;;  %v977_v12 = vld [vmem:[%s3041_s14 + $0x578] sm:$0xff] }
  0xf7   : > { %2055 = vst [vmem:[%s3056_s20 + $0x428] sm:$0xff] %v1495_v21  ;;  %v399_v21 = vld [vmem:[%s3034_s19 + $0x4e8] sm:$0xff]  ;;  %v1518_v26 = vadd.f32 %v958_v19, %v398_v18  ;;  %v978_v15 = vld [vmem:[%s3041_s14 + $0x580] sm:$0xff] }
  0xf8   : > { %2056 = vst [vmem:[%s3056_s20 + $0x430] sm:$0xff] %v1496_v24  ;;  %v400_v24 = vld [vmem:[%s3034_s19 + $0x4f0] sm:$0xff]  ;;  %v1519_v29 = vadd.f32 %v959_v22, %v399_v21  ;;  %v979_v18 = vld [vmem:[%s3041_s14 + $0x588] sm:$0xff] }
  0xf9   : > { %2057 = vst [vmem:[%s3056_s20 + $0x438] sm:$0xff] %v1497_v27  ;;  %v401_v27 = vld [vmem:[%s3034_s19 + $0x4f8] sm:$0xff]  ;;  %v1520_v32 = vadd.f32 %v960_v25, %v400_v24  ;;  %v980_v21 = vld [vmem:[%s3041_s14 + $0x590] sm:$0xff] }
  0xfa   : > { %2058 = vst [vmem:[%s3056_s20 + $0x440] sm:$0xff] %v1498_v30  ;;  %v402_v30 = vld [vmem:[%s3034_s19 + $0x500] sm:$0xff]  ;;  %v1521_v35 = vadd.f32 %v961_v28, %v401_v27  ;;  %v981_v24 = vld [vmem:[%s3041_s14 + $0x598] sm:$0xff] }
  0xfb   : > { %2059 = vst [vmem:[%s3056_s20 + $0x448] sm:$0xff] %v1499_v33  ;;  %v403_v33 = vld [vmem:[%s3034_s19 + $0x508] sm:$0xff]  ;;  %v1522_v38 = vadd.f32 %v962_v31, %v402_v30  ;;  %v982_v27 = vld [vmem:[%s3041_s14 + $0x5a0] sm:$0xff] }
  0xfc   : > { %2060 = vst [vmem:[%s3056_s20 + $0x450] sm:$0xff] %v1500_v36  ;;  %v404_v36 = vld [vmem:[%s3034_s19 + $0x510] sm:$0xff]  ;;  %v1523_v41 = vadd.f32 %v963_v34, %v403_v33  ;;  %v983_v30 = vld [vmem:[%s3041_s14 + $0x5a8] sm:$0xff] }
  0xfd   : > { %2061 = vst [vmem:[%s3056_s20 + $0x458] sm:$0xff] %v1501_v39  ;;  %v405_v39 = vld [vmem:[%s3034_s19 + $0x518] sm:$0xff]  ;;  %v1524_v44 = vadd.f32 %v964_v37, %v404_v36  ;;  %v984_v33 = vld [vmem:[%s3041_s14 + $0x5b0] sm:$0xff] }
  0xfe   : > { %2062 = vst [vmem:[%s3056_s20 + $0x460] sm:$0xff] %v1502_v42  ;;  %v406_v42 = vld [vmem:[%s3034_s19 + $0x520] sm:$0xff]  ;;  %v1525_v47 = vadd.f32 %v965_v40, %v405_v39  ;;  %v985_v36 = vld [vmem:[%s3041_s14 + $0x5b8] sm:$0xff] }
  0xff   : > { %2063 = vst [vmem:[%s3056_s20 + $0x468] sm:$0xff] %v1503_v45  ;;  %v407_v45 = vld [vmem:[%s3034_s19 + $0x528] sm:$0xff]  ;;  %v1526_v50 = vadd.f32 %v966_v43, %v406_v42  ;;  %v986_v39 = vld [vmem:[%s3041_s14 + $0x5c0] sm:$0xff] }
 0x100   : > { %2064 = vst [vmem:[%s3056_s20 + $0x470] sm:$0xff] %v1504_v48  ;;  %v408_v48 = vld [vmem:[%s3034_s19 + $0x530] sm:$0xff]  ;;  %v1527_v53 = vadd.f32 %v967_v46, %v407_v45  ;;  %v987_v42 = vld [vmem:[%s3041_s14 + $0x5c8] sm:$0xff] }
 0x101   : > { %2065 = vst [vmem:[%s3056_s20 + $0x478] sm:$0xff] %v1505_v51  ;;  %v409_v51 = vld [vmem:[%s3034_s19 + $0x538] sm:$0xff]  ;;  %v1528_v56 = vadd.f32 %v968_v49, %v408_v48  ;;  %v988_v45 = vld [vmem:[%s3041_s14 + $0x5d0] sm:$0xff] }
 0x102   : > { %2066 = vst [vmem:[%s3056_s20 + $0x480] sm:$0xff] %v1506_v54  ;;  %v410_v54 = vld [vmem:[%s3034_s19 + $0x540] sm:$0xff]  ;;  %v1529_v59 = vadd.f32 %v969_v52, %v409_v51  ;;  %v989_v48 = vld [vmem:[%s3041_s14 + $0x5d8] sm:$0xff] }
 0x103   : > { %2067 = vst [vmem:[%s3056_s20 + $0x488] sm:$0xff] %v1507_v57  ;;  %v411_v57 = vld [vmem:[%s3034_s19 + $0x548] sm:$0xff]  ;;  %v1530_v62 = vadd.f32 %v970_v55, %v410_v54  ;;  %v990_v51 = vld [vmem:[%s3041_s14 + $0x5e0] sm:$0xff] }
 0x104   : > { %2068 = vst [vmem:[%s3056_s20 + $0x490] sm:$0xff] %v1508_v60  ;;  %v412_v60 = vld [vmem:[%s3034_s19 + $0x550] sm:$0xff]  ;;  %v1531_v1 = vadd.f32 %v971_v58, %v411_v57  ;;  %v991_v54 = vld [vmem:[%s3041_s14 + $0x5e8] sm:$0xff] }
 0x105   : > { %2069 = vst [vmem:[%s3056_s20 + $0x498] sm:$0xff] %v1509_v63  ;;  %v413_v63 = vld [vmem:[%s3034_s19 + $0x558] sm:$0xff]  ;;  %v1532_v4 = vadd.f32 %v972_v61, %v412_v60  ;;  %v992_v57 = vld [vmem:[%s3041_s14 + $0x5f0] sm:$0xff] }
 0x106   : > { %2070 = vst [vmem:[%s3056_s20 + $0x4a0] sm:$0xff] %v1510_v2  ;;  %v414_v2 = vld [vmem:[%s3034_s19 + $0x560] sm:$0xff]  ;;  %v1533_v7 = vadd.f32 %v973_v0, %v413_v63  ;;  %v993_v60 = vld [vmem:[%s3041_s14 + $0x5f8] sm:$0xff] }
 0x107   : > { %2071 = vst [vmem:[%s3056_s20 + $0x4a8] sm:$0xff] %v1511_v5  ;;  %v415_v5 = vld [vmem:[%s3034_s19 + $0x568] sm:$0xff]  ;;  %v1534_v10 = vadd.f32 %v974_v3, %v414_v2  ;;  %v994_v63 = vld [vmem:[%s3041_s14 + $0x600] sm:$0xff] }
 0x108   : > { %2072 = vst [vmem:[%s3056_s20 + $0x4b0] sm:$0xff] %v1512_v8  ;;  %v416_v8 = vld [vmem:[%s3034_s19 + $0x570] sm:$0xff]  ;;  %v1535_v13 = vadd.f32 %v975_v6, %v415_v5  ;;  %v995_v2 = vld [vmem:[%s3041_s14 + $0x608] sm:$0xff] }
 0x109   : > { %2073 = vst [vmem:[%s3056_s20 + $0x4b8] sm:$0xff] %v1513_v11  ;;  %v417_v11 = vld [vmem:[%s3034_s19 + $0x578] sm:$0xff]  ;;  %v1536_v16 = vadd.f32 %v976_v9, %v416_v8  ;;  %v996_v5 = vld [vmem:[%s3041_s14 + $0x610] sm:$0xff] }
 0x10a   : > { %2074 = vst [vmem:[%s3056_s20 + $0x4c0] sm:$0xff] %v1514_v14  ;;  %v418_v14 = vld [vmem:[%s3034_s19 + $0x580] sm:$0xff]  ;;  %v1537_v19 = vadd.f32 %v977_v12, %v417_v11  ;;  %v997_v8 = vld [vmem:[%s3041_s14 + $0x618] sm:$0xff] }
 0x10b   : > { %2075 = vst [vmem:[%s3056_s20 + $0x4c8] sm:$0xff] %v1515_v17  ;;  %v419_v17 = vld [vmem:[%s3034_s19 + $0x588] sm:$0xff]  ;;  %v1538_v22 = vadd.f32 %v978_v15, %v418_v14  ;;  %v998_v11 = vld [vmem:[%s3041_s14 + $0x620] sm:$0xff] }
 0x10c   : > { %2076 = vst [vmem:[%s3056_s20 + $0x4d0] sm:$0xff] %v1516_v20  ;;  %v420_v20 = vld [vmem:[%s3034_s19 + $0x590] sm:$0xff]  ;;  %v1539_v25 = vadd.f32 %v979_v18, %v419_v17  ;;  %v999_v14 = vld [vmem:[%s3041_s14 + $0x628] sm:$0xff] }
 0x10d   : > { %2077 = vst [vmem:[%s3056_s20 + $0x4d8] sm:$0xff] %v1517_v23  ;;  %v421_v23 = vld [vmem:[%s3034_s19 + $0x598] sm:$0xff]  ;;  %v1540_v28 = vadd.f32 %v980_v21, %v420_v20  ;;  %v1000_v17 = vld [vmem:[%s3041_s14 + $0x630] sm:$0xff] }
 0x10e   : > { %2078 = vst [vmem:[%s3056_s20 + $0x4e0] sm:$0xff] %v1518_v26  ;;  %v422_v26 = vld [vmem:[%s3034_s19 + $0x5a0] sm:$0xff]  ;;  %v1541_v31 = vadd.f32 %v981_v24, %v421_v23  ;;  %v1001_v20 = vld [vmem:[%s3041_s14 + $0x638] sm:$0xff] }
 0x10f   : > { %2079 = vst [vmem:[%s3056_s20 + $0x4e8] sm:$0xff] %v1519_v29  ;;  %v423_v29 = vld [vmem:[%s3034_s19 + $0x5a8] sm:$0xff]  ;;  %v1542_v34 = vadd.f32 %v982_v27, %v422_v26  ;;  %v1002_v23 = vld [vmem:[%s3041_s14 + $0x640] sm:$0xff] }
 0x110   : > { %2080 = vst [vmem:[%s3056_s20 + $0x4f0] sm:$0xff] %v1520_v32  ;;  %v424_v32 = vld [vmem:[%s3034_s19 + $0x5b0] sm:$0xff]  ;;  %v1543_v37 = vadd.f32 %v983_v30, %v423_v29  ;;  %v1003_v26 = vld [vmem:[%s3041_s14 + $0x648] sm:$0xff] }
 0x111   : > { %2081 = vst [vmem:[%s3056_s20 + $0x4f8] sm:$0xff] %v1521_v35  ;;  %v425_v35 = vld [vmem:[%s3034_s19 + $0x5b8] sm:$0xff]  ;;  %v1544_v40 = vadd.f32 %v984_v33, %v424_v32  ;;  %v1004_v29 = vld [vmem:[%s3041_s14 + $0x650] sm:$0xff] }
 0x112   : > { %2082 = vst [vmem:[%s3056_s20 + $0x500] sm:$0xff] %v1522_v38  ;;  %v426_v38 = vld [vmem:[%s3034_s19 + $0x5c0] sm:$0xff]  ;;  %v1545_v43 = vadd.f32 %v985_v36, %v425_v35  ;;  %v1005_v32 = vld [vmem:[%s3041_s14 + $0x658] sm:$0xff] }
 0x113   : > { %2083 = vst [vmem:[%s3056_s20 + $0x508] sm:$0xff] %v1523_v41  ;;  %v427_v41 = vld [vmem:[%s3034_s19 + $0x5c8] sm:$0xff]  ;;  %v1546_v46 = vadd.f32 %v986_v39, %v426_v38  ;;  %v1006_v35 = vld [vmem:[%s3041_s14 + $0x660] sm:$0xff] }
 0x114   : > { %2084 = vst [vmem:[%s3056_s20 + $0x510] sm:$0xff] %v1524_v44  ;;  %v428_v44 = vld [vmem:[%s3034_s19 + $0x5d0] sm:$0xff]  ;;  %v1547_v49 = vadd.f32 %v987_v42, %v427_v41  ;;  %v1007_v38 = vld [vmem:[%s3041_s14 + $0x668] sm:$0xff] }
 0x115   : > { %2085 = vst [vmem:[%s3056_s20 + $0x518] sm:$0xff] %v1525_v47  ;;  %v429_v47 = vld [vmem:[%s3034_s19 + $0x5d8] sm:$0xff]  ;;  %v1548_v52 = vadd.f32 %v988_v45, %v428_v44  ;;  %v1008_v41 = vld [vmem:[%s3041_s14 + $0x670] sm:$0xff] }
 0x116   : > { %2086 = vst [vmem:[%s3056_s20 + $0x520] sm:$0xff] %v1526_v50  ;;  %v430_v50 = vld [vmem:[%s3034_s19 + $0x5e0] sm:$0xff]  ;;  %v1549_v55 = vadd.f32 %v989_v48, %v429_v47  ;;  %v1009_v44 = vld [vmem:[%s3041_s14 + $0x678] sm:$0xff] }
 0x117   : > { %2087 = vst [vmem:[%s3056_s20 + $0x528] sm:$0xff] %v1527_v53  ;;  %v431_v53 = vld [vmem:[%s3034_s19 + $0x5e8] sm:$0xff]  ;;  %v1550_v58 = vadd.f32 %v990_v51, %v430_v50  ;;  %v1010_v47 = vld [vmem:[%s3041_s14 + $0x680] sm:$0xff] }
 0x118   : > { %2088 = vst [vmem:[%s3056_s20 + $0x530] sm:$0xff] %v1528_v56  ;;  %v432_v56 = vld [vmem:[%s3034_s19 + $0x5f0] sm:$0xff]  ;;  %v1551_v61 = vadd.f32 %v991_v54, %v431_v53  ;;  %v1011_v50 = vld [vmem:[%s3041_s14 + $0x688] sm:$0xff] }
 0x119   : > { %2089 = vst [vmem:[%s3056_s20 + $0x538] sm:$0xff] %v1529_v59  ;;  %v433_v59 = vld [vmem:[%s3034_s19 + $0x5f8] sm:$0xff]  ;;  %v1552_v0 = vadd.f32 %v992_v57, %v432_v56  ;;  %v1012_v53 = vld [vmem:[%s3041_s14 + $0x690] sm:$0xff] }
 0x11a   : > { %2090 = vst [vmem:[%s3056_s20 + $0x540] sm:$0xff] %v1530_v62  ;;  %v434_v62 = vld [vmem:[%s3034_s19 + $0x600] sm:$0xff]  ;;  %v1553_v3 = vadd.f32 %v993_v60, %v433_v59  ;;  %v1013_v56 = vld [vmem:[%s3041_s14 + $0x698] sm:$0xff] }
 0x11b   : > { %2091 = vst [vmem:[%s3056_s20 + $0x548] sm:$0xff] %v1531_v1  ;;  %v435_v1 = vld [vmem:[%s3034_s19 + $0x608] sm:$0xff]  ;;  %v1554_v6 = vadd.f32 %v994_v63, %v434_v62  ;;  %v1014_v59 = vld [vmem:[%s3041_s14 + $0x6a0] sm:$0xff] }
 0x11c   : > { %2092 = vst [vmem:[%s3056_s20 + $0x550] sm:$0xff] %v1532_v4  ;;  %v436_v4 = vld [vmem:[%s3034_s19 + $0x610] sm:$0xff]  ;;  %v1555_v9 = vadd.f32 %v995_v2, %v435_v1  ;;  %v1015_v62 = vld [vmem:[%s3041_s14 + $0x6a8] sm:$0xff] }
 0x11d   : > { %2093 = vst [vmem:[%s3056_s20 + $0x558] sm:$0xff] %v1533_v7  ;;  %v437_v7 = vld [vmem:[%s3034_s19 + $0x618] sm:$0xff]  ;;  %v1556_v12 = vadd.f32 %v996_v5, %v436_v4  ;;  %v1016_v1 = vld [vmem:[%s3041_s14 + $0x6b0] sm:$0xff] }
 0x11e   : > { %2094 = vst [vmem:[%s3056_s20 + $0x560] sm:$0xff] %v1534_v10  ;;  %v438_v10 = vld [vmem:[%s3034_s19 + $0x620] sm:$0xff]  ;;  %v1557_v15 = vadd.f32 %v997_v8, %v437_v7  ;;  %v1017_v4 = vld [vmem:[%s3041_s14 + $0x6b8] sm:$0xff] }
 0x11f   : > { %2095 = vst [vmem:[%s3056_s20 + $0x568] sm:$0xff] %v1535_v13  ;;  %v439_v13 = vld [vmem:[%s3034_s19 + $0x628] sm:$0xff]  ;;  %v1558_v18 = vadd.f32 %v998_v11, %v438_v10  ;;  %v1018_v7 = vld [vmem:[%s3041_s14 + $0x6c0] sm:$0xff] }
 0x120   : > { %2096 = vst [vmem:[%s3056_s20 + $0x570] sm:$0xff] %v1536_v16  ;;  %v440_v16 = vld [vmem:[%s3034_s19 + $0x630] sm:$0xff]  ;;  %v1559_v21 = vadd.f32 %v999_v14, %v439_v13  ;;  %v1019_v10 = vld [vmem:[%s3041_s14 + $0x6c8] sm:$0xff] }
 0x121   : > { %2097 = vst [vmem:[%s3056_s20 + $0x578] sm:$0xff] %v1537_v19  ;;  %v441_v19 = vld [vmem:[%s3034_s19 + $0x638] sm:$0xff]  ;;  %v1560_v24 = vadd.f32 %v1000_v17, %v440_v16  ;;  %v1020_v13 = vld [vmem:[%s3041_s14 + $0x6d0] sm:$0xff] }
 0x122   : > { %2098 = vst [vmem:[%s3056_s20 + $0x580] sm:$0xff] %v1538_v22  ;;  %v442_v22 = vld [vmem:[%s3034_s19 + $0x640] sm:$0xff]  ;;  %v1561_v27 = vadd.f32 %v1001_v20, %v441_v19  ;;  %v1021_v16 = vld [vmem:[%s3041_s14 + $0x6d8] sm:$0xff] }
 0x123   : > { %2099 = vst [vmem:[%s3056_s20 + $0x588] sm:$0xff] %v1539_v25  ;;  %v443_v25 = vld [vmem:[%s3034_s19 + $0x648] sm:$0xff]  ;;  %v1562_v30 = vadd.f32 %v1002_v23, %v442_v22  ;;  %v1022_v19 = vld [vmem:[%s3041_s14 + $0x6e0] sm:$0xff] }
 0x124   : > { %2100 = vst [vmem:[%s3056_s20 + $0x590] sm:$0xff] %v1540_v28  ;;  %v444_v28 = vld [vmem:[%s3034_s19 + $0x650] sm:$0xff]  ;;  %v1563_v33 = vadd.f32 %v1003_v26, %v443_v25  ;;  %v1023_v22 = vld [vmem:[%s3041_s14 + $0x6e8] sm:$0xff] }
 0x125   : > { %2101 = vst [vmem:[%s3056_s20 + $0x598] sm:$0xff] %v1541_v31  ;;  %v445_v31 = vld [vmem:[%s3034_s19 + $0x658] sm:$0xff]  ;;  %v1564_v36 = vadd.f32 %v1004_v29, %v444_v28  ;;  %v1024_v25 = vld [vmem:[%s3041_s14 + $0x6f0] sm:$0xff] }
 0x126   : > { %2102 = vst [vmem:[%s3056_s20 + $0x5a0] sm:$0xff] %v1542_v34  ;;  %v446_v34 = vld [vmem:[%s3034_s19 + $0x660] sm:$0xff]  ;;  %v1565_v39 = vadd.f32 %v1005_v32, %v445_v31  ;;  %v1025_v28 = vld [vmem:[%s3041_s14 + $0x6f8] sm:$0xff] }
 0x127   : > { %2103 = vst [vmem:[%s3056_s20 + $0x5a8] sm:$0xff] %v1543_v37  ;;  %v447_v37 = vld [vmem:[%s3034_s19 + $0x668] sm:$0xff]  ;;  %v1566_v42 = vadd.f32 %v1006_v35, %v446_v34  ;;  %v1026_v31 = vld [vmem:[%s3041_s14 + $0x700] sm:$0xff] }
 0x128   : > { %2104 = vst [vmem:[%s3056_s20 + $0x5b0] sm:$0xff] %v1544_v40  ;;  %v448_v40 = vld [vmem:[%s3034_s19 + $0x670] sm:$0xff]  ;;  %v1567_v45 = vadd.f32 %v1007_v38, %v447_v37  ;;  %v1027_v34 = vld [vmem:[%s3041_s14 + $0x708] sm:$0xff] }
 0x129   : > { %2105 = vst [vmem:[%s3056_s20 + $0x5b8] sm:$0xff] %v1545_v43  ;;  %v449_v43 = vld [vmem:[%s3034_s19 + $0x678] sm:$0xff]  ;;  %v1568_v48 = vadd.f32 %v1008_v41, %v448_v40  ;;  %v1028_v37 = vld [vmem:[%s3041_s14 + $0x710] sm:$0xff] }
 0x12a   : > { %2106 = vst [vmem:[%s3056_s20 + $0x5c0] sm:$0xff] %v1546_v46  ;;  %v450_v46 = vld [vmem:[%s3034_s19 + $0x680] sm:$0xff]  ;;  %v1569_v51 = vadd.f32 %v1009_v44, %v449_v43  ;;  %v1029_v40 = vld [vmem:[%s3041_s14 + $0x718] sm:$0xff] }
 0x12b   : > { %2107 = vst [vmem:[%s3056_s20 + $0x5c8] sm:$0xff] %v1547_v49  ;;  %v451_v49 = vld [vmem:[%s3034_s19 + $0x688] sm:$0xff]  ;;  %v1570_v54 = vadd.f32 %v1010_v47, %v450_v46  ;;  %v1030_v43 = vld [vmem:[%s3041_s14 + $0x720] sm:$0xff] }
 0x12c   : > { %2108 = vst [vmem:[%s3056_s20 + $0x5d0] sm:$0xff] %v1548_v52  ;;  %v452_v52 = vld [vmem:[%s3034_s19 + $0x690] sm:$0xff]  ;;  %v1571_v57 = vadd.f32 %v1011_v50, %v451_v49  ;;  %v1031_v46 = vld [vmem:[%s3041_s14 + $0x728] sm:$0xff] }
 0x12d   : > { %2109 = vst [vmem:[%s3056_s20 + $0x5d8] sm:$0xff] %v1549_v55  ;;  %v453_v55 = vld [vmem:[%s3034_s19 + $0x698] sm:$0xff]  ;;  %v1572_v60 = vadd.f32 %v1012_v53, %v452_v52  ;;  %v1032_v49 = vld [vmem:[%s3041_s14 + $0x730] sm:$0xff] }
 0x12e   : > { %2110 = vst [vmem:[%s3056_s20 + $0x5e0] sm:$0xff] %v1550_v58  ;;  %v454_v58 = vld [vmem:[%s3034_s19 + $0x6a0] sm:$0xff]  ;;  %v1573_v63 = vadd.f32 %v1013_v56, %v453_v55  ;;  %v1033_v52 = vld [vmem:[%s3041_s14 + $0x738] sm:$0xff] }
 0x12f   : > { %2111 = vst [vmem:[%s3056_s20 + $0x5e8] sm:$0xff] %v1551_v61  ;;  %v455_v61 = vld [vmem:[%s3034_s19 + $0x6a8] sm:$0xff]  ;;  %v1574_v2 = vadd.f32 %v1014_v59, %v454_v58  ;;  %v1034_v55 = vld [vmem:[%s3041_s14 + $0x740] sm:$0xff] }
 0x130   : > { %2112 = vst [vmem:[%s3056_s20 + $0x5f0] sm:$0xff] %v1552_v0  ;;  %v456_v0 = vld [vmem:[%s3034_s19 + $0x6b0] sm:$0xff]  ;;  %v1575_v5 = vadd.f32 %v1015_v62, %v455_v61  ;;  %v1035_v58 = vld [vmem:[%s3041_s14 + $0x748] sm:$0xff] }
 0x131   : > { %2113 = vst [vmem:[%s3056_s20 + $0x5f8] sm:$0xff] %v1553_v3  ;;  %v457_v3 = vld [vmem:[%s3034_s19 + $0x6b8] sm:$0xff]  ;;  %v1576_v8 = vadd.f32 %v1016_v1, %v456_v0  ;;  %v1036_v61 = vld [vmem:[%s3041_s14 + $0x750] sm:$0xff] }
 0x132   : > { %2114 = vst [vmem:[%s3056_s20 + $0x600] sm:$0xff] %v1554_v6  ;;  %v458_v6 = vld [vmem:[%s3034_s19 + $0x6c0] sm:$0xff]  ;;  %v1577_v11 = vadd.f32 %v1017_v4, %v457_v3  ;;  %v1037_v0 = vld [vmem:[%s3041_s14 + $0x758] sm:$0xff] }
 0x133   : > { %2115 = vst [vmem:[%s3056_s20 + $0x608] sm:$0xff] %v1555_v9  ;;  %v459_v9 = vld [vmem:[%s3034_s19 + $0x6c8] sm:$0xff]  ;;  %v1578_v14 = vadd.f32 %v1018_v7, %v458_v6  ;;  %v1038_v3 = vld [vmem:[%s3041_s14 + $0x760] sm:$0xff] }
 0x134   : > { %2116 = vst [vmem:[%s3056_s20 + $0x610] sm:$0xff] %v1556_v12  ;;  %v460_v12 = vld [vmem:[%s3034_s19 + $0x6d0] sm:$0xff]  ;;  %v1579_v17 = vadd.f32 %v1019_v10, %v459_v9  ;;  %v1039_v6 = vld [vmem:[%s3041_s14 + $0x768] sm:$0xff] }
 0x135   : > { %2117 = vst [vmem:[%s3056_s20 + $0x618] sm:$0xff] %v1557_v15  ;;  %v461_v15 = vld [vmem:[%s3034_s19 + $0x6d8] sm:$0xff]  ;;  %v1580_v20 = vadd.f32 %v1020_v13, %v460_v12  ;;  %v1040_v9 = vld [vmem:[%s3041_s14 + $0x770] sm:$0xff] }
 0x136   : > { %2118 = vst [vmem:[%s3056_s20 + $0x620] sm:$0xff] %v1558_v18  ;;  %v462_v18 = vld [vmem:[%s3034_s19 + $0x6e0] sm:$0xff]  ;;  %v1581_v23 = vadd.f32 %v1021_v16, %v461_v15  ;;  %v1041_v12 = vld [vmem:[%s3041_s14 + $0x778] sm:$0xff] }
 0x137   : > { %2119 = vst [vmem:[%s3056_s20 + $0x628] sm:$0xff] %v1559_v21  ;;  %v463_v21 = vld [vmem:[%s3034_s19 + $0x6e8] sm:$0xff]  ;;  %v1582_v26 = vadd.f32 %v1022_v19, %v462_v18  ;;  %v1042_v15 = vld [vmem:[%s3041_s14 + $0x780] sm:$0xff] }
 0x138   : > { %2120 = vst [vmem:[%s3056_s20 + $0x630] sm:$0xff] %v1560_v24  ;;  %v464_v24 = vld [vmem:[%s3034_s19 + $0x6f0] sm:$0xff]  ;;  %v1583_v29 = vadd.f32 %v1023_v22, %v463_v21  ;;  %v1043_v18 = vld [vmem:[%s3041_s14 + $0x788] sm:$0xff] }
 0x139   : > { %2121 = vst [vmem:[%s3056_s20 + $0x638] sm:$0xff] %v1561_v27  ;;  %v465_v27 = vld [vmem:[%s3034_s19 + $0x6f8] sm:$0xff]  ;;  %v1584_v32 = vadd.f32 %v1024_v25, %v464_v24  ;;  %v1044_v21 = vld [vmem:[%s3041_s14 + $0x790] sm:$0xff] }
 0x13a   : > { %2122 = vst [vmem:[%s3056_s20 + $0x640] sm:$0xff] %v1562_v30  ;;  %v466_v30 = vld [vmem:[%s3034_s19 + $0x700] sm:$0xff]  ;;  %v1585_v35 = vadd.f32 %v1025_v28, %v465_v27  ;;  %v1045_v24 = vld [vmem:[%s3041_s14 + $0x798] sm:$0xff] }
 0x13b   : > { %2123 = vst [vmem:[%s3056_s20 + $0x648] sm:$0xff] %v1563_v33  ;;  %v467_v33 = vld [vmem:[%s3034_s19 + $0x708] sm:$0xff]  ;;  %v1586_v38 = vadd.f32 %v1026_v31, %v466_v30  ;;  %v1046_v27 = vld [vmem:[%s3041_s14 + $0x7a0] sm:$0xff] }
 0x13c   : > { %2124 = vst [vmem:[%s3056_s20 + $0x650] sm:$0xff] %v1564_v36  ;;  %v468_v36 = vld [vmem:[%s3034_s19 + $0x710] sm:$0xff]  ;;  %v1587_v41 = vadd.f32 %v1027_v34, %v467_v33  ;;  %v1047_v30 = vld [vmem:[%s3041_s14 + $0x7a8] sm:$0xff] }
 0x13d   : > { %2125 = vst [vmem:[%s3056_s20 + $0x658] sm:$0xff] %v1565_v39  ;;  %v469_v39 = vld [vmem:[%s3034_s19 + $0x718] sm:$0xff]  ;;  %v1588_v44 = vadd.f32 %v1028_v37, %v468_v36  ;;  %v1048_v33 = vld [vmem:[%s3041_s14 + $0x7b0] sm:$0xff] }
 0x13e   : > { %2126 = vst [vmem:[%s3056_s20 + $0x660] sm:$0xff] %v1566_v42  ;;  %v470_v42 = vld [vmem:[%s3034_s19 + $0x720] sm:$0xff]  ;;  %v1589_v47 = vadd.f32 %v1029_v40, %v469_v39  ;;  %v1049_v36 = vld [vmem:[%s3041_s14 + $0x7b8] sm:$0xff] }
 0x13f   : > { %2127 = vst [vmem:[%s3056_s20 + $0x668] sm:$0xff] %v1567_v45  ;;  %v471_v45 = vld [vmem:[%s3034_s19 + $0x728] sm:$0xff]  ;;  %v1590_v50 = vadd.f32 %v1030_v43, %v470_v42  ;;  %v1050_v39 = vld [vmem:[%s3041_s14 + $0x7c0] sm:$0xff] }
 0x140   : > { %2128 = vst [vmem:[%s3056_s20 + $0x670] sm:$0xff] %v1568_v48  ;;  %v472_v48 = vld [vmem:[%s3034_s19 + $0x730] sm:$0xff]  ;;  %v1591_v53 = vadd.f32 %v1031_v46, %v471_v45  ;;  %v1051_v42 = vld [vmem:[%s3041_s14 + $0x7c8] sm:$0xff] }
 0x141   : > { %2129 = vst [vmem:[%s3056_s20 + $0x678] sm:$0xff] %v1569_v51  ;;  %v473_v51 = vld [vmem:[%s3034_s19 + $0x738] sm:$0xff]  ;;  %v1592_v56 = vadd.f32 %v1032_v49, %v472_v48  ;;  %v1052_v45 = vld [vmem:[%s3041_s14 + $0x7d0] sm:$0xff] }
 0x142   : > { %2130 = vst [vmem:[%s3056_s20 + $0x680] sm:$0xff] %v1570_v54  ;;  %v474_v54 = vld [vmem:[%s3034_s19 + $0x740] sm:$0xff]  ;;  %v1593_v59 = vadd.f32 %v1033_v52, %v473_v51  ;;  %v1053_v48 = vld [vmem:[%s3041_s14 + $0x7d8] sm:$0xff] }
 0x143   : > { %2131 = vst [vmem:[%s3056_s20 + $0x688] sm:$0xff] %v1571_v57  ;;  %v475_v57 = vld [vmem:[%s3034_s19 + $0x748] sm:$0xff]  ;;  %v1594_v62 = vadd.f32 %v1034_v55, %v474_v54  ;;  %v1054_v51 = vld [vmem:[%s3041_s14 + $0x7e0] sm:$0xff] }
 0x144   : > { %2132 = vst [vmem:[%s3056_s20 + $0x690] sm:$0xff] %v1572_v60  ;;  %v476_v60 = vld [vmem:[%s3034_s19 + $0x750] sm:$0xff]  ;;  %v1595_v1 = vadd.f32 %v1035_v58, %v475_v57  ;;  %v1055_v54 = vld [vmem:[%s3041_s14 + $0x7e8] sm:$0xff] }
 0x145   : > { %2133 = vst [vmem:[%s3056_s20 + $0x698] sm:$0xff] %v1573_v63  ;;  %v477_v63 = vld [vmem:[%s3034_s19 + $0x758] sm:$0xff]  ;;  %v1596_v4 = vadd.f32 %v1036_v61, %v476_v60  ;;  %v1056_v57 = vld [vmem:[%s3041_s14 + $0x7f0] sm:$0xff] }
 0x146   : > { %2134 = vst [vmem:[%s3056_s20 + $0x6a0] sm:$0xff] %v1574_v2  ;;  %v478_v2 = vld [vmem:[%s3034_s19 + $0x760] sm:$0xff]  ;;  %v1597_v7 = vadd.f32 %v1037_v0, %v477_v63  ;;  %v1057_v60 = vld [vmem:[%s3041_s14 + $0x7f8] sm:$0xff] }
 0x147   : > { %2135 = vst [vmem:[%s3056_s20 + $0x6a8] sm:$0xff] %v1575_v5  ;;  %v479_v5 = vld [vmem:[%s3034_s19 + $0x768] sm:$0xff]  ;;  %v1598_v10 = vadd.f32 %v1038_v3, %v478_v2  ;;  %v1058_v63 = vld [vmem:[%s3041_s14 + $0x800] sm:$0xff] }
 0x148   : > { %2136 = vst [vmem:[%s3056_s20 + $0x6b0] sm:$0xff] %v1576_v8  ;;  %v480_v8 = vld [vmem:[%s3034_s19 + $0x770] sm:$0xff]  ;;  %v1599_v13 = vadd.f32 %v1039_v6, %v479_v5  ;;  %v1059_v2 = vld [vmem:[%s3041_s14 + $0x808] sm:$0xff] }
 0x149   : > { %2137 = vst [vmem:[%s3056_s20 + $0x6b8] sm:$0xff] %v1577_v11  ;;  %v481_v11 = vld [vmem:[%s3034_s19 + $0x778] sm:$0xff]  ;;  %v1600_v16 = vadd.f32 %v1040_v9, %v480_v8  ;;  %v1060_v5 = vld [vmem:[%s3041_s14 + $0x810] sm:$0xff] }
 0x14a   : > { %2138 = vst [vmem:[%s3056_s20 + $0x6c0] sm:$0xff] %v1578_v14  ;;  %v482_v14 = vld [vmem:[%s3034_s19 + $0x780] sm:$0xff]  ;;  %v1601_v19 = vadd.f32 %v1041_v12, %v481_v11  ;;  %v1061_v8 = vld [vmem:[%s3041_s14 + $0x818] sm:$0xff] }
 0x14b   : > { %2139 = vst [vmem:[%s3056_s20 + $0x6c8] sm:$0xff] %v1579_v17  ;;  %v483_v17 = vld [vmem:[%s3034_s19 + $0x788] sm:$0xff]  ;;  %v1602_v22 = vadd.f32 %v1042_v15, %v482_v14  ;;  %v1062_v11 = vld [vmem:[%s3041_s14 + $0x820] sm:$0xff] }
 0x14c   : > { %2140 = vst [vmem:[%s3056_s20 + $0x6d0] sm:$0xff] %v1580_v20  ;;  %v484_v20 = vld [vmem:[%s3034_s19 + $0x790] sm:$0xff]  ;;  %v1603_v25 = vadd.f32 %v1043_v18, %v483_v17  ;;  %v1063_v14 = vld [vmem:[%s3041_s14 + $0x828] sm:$0xff] }
 0x14d   : > { %2141 = vst [vmem:[%s3056_s20 + $0x6d8] sm:$0xff] %v1581_v23  ;;  %v485_v23 = vld [vmem:[%s3034_s19 + $0x798] sm:$0xff]  ;;  %v1604_v28 = vadd.f32 %v1044_v21, %v484_v20  ;;  %v1064_v17 = vld [vmem:[%s3041_s14 + $0x830] sm:$0xff] }
 0x14e   : > { %2142 = vst [vmem:[%s3056_s20 + $0x6e0] sm:$0xff] %v1582_v26  ;;  %v486_v26 = vld [vmem:[%s3034_s19 + $0x7a0] sm:$0xff]  ;;  %v1605_v31 = vadd.f32 %v1045_v24, %v485_v23  ;;  %v1065_v20 = vld [vmem:[%s3041_s14 + $0x838] sm:$0xff] }
 0x14f   : > { %2143 = vst [vmem:[%s3056_s20 + $0x6e8] sm:$0xff] %v1583_v29  ;;  %v487_v29 = vld [vmem:[%s3034_s19 + $0x7a8] sm:$0xff]  ;;  %v1606_v34 = vadd.f32 %v1046_v27, %v486_v26  ;;  %v1066_v23 = vld [vmem:[%s3041_s14 + $0x840] sm:$0xff] }
 0x150   : > { %2144 = vst [vmem:[%s3056_s20 + $0x6f0] sm:$0xff] %v1584_v32  ;;  %v488_v32 = vld [vmem:[%s3034_s19 + $0x7b0] sm:$0xff]  ;;  %v1607_v37 = vadd.f32 %v1047_v30, %v487_v29  ;;  %v1067_v26 = vld [vmem:[%s3041_s14 + $0x848] sm:$0xff] }
 0x151   : > { %2145 = vst [vmem:[%s3056_s20 + $0x6f8] sm:$0xff] %v1585_v35  ;;  %v489_v35 = vld [vmem:[%s3034_s19 + $0x7b8] sm:$0xff]  ;;  %v1608_v40 = vadd.f32 %v1048_v33, %v488_v32  ;;  %v1068_v29 = vld [vmem:[%s3041_s14 + $0x850] sm:$0xff] }
 0x152   : > { %2146 = vst [vmem:[%s3056_s20 + $0x700] sm:$0xff] %v1586_v38  ;;  %v490_v38 = vld [vmem:[%s3034_s19 + $0x7c0] sm:$0xff]  ;;  %v1609_v43 = vadd.f32 %v1049_v36, %v489_v35  ;;  %v1069_v32 = vld [vmem:[%s3041_s14 + $0x858] sm:$0xff] }
 0x153   : > { %2147 = vst [vmem:[%s3056_s20 + $0x708] sm:$0xff] %v1587_v41  ;;  %v491_v41 = vld [vmem:[%s3034_s19 + $0x7c8] sm:$0xff]  ;;  %v1610_v46 = vadd.f32 %v1050_v39, %v490_v38  ;;  %v1070_v35 = vld [vmem:[%s3041_s14 + $0x860] sm:$0xff] }
 0x154   : > { %2148 = vst [vmem:[%s3056_s20 + $0x710] sm:$0xff] %v1588_v44  ;;  %v492_v44 = vld [vmem:[%s3034_s19 + $0x7d0] sm:$0xff]  ;;  %v1611_v49 = vadd.f32 %v1051_v42, %v491_v41  ;;  %v1071_v38 = vld [vmem:[%s3041_s14 + $0x868] sm:$0xff] }
 0x155   : > { %2149 = vst [vmem:[%s3056_s20 + $0x718] sm:$0xff] %v1589_v47  ;;  %v493_v47 = vld [vmem:[%s3034_s19 + $0x7d8] sm:$0xff]  ;;  %v1612_v52 = vadd.f32 %v1052_v45, %v492_v44  ;;  %v1072_v41 = vld [vmem:[%s3041_s14 + $0x870] sm:$0xff] }
 0x156   : > { %2150 = vst [vmem:[%s3056_s20 + $0x720] sm:$0xff] %v1590_v50  ;;  %v494_v50 = vld [vmem:[%s3034_s19 + $0x7e0] sm:$0xff]  ;;  %v1613_v55 = vadd.f32 %v1053_v48, %v493_v47  ;;  %v1073_v44 = vld [vmem:[%s3041_s14 + $0x878] sm:$0xff] }
 0x157   : > { %2151 = vst [vmem:[%s3056_s20 + $0x728] sm:$0xff] %v1591_v53  ;;  %v495_v53 = vld [vmem:[%s3034_s19 + $0x7e8] sm:$0xff]  ;;  %v1614_v58 = vadd.f32 %v1054_v51, %v494_v50  ;;  %v1074_v47 = vld [vmem:[%s3041_s14 + $0x880] sm:$0xff] }
 0x158   : > { %2152 = vst [vmem:[%s3056_s20 + $0x730] sm:$0xff] %v1592_v56  ;;  %v496_v56 = vld [vmem:[%s3034_s19 + $0x7f0] sm:$0xff]  ;;  %v1615_v61 = vadd.f32 %v1055_v54, %v495_v53  ;;  %v1075_v50 = vld [vmem:[%s3041_s14 + $0x888] sm:$0xff] }
 0x159   : > { %2153 = vst [vmem:[%s3056_s20 + $0x738] sm:$0xff] %v1593_v59  ;;  %v497_v59 = vld [vmem:[%s3034_s19 + $0x7f8] sm:$0xff]  ;;  %v1616_v0 = vadd.f32 %v1056_v57, %v496_v56  ;;  %v1076_v53 = vld [vmem:[%s3041_s14 + $0x890] sm:$0xff] }
 0x15a   : > { %2154 = vst [vmem:[%s3056_s20 + $0x740] sm:$0xff] %v1594_v62  ;;  %v498_v62 = vld [vmem:[%s3034_s19 + $0x800] sm:$0xff]  ;;  %v1617_v3 = vadd.f32 %v1057_v60, %v497_v59  ;;  %v1077_v56 = vld [vmem:[%s3041_s14 + $0x898] sm:$0xff] }
 0x15b   : > { %2155 = vst [vmem:[%s3056_s20 + $0x748] sm:$0xff] %v1595_v1  ;;  %v499_v1 = vld [vmem:[%s3034_s19 + $0x808] sm:$0xff]  ;;  %v1618_v6 = vadd.f32 %v1058_v63, %v498_v62  ;;  %v1078_v59 = vld [vmem:[%s3041_s14 + $0x8a0] sm:$0xff] }
 0x15c   : > { %2156 = vst [vmem:[%s3056_s20 + $0x750] sm:$0xff] %v1596_v4  ;;  %v500_v4 = vld [vmem:[%s3034_s19 + $0x810] sm:$0xff]  ;;  %v1619_v9 = vadd.f32 %v1059_v2, %v499_v1  ;;  %v1079_v62 = vld [vmem:[%s3041_s14 + $0x8a8] sm:$0xff] }
 0x15d   : > { %2157 = vst [vmem:[%s3056_s20 + $0x758] sm:$0xff] %v1597_v7  ;;  %v501_v7 = vld [vmem:[%s3034_s19 + $0x818] sm:$0xff]  ;;  %v1620_v12 = vadd.f32 %v1060_v5, %v500_v4  ;;  %v1080_v1 = vld [vmem:[%s3041_s14 + $0x8b0] sm:$0xff] }
 0x15e   : > { %2158 = vst [vmem:[%s3056_s20 + $0x760] sm:$0xff] %v1598_v10  ;;  %v502_v10 = vld [vmem:[%s3034_s19 + $0x820] sm:$0xff]  ;;  %v1621_v15 = vadd.f32 %v1061_v8, %v501_v7  ;;  %v1081_v4 = vld [vmem:[%s3041_s14 + $0x8b8] sm:$0xff] }
 0x15f   : > { %2159 = vst [vmem:[%s3056_s20 + $0x768] sm:$0xff] %v1599_v13  ;;  %v503_v13 = vld [vmem:[%s3034_s19 + $0x828] sm:$0xff]  ;;  %v1622_v18 = vadd.f32 %v1062_v11, %v502_v10  ;;  %v1082_v7 = vld [vmem:[%s3041_s14 + $0x8c0] sm:$0xff] }
 0x160   : > { %2160 = vst [vmem:[%s3056_s20 + $0x770] sm:$0xff] %v1600_v16  ;;  %v504_v16 = vld [vmem:[%s3034_s19 + $0x830] sm:$0xff]  ;;  %v1623_v21 = vadd.f32 %v1063_v14, %v503_v13  ;;  %v1083_v10 = vld [vmem:[%s3041_s14 + $0x8c8] sm:$0xff] }
 0x161   : > { %2161 = vst [vmem:[%s3056_s20 + $0x778] sm:$0xff] %v1601_v19  ;;  %v505_v19 = vld [vmem:[%s3034_s19 + $0x838] sm:$0xff]  ;;  %v1624_v24 = vadd.f32 %v1064_v17, %v504_v16  ;;  %v1084_v13 = vld [vmem:[%s3041_s14 + $0x8d0] sm:$0xff] }
 0x162   : > { %2162 = vst [vmem:[%s3056_s20 + $0x780] sm:$0xff] %v1602_v22  ;;  %v506_v22 = vld [vmem:[%s3034_s19 + $0x840] sm:$0xff]  ;;  %v1625_v27 = vadd.f32 %v1065_v20, %v505_v19  ;;  %v1085_v16 = vld [vmem:[%s3041_s14 + $0x8d8] sm:$0xff] }
 0x163   : > { %2163 = vst [vmem:[%s3056_s20 + $0x788] sm:$0xff] %v1603_v25  ;;  %v507_v25 = vld [vmem:[%s3034_s19 + $0x848] sm:$0xff]  ;;  %v1626_v30 = vadd.f32 %v1066_v23, %v506_v22  ;;  %v1086_v19 = vld [vmem:[%s3041_s14 + $0x8e0] sm:$0xff] }
 0x164   : > { %2164 = vst [vmem:[%s3056_s20 + $0x790] sm:$0xff] %v1604_v28  ;;  %v508_v28 = vld [vmem:[%s3034_s19 + $0x850] sm:$0xff]  ;;  %v1627_v33 = vadd.f32 %v1067_v26, %v507_v25  ;;  %v1087_v22 = vld [vmem:[%s3041_s14 + $0x8e8] sm:$0xff] }
 0x165   : > { %2165 = vst [vmem:[%s3056_s20 + $0x798] sm:$0xff] %v1605_v31  ;;  %v509_v31 = vld [vmem:[%s3034_s19 + $0x858] sm:$0xff]  ;;  %v1628_v36 = vadd.f32 %v1068_v29, %v508_v28  ;;  %v1088_v25 = vld [vmem:[%s3041_s14 + $0x8f0] sm:$0xff] }
 0x166   : > { %2166 = vst [vmem:[%s3056_s20 + $0x7a0] sm:$0xff] %v1606_v34  ;;  %v510_v34 = vld [vmem:[%s3034_s19 + $0x860] sm:$0xff]  ;;  %v1629_v39 = vadd.f32 %v1069_v32, %v509_v31  ;;  %v1089_v28 = vld [vmem:[%s3041_s14 + $0x8f8] sm:$0xff] }
 0x167   : > { %2167 = vst [vmem:[%s3056_s20 + $0x7a8] sm:$0xff] %v1607_v37  ;;  %v511_v37 = vld [vmem:[%s3034_s19 + $0x868] sm:$0xff]  ;;  %v1630_v42 = vadd.f32 %v1070_v35, %v510_v34  ;;  %v1090_v31 = vld [vmem:[%s3041_s14 + $0x900] sm:$0xff] }
 0x168   : > { %2168 = vst [vmem:[%s3056_s20 + $0x7b0] sm:$0xff] %v1608_v40  ;;  %v512_v40 = vld [vmem:[%s3034_s19 + $0x870] sm:$0xff]  ;;  %v1631_v45 = vadd.f32 %v1071_v38, %v511_v37  ;;  %v1091_v34 = vld [vmem:[%s3041_s14 + $0x908] sm:$0xff] }
 0x169   : > { %2169 = vst [vmem:[%s3056_s20 + $0x7b8] sm:$0xff] %v1609_v43  ;;  %v513_v43 = vld [vmem:[%s3034_s19 + $0x878] sm:$0xff]  ;;  %v1632_v48 = vadd.f32 %v1072_v41, %v512_v40  ;;  %v1092_v37 = vld [vmem:[%s3041_s14 + $0x910] sm:$0xff] }
 0x16a   : > { %2170 = vst [vmem:[%s3056_s20 + $0x7c0] sm:$0xff] %v1610_v46  ;;  %v514_v46 = vld [vmem:[%s3034_s19 + $0x880] sm:$0xff]  ;;  %v1633_v51 = vadd.f32 %v1073_v44, %v513_v43  ;;  %v1093_v40 = vld [vmem:[%s3041_s14 + $0x918] sm:$0xff] }
 0x16b   : > { %2171 = vst [vmem:[%s3056_s20 + $0x7c8] sm:$0xff] %v1611_v49  ;;  %v515_v49 = vld [vmem:[%s3034_s19 + $0x888] sm:$0xff]  ;;  %v1634_v54 = vadd.f32 %v1074_v47, %v514_v46  ;;  %v1094_v43 = vld [vmem:[%s3041_s14 + $0x920] sm:$0xff] }
 0x16c   : > { %2172 = vst [vmem:[%s3056_s20 + $0x7d0] sm:$0xff] %v1612_v52  ;;  %v516_v52 = vld [vmem:[%s3034_s19 + $0x890] sm:$0xff]  ;;  %v1635_v57 = vadd.f32 %v1075_v50, %v515_v49  ;;  %v1095_v46 = vld [vmem:[%s3041_s14 + $0x928] sm:$0xff] }
 0x16d   : > { %2173 = vst [vmem:[%s3056_s20 + $0x7d8] sm:$0xff] %v1613_v55  ;;  %v517_v55 = vld [vmem:[%s3034_s19 + $0x898] sm:$0xff]  ;;  %v1636_v60 = vadd.f32 %v1076_v53, %v516_v52  ;;  %v1096_v49 = vld [vmem:[%s3041_s14 + $0x930] sm:$0xff] }
 0x16e   : > { %2174 = vst [vmem:[%s3056_s20 + $0x7e0] sm:$0xff] %v1614_v58  ;;  %v518_v58 = vld [vmem:[%s3034_s19 + $0x8a0] sm:$0xff]  ;;  %v1637_v63 = vadd.f32 %v1077_v56, %v517_v55  ;;  %v1097_v52 = vld [vmem:[%s3041_s14 + $0x938] sm:$0xff] }
 0x16f   : > { %2175 = vst [vmem:[%s3056_s20 + $0x7e8] sm:$0xff] %v1615_v61  ;;  %v519_v61 = vld [vmem:[%s3034_s19 + $0x8a8] sm:$0xff]  ;;  %v1638_v2 = vadd.f32 %v1078_v59, %v518_v58  ;;  %v1098_v55 = vld [vmem:[%s3041_s14 + $0x940] sm:$0xff] }
 0x170   : > { %2176 = vst [vmem:[%s3056_s20 + $0x7f0] sm:$0xff] %v1616_v0  ;;  %v520_v0 = vld [vmem:[%s3034_s19 + $0x8b0] sm:$0xff]  ;;  %v1639_v5 = vadd.f32 %v1079_v62, %v519_v61  ;;  %v1099_v58 = vld [vmem:[%s3041_s14 + $0x948] sm:$0xff] }
 0x171   : > { %2177 = vst [vmem:[%s3056_s20 + $0x7f8] sm:$0xff] %v1617_v3  ;;  %v521_v3 = vld [vmem:[%s3034_s19 + $0x8b8] sm:$0xff]  ;;  %v1640_v8 = vadd.f32 %v1080_v1, %v520_v0  ;;  %v1100_v61 = vld [vmem:[%s3041_s14 + $0x950] sm:$0xff] }
 0x172   : > { %2178 = vst [vmem:[%s3056_s20 + $0x800] sm:$0xff] %v1618_v6  ;;  %v522_v6 = vld [vmem:[%s3034_s19 + $0x8c0] sm:$0xff]  ;;  %v1641_v11 = vadd.f32 %v1081_v4, %v521_v3  ;;  %v1101_v0 = vld [vmem:[%s3041_s14 + $0x958] sm:$0xff] }
 0x173   : > { %2179 = vst [vmem:[%s3056_s20 + $0x808] sm:$0xff] %v1619_v9  ;;  %v523_v9 = vld [vmem:[%s3034_s19 + $0x8c8] sm:$0xff]  ;;  %v1642_v14 = vadd.f32 %v1082_v7, %v522_v6  ;;  %v1102_v3 = vld [vmem:[%s3041_s14 + $0x960] sm:$0xff] }
 0x174   : > { %2180 = vst [vmem:[%s3056_s20 + $0x810] sm:$0xff] %v1620_v12  ;;  %v524_v12 = vld [vmem:[%s3034_s19 + $0x8d0] sm:$0xff]  ;;  %v1643_v17 = vadd.f32 %v1083_v10, %v523_v9  ;;  %v1103_v6 = vld [vmem:[%s3041_s14 + $0x968] sm:$0xff] }
 0x175   : > { %2181 = vst [vmem:[%s3056_s20 + $0x818] sm:$0xff] %v1621_v15  ;;  %v525_v15 = vld [vmem:[%s3034_s19 + $0x8d8] sm:$0xff]  ;;  %v1644_v20 = vadd.f32 %v1084_v13, %v524_v12  ;;  %v1104_v9 = vld [vmem:[%s3041_s14 + $0x970] sm:$0xff] }
 0x176   : > { %2182 = vst [vmem:[%s3056_s20 + $0x820] sm:$0xff] %v1622_v18  ;;  %v526_v18 = vld [vmem:[%s3034_s19 + $0x8e0] sm:$0xff]  ;;  %v1645_v23 = vadd.f32 %v1085_v16, %v525_v15  ;;  %v1105_v12 = vld [vmem:[%s3041_s14 + $0x978] sm:$0xff] }
 0x177   : > { %2183 = vst [vmem:[%s3056_s20 + $0x828] sm:$0xff] %v1623_v21  ;;  %v527_v21 = vld [vmem:[%s3034_s19 + $0x8e8] sm:$0xff]  ;;  %v1646_v26 = vadd.f32 %v1086_v19, %v526_v18  ;;  %v1106_v15 = vld [vmem:[%s3041_s14 + $0x980] sm:$0xff] }
 0x178   : > { %2184 = vst [vmem:[%s3056_s20 + $0x830] sm:$0xff] %v1624_v24  ;;  %v528_v24 = vld [vmem:[%s3034_s19 + $0x8f0] sm:$0xff]  ;;  %v1647_v29 = vadd.f32 %v1087_v22, %v527_v21  ;;  %v1107_v18 = vld [vmem:[%s3041_s14 + $0x988] sm:$0xff] }
 0x179   : > { %2185 = vst [vmem:[%s3056_s20 + $0x838] sm:$0xff] %v1625_v27  ;;  %v529_v27 = vld [vmem:[%s3034_s19 + $0x8f8] sm:$0xff]  ;;  %v1648_v32 = vadd.f32 %v1088_v25, %v528_v24  ;;  %v1108_v21 = vld [vmem:[%s3041_s14 + $0x990] sm:$0xff] }
 0x17a   : > { %2186 = vst [vmem:[%s3056_s20 + $0x840] sm:$0xff] %v1626_v30  ;;  %v530_v30 = vld [vmem:[%s3034_s19 + $0x900] sm:$0xff]  ;;  %v1649_v35 = vadd.f32 %v1089_v28, %v529_v27  ;;  %v1109_v24 = vld [vmem:[%s3041_s14 + $0x998] sm:$0xff] }
 0x17b   : > { %2187 = vst [vmem:[%s3056_s20 + $0x848] sm:$0xff] %v1627_v33  ;;  %v531_v33 = vld [vmem:[%s3034_s19 + $0x908] sm:$0xff]  ;;  %v1650_v38 = vadd.f32 %v1090_v31, %v530_v30  ;;  %v1110_v27 = vld [vmem:[%s3041_s14 + $0x9a0] sm:$0xff] }
 0x17c   : > { %2188 = vst [vmem:[%s3056_s20 + $0x850] sm:$0xff] %v1628_v36  ;;  %v532_v36 = vld [vmem:[%s3034_s19 + $0x910] sm:$0xff]  ;;  %v1651_v41 = vadd.f32 %v1091_v34, %v531_v33  ;;  %v1111_v30 = vld [vmem:[%s3041_s14 + $0x9a8] sm:$0xff] }
 0x17d   : > { %2189 = vst [vmem:[%s3056_s20 + $0x858] sm:$0xff] %v1629_v39  ;;  %v533_v39 = vld [vmem:[%s3034_s19 + $0x918] sm:$0xff]  ;;  %v1652_v44 = vadd.f32 %v1092_v37, %v532_v36  ;;  %v1112_v33 = vld [vmem:[%s3041_s14 + $0x9b0] sm:$0xff] }
 0x17e   : > { %2190 = vst [vmem:[%s3056_s20 + $0x860] sm:$0xff] %v1630_v42  ;;  %v534_v42 = vld [vmem:[%s3034_s19 + $0x920] sm:$0xff]  ;;  %v1653_v47 = vadd.f32 %v1093_v40, %v533_v39  ;;  %v1113_v36 = vld [vmem:[%s3041_s14 + $0x9b8] sm:$0xff] }
 0x17f   : > { %2191 = vst [vmem:[%s3056_s20 + $0x868] sm:$0xff] %v1631_v45  ;;  %v535_v45 = vld [vmem:[%s3034_s19 + $0x928] sm:$0xff]  ;;  %v1654_v50 = vadd.f32 %v1094_v43, %v534_v42  ;;  %v1114_v39 = vld [vmem:[%s3041_s14 + $0x9c0] sm:$0xff] }
 0x180   : > { %2192 = vst [vmem:[%s3056_s20 + $0x870] sm:$0xff] %v1632_v48  ;;  %v536_v48 = vld [vmem:[%s3034_s19 + $0x930] sm:$0xff]  ;;  %v1655_v53 = vadd.f32 %v1095_v46, %v535_v45  ;;  %v1115_v42 = vld [vmem:[%s3041_s14 + $0x9c8] sm:$0xff] }
 0x181   : > { %2193 = vst [vmem:[%s3056_s20 + $0x878] sm:$0xff] %v1633_v51  ;;  %v537_v51 = vld [vmem:[%s3034_s19 + $0x938] sm:$0xff]  ;;  %v1656_v56 = vadd.f32 %v1096_v49, %v536_v48  ;;  %v1116_v45 = vld [vmem:[%s3041_s14 + $0x9d0] sm:$0xff] }
 0x182   : > { %2194 = vst [vmem:[%s3056_s20 + $0x880] sm:$0xff] %v1634_v54  ;;  %v538_v54 = vld [vmem:[%s3034_s19 + $0x940] sm:$0xff]  ;;  %v1657_v59 = vadd.f32 %v1097_v52, %v537_v51  ;;  %v1117_v48 = vld [vmem:[%s3041_s14 + $0x9d8] sm:$0xff] }
 0x183   : > { %2195 = vst [vmem:[%s3056_s20 + $0x888] sm:$0xff] %v1635_v57  ;;  %v539_v57 = vld [vmem:[%s3034_s19 + $0x948] sm:$0xff]  ;;  %v1658_v62 = vadd.f32 %v1098_v55, %v538_v54  ;;  %v1118_v51 = vld [vmem:[%s3041_s14 + $0x9e0] sm:$0xff] }
 0x184   : > { %2196 = vst [vmem:[%s3056_s20 + $0x890] sm:$0xff] %v1636_v60  ;;  %v540_v60 = vld [vmem:[%s3034_s19 + $0x950] sm:$0xff]  ;;  %v1659_v1 = vadd.f32 %v1099_v58, %v539_v57  ;;  %v1119_v54 = vld [vmem:[%s3041_s14 + $0x9e8] sm:$0xff] }
 0x185   : > { %2197 = vst [vmem:[%s3056_s20 + $0x898] sm:$0xff] %v1637_v63  ;;  %v541_v63 = vld [vmem:[%s3034_s19 + $0x958] sm:$0xff]  ;;  %v1660_v4 = vadd.f32 %v1100_v61, %v540_v60  ;;  %v1120_v57 = vld [vmem:[%s3041_s14 + $0x9f0] sm:$0xff] }
 0x186   : > { %2198 = vst [vmem:[%s3056_s20 + $0x8a0] sm:$0xff] %v1638_v2  ;;  %v542_v2 = vld [vmem:[%s3034_s19 + $0x960] sm:$0xff]  ;;  %v1661_v7 = vadd.f32 %v1101_v0, %v541_v63  ;;  %v1121_v60 = vld [vmem:[%s3041_s14 + $0x9f8] sm:$0xff] }
 0x187   : > { %2199 = vst [vmem:[%s3056_s20 + $0x8a8] sm:$0xff] %v1639_v5  ;;  %v543_v5 = vld [vmem:[%s3034_s19 + $0x968] sm:$0xff]  ;;  %v1662_v10 = vadd.f32 %v1102_v3, %v542_v2  ;;  %v1122_v63 = vld [vmem:[%s3041_s14 + $0xa00] sm:$0xff] }
 0x188   : > { %2200 = vst [vmem:[%s3056_s20 + $0x8b0] sm:$0xff] %v1640_v8  ;;  %v544_v8 = vld [vmem:[%s3034_s19 + $0x970] sm:$0xff]  ;;  %v1663_v13 = vadd.f32 %v1103_v6, %v543_v5  ;;  %v1123_v2 = vld [vmem:[%s3041_s14 + $0xa08] sm:$0xff] }
 0x189   : > { %2201 = vst [vmem:[%s3056_s20 + $0x8b8] sm:$0xff] %v1641_v11  ;;  %v545_v11 = vld [vmem:[%s3034_s19 + $0x978] sm:$0xff]  ;;  %v1664_v16 = vadd.f32 %v1104_v9, %v544_v8  ;;  %v1124_v5 = vld [vmem:[%s3041_s14 + $0xa10] sm:$0xff] }
 0x18a   : > { %2202 = vst [vmem:[%s3056_s20 + $0x8c0] sm:$0xff] %v1642_v14  ;;  %v546_v14 = vld [vmem:[%s3034_s19 + $0x980] sm:$0xff]  ;;  %v1665_v19 = vadd.f32 %v1105_v12, %v545_v11  ;;  %v1125_v8 = vld [vmem:[%s3041_s14 + $0xa18] sm:$0xff] }
 0x18b   : > { %2203 = vst [vmem:[%s3056_s20 + $0x8c8] sm:$0xff] %v1643_v17  ;;  %v547_v17 = vld [vmem:[%s3034_s19 + $0x988] sm:$0xff]  ;;  %v1666_v22 = vadd.f32 %v1106_v15, %v546_v14  ;;  %v1126_v11 = vld [vmem:[%s3041_s14 + $0xa20] sm:$0xff] }
 0x18c   : > { %2204 = vst [vmem:[%s3056_s20 + $0x8d0] sm:$0xff] %v1644_v20  ;;  %v548_v20 = vld [vmem:[%s3034_s19 + $0x990] sm:$0xff]  ;;  %v1667_v25 = vadd.f32 %v1107_v18, %v547_v17  ;;  %v1127_v14 = vld [vmem:[%s3041_s14 + $0xa28] sm:$0xff] }
 0x18d   : > { %2205 = vst [vmem:[%s3056_s20 + $0x8d8] sm:$0xff] %v1645_v23  ;;  %v549_v23 = vld [vmem:[%s3034_s19 + $0x998] sm:$0xff]  ;;  %v1668_v28 = vadd.f32 %v1108_v21, %v548_v20  ;;  %v1128_v17 = vld [vmem:[%s3041_s14 + $0xa30] sm:$0xff] }
 0x18e   : > { %2206 = vst [vmem:[%s3056_s20 + $0x8e0] sm:$0xff] %v1646_v26  ;;  %v550_v26 = vld [vmem:[%s3034_s19 + $0x9a0] sm:$0xff]  ;;  %v1669_v31 = vadd.f32 %v1109_v24, %v549_v23  ;;  %v1129_v20 = vld [vmem:[%s3041_s14 + $0xa38] sm:$0xff] }
 0x18f   : > { %2207 = vst [vmem:[%s3056_s20 + $0x8e8] sm:$0xff] %v1647_v29  ;;  %v551_v29 = vld [vmem:[%s3034_s19 + $0x9a8] sm:$0xff]  ;;  %v1670_v34 = vadd.f32 %v1110_v27, %v550_v26  ;;  %v1130_v23 = vld [vmem:[%s3041_s14 + $0xa40] sm:$0xff] }
 0x190   : > { %2208 = vst [vmem:[%s3056_s20 + $0x8f0] sm:$0xff] %v1648_v32  ;;  %v552_v32 = vld [vmem:[%s3034_s19 + $0x9b0] sm:$0xff]  ;;  %v1671_v37 = vadd.f32 %v1111_v30, %v551_v29  ;;  %v1131_v26 = vld [vmem:[%s3041_s14 + $0xa48] sm:$0xff] }
 0x191   : > { %2209 = vst [vmem:[%s3056_s20 + $0x8f8] sm:$0xff] %v1649_v35  ;;  %v553_v35 = vld [vmem:[%s3034_s19 + $0x9b8] sm:$0xff]  ;;  %v1672_v40 = vadd.f32 %v1112_v33, %v552_v32  ;;  %v1132_v29 = vld [vmem:[%s3041_s14 + $0xa50] sm:$0xff] }
 0x192   : > { %2210 = vst [vmem:[%s3056_s20 + $0x900] sm:$0xff] %v1650_v38  ;;  %v554_v38 = vld [vmem:[%s3034_s19 + $0x9c0] sm:$0xff]  ;;  %v1673_v43 = vadd.f32 %v1113_v36, %v553_v35  ;;  %v1133_v32 = vld [vmem:[%s3041_s14 + $0xa58] sm:$0xff] }
 0x193   : > { %2211 = vst [vmem:[%s3056_s20 + $0x908] sm:$0xff] %v1651_v41  ;;  %v555_v41 = vld [vmem:[%s3034_s19 + $0x9c8] sm:$0xff]  ;;  %v1674_v46 = vadd.f32 %v1114_v39, %v554_v38  ;;  %v1134_v35 = vld [vmem:[%s3041_s14 + $0xa60] sm:$0xff] }
 0x194   : > { %2212 = vst [vmem:[%s3056_s20 + $0x910] sm:$0xff] %v1652_v44  ;;  %v556_v44 = vld [vmem:[%s3034_s19 + $0x9d0] sm:$0xff]  ;;  %v1675_v49 = vadd.f32 %v1115_v42, %v555_v41  ;;  %v1135_v38 = vld [vmem:[%s3041_s14 + $0xa68] sm:$0xff] }
 0x195   : > { %2213 = vst [vmem:[%s3056_s20 + $0x918] sm:$0xff] %v1653_v47  ;;  %v557_v47 = vld [vmem:[%s3034_s19 + $0x9d8] sm:$0xff]  ;;  %v1676_v52 = vadd.f32 %v1116_v45, %v556_v44  ;;  %v1136_v41 = vld [vmem:[%s3041_s14 + $0xa70] sm:$0xff] }
 0x196   : > { %2214 = vst [vmem:[%s3056_s20 + $0x920] sm:$0xff] %v1654_v50  ;;  %v558_v50 = vld [vmem:[%s3034_s19 + $0x9e0] sm:$0xff]  ;;  %v1677_v55 = vadd.f32 %v1117_v48, %v557_v47  ;;  %v1137_v44 = vld [vmem:[%s3041_s14 + $0xa78] sm:$0xff] }
 0x197   : > { %2215 = vst [vmem:[%s3056_s20 + $0x928] sm:$0xff] %v1655_v53  ;;  %v559_v53 = vld [vmem:[%s3034_s19 + $0x9e8] sm:$0xff]  ;;  %v1678_v58 = vadd.f32 %v1118_v51, %v558_v50  ;;  %v1138_v47 = vld [vmem:[%s3041_s14 + $0xa80] sm:$0xff] }
 0x198   : > { %2216 = vst [vmem:[%s3056_s20 + $0x930] sm:$0xff] %v1656_v56  ;;  %v560_v56 = vld [vmem:[%s3034_s19 + $0x9f0] sm:$0xff]  ;;  %v1679_v61 = vadd.f32 %v1119_v54, %v559_v53  ;;  %v1139_v50 = vld [vmem:[%s3041_s14 + $0xa88] sm:$0xff] }
 0x199   : > { %2217 = vst [vmem:[%s3056_s20 + $0x938] sm:$0xff] %v1657_v59  ;;  %v561_v59 = vld [vmem:[%s3034_s19 + $0x9f8] sm:$0xff]  ;;  %v1680_v0 = vadd.f32 %v1120_v57, %v560_v56  ;;  %v1140_v53 = vld [vmem:[%s3041_s14 + $0xa90] sm:$0xff] }
 0x19a   : > { %2218 = vst [vmem:[%s3056_s20 + $0x940] sm:$0xff] %v1658_v62  ;;  %v562_v62 = vld [vmem:[%s3034_s19 + $0xa00] sm:$0xff]  ;;  %v1681_v3 = vadd.f32 %v1121_v60, %v561_v59  ;;  %v1141_v56 = vld [vmem:[%s3041_s14 + $0xa98] sm:$0xff] }
 0x19b   : > { %2219 = vst [vmem:[%s3056_s20 + $0x948] sm:$0xff] %v1659_v1  ;;  %v563_v1 = vld [vmem:[%s3034_s19 + $0xa08] sm:$0xff]  ;;  %v1682_v6 = vadd.f32 %v1122_v63, %v562_v62  ;;  %v1142_v59 = vld [vmem:[%s3041_s14 + $0xaa0] sm:$0xff] }
 0x19c   : > { %2220 = vst [vmem:[%s3056_s20 + $0x950] sm:$0xff] %v1660_v4  ;;  %v564_v4 = vld [vmem:[%s3034_s19 + $0xa10] sm:$0xff]  ;;  %v1683_v9 = vadd.f32 %v1123_v2, %v563_v1  ;;  %v1143_v62 = vld [vmem:[%s3041_s14 + $0xaa8] sm:$0xff] }
 0x19d   : > { %2221 = vst [vmem:[%s3056_s20 + $0x958] sm:$0xff] %v1661_v7  ;;  %v565_v7 = vld [vmem:[%s3034_s19 + $0xa18] sm:$0xff]  ;;  %v1684_v12 = vadd.f32 %v1124_v5, %v564_v4  ;;  %v1144_v1 = vld [vmem:[%s3041_s14 + $0xab0] sm:$0xff] }
 0x19e   : > { %2222 = vst [vmem:[%s3056_s20 + $0x960] sm:$0xff] %v1662_v10  ;;  %v566_v10 = vld [vmem:[%s3034_s19 + $0xa20] sm:$0xff]  ;;  %v1685_v15 = vadd.f32 %v1125_v8, %v565_v7  ;;  %v1145_v4 = vld [vmem:[%s3041_s14 + $0xab8] sm:$0xff] }
 0x19f   : > { %2223 = vst [vmem:[%s3056_s20 + $0x968] sm:$0xff] %v1663_v13  ;;  %v567_v13 = vld [vmem:[%s3034_s19 + $0xa28] sm:$0xff]  ;;  %v1686_v18 = vadd.f32 %v1126_v11, %v566_v10  ;;  %v1146_v7 = vld [vmem:[%s3041_s14 + $0xac0] sm:$0xff] }
 0x1a0   : > { %2224 = vst [vmem:[%s3056_s20 + $0x970] sm:$0xff] %v1664_v16  ;;  %v568_v16 = vld [vmem:[%s3034_s19 + $0xa30] sm:$0xff]  ;;  %v1687_v21 = vadd.f32 %v1127_v14, %v567_v13  ;;  %v1147_v10 = vld [vmem:[%s3041_s14 + $0xac8] sm:$0xff] }
 0x1a1   : > { %2225 = vst [vmem:[%s3056_s20 + $0x978] sm:$0xff] %v1665_v19  ;;  %v569_v19 = vld [vmem:[%s3034_s19 + $0xa38] sm:$0xff]  ;;  %v1688_v24 = vadd.f32 %v1128_v17, %v568_v16  ;;  %v1148_v13 = vld [vmem:[%s3041_s14 + $0xad0] sm:$0xff] }
 0x1a2   : > { %2226 = vst [vmem:[%s3056_s20 + $0x980] sm:$0xff] %v1666_v22  ;;  %v570_v22 = vld [vmem:[%s3034_s19 + $0xa40] sm:$0xff]  ;;  %v1689_v27 = vadd.f32 %v1129_v20, %v569_v19  ;;  %v1149_v16 = vld [vmem:[%s3041_s14 + $0xad8] sm:$0xff] }
 0x1a3   : > { %2227 = vst [vmem:[%s3056_s20 + $0x988] sm:$0xff] %v1667_v25  ;;  %v571_v25 = vld [vmem:[%s3034_s19 + $0xa48] sm:$0xff]  ;;  %v1690_v30 = vadd.f32 %v1130_v23, %v570_v22  ;;  %v1150_v19 = vld [vmem:[%s3041_s14 + $0xae0] sm:$0xff] }
 0x1a4   : > { %2228 = vst [vmem:[%s3056_s20 + $0x990] sm:$0xff] %v1668_v28  ;;  %v572_v28 = vld [vmem:[%s3034_s19 + $0xa50] sm:$0xff]  ;;  %v1691_v33 = vadd.f32 %v1131_v26, %v571_v25  ;;  %v1151_v22 = vld [vmem:[%s3041_s14 + $0xae8] sm:$0xff] }
 0x1a5   : > { %2229 = vst [vmem:[%s3056_s20 + $0x998] sm:$0xff] %v1669_v31  ;;  %v573_v31 = vld [vmem:[%s3034_s19 + $0xa58] sm:$0xff]  ;;  %v1692_v36 = vadd.f32 %v1132_v29, %v572_v28  ;;  %v1152_v25 = vld [vmem:[%s3041_s14 + $0xaf0] sm:$0xff] }
 0x1a6   : > { %2230 = vst [vmem:[%s3056_s20 + $0x9a0] sm:$0xff] %v1670_v34  ;;  %v574_v34 = vld [vmem:[%s3034_s19 + $0xa60] sm:$0xff]  ;;  %v1693_v39 = vadd.f32 %v1133_v32, %v573_v31  ;;  %v1153_v28 = vld [vmem:[%s3041_s14 + $0xaf8] sm:$0xff] }
 0x1a7   : > { %2231 = vst [vmem:[%s3056_s20 + $0x9a8] sm:$0xff] %v1671_v37  ;;  %v575_v37 = vld [vmem:[%s3034_s19 + $0xa68] sm:$0xff]  ;;  %v1694_v42 = vadd.f32 %v1134_v35, %v574_v34  ;;  %v1154_v31 = vld [vmem:[%s3041_s14 + $0xb00] sm:$0xff] }
 0x1a8   : > { %2232 = vst [vmem:[%s3056_s20 + $0x9b0] sm:$0xff] %v1672_v40  ;;  %v576_v40 = vld [vmem:[%s3034_s19 + $0xa70] sm:$0xff]  ;;  %v1695_v45 = vadd.f32 %v1135_v38, %v575_v37  ;;  %v1155_v34 = vld [vmem:[%s3041_s14 + $0xb08] sm:$0xff] }
 0x1a9   : > { %2233 = vst [vmem:[%s3056_s20 + $0x9b8] sm:$0xff] %v1673_v43  ;;  %v577_v43 = vld [vmem:[%s3034_s19 + $0xa78] sm:$0xff]  ;;  %v1696_v48 = vadd.f32 %v1136_v41, %v576_v40  ;;  %v1156_v37 = vld [vmem:[%s3041_s14 + $0xb10] sm:$0xff] }
 0x1aa   : > { %2234 = vst [vmem:[%s3056_s20 + $0x9c0] sm:$0xff] %v1674_v46  ;;  %v578_v46 = vld [vmem:[%s3034_s19 + $0xa80] sm:$0xff]  ;;  %v1697_v51 = vadd.f32 %v1137_v44, %v577_v43  ;;  %v1157_v40 = vld [vmem:[%s3041_s14 + $0xb18] sm:$0xff] }
 0x1ab   : > { %2235 = vst [vmem:[%s3056_s20 + $0x9c8] sm:$0xff] %v1675_v49  ;;  %v579_v49 = vld [vmem:[%s3034_s19 + $0xa88] sm:$0xff]  ;;  %v1698_v54 = vadd.f32 %v1138_v47, %v578_v46  ;;  %v1158_v43 = vld [vmem:[%s3041_s14 + $0xb20] sm:$0xff] }
 0x1ac   : > { %2236 = vst [vmem:[%s3056_s20 + $0x9d0] sm:$0xff] %v1676_v52  ;;  %v580_v52 = vld [vmem:[%s3034_s19 + $0xa90] sm:$0xff]  ;;  %v1699_v57 = vadd.f32 %v1139_v50, %v579_v49  ;;  %v1159_v46 = vld [vmem:[%s3041_s14 + $0xb28] sm:$0xff] }
 0x1ad   : > { %2237 = vst [vmem:[%s3056_s20 + $0x9d8] sm:$0xff] %v1677_v55  ;;  %v581_v55 = vld [vmem:[%s3034_s19 + $0xa98] sm:$0xff]  ;;  %v1700_v60 = vadd.f32 %v1140_v53, %v580_v52  ;;  %v1160_v49 = vld [vmem:[%s3041_s14 + $0xb30] sm:$0xff] }
 0x1ae   : > { %2238 = vst [vmem:[%s3056_s20 + $0x9e0] sm:$0xff] %v1678_v58  ;;  %v582_v58 = vld [vmem:[%s3034_s19 + $0xaa0] sm:$0xff]  ;;  %v1701_v63 = vadd.f32 %v1141_v56, %v581_v55  ;;  %v1161_v52 = vld [vmem:[%s3041_s14 + $0xb38] sm:$0xff] }
 0x1af   : > { %2239 = vst [vmem:[%s3056_s20 + $0x9e8] sm:$0xff] %v1679_v61  ;;  %v583_v61 = vld [vmem:[%s3034_s19 + $0xaa8] sm:$0xff]  ;;  %v1702_v2 = vadd.f32 %v1142_v59, %v582_v58  ;;  %v1162_v55 = vld [vmem:[%s3041_s14 + $0xb40] sm:$0xff] }
 0x1b0   : > { %2240 = vst [vmem:[%s3056_s20 + $0x9f0] sm:$0xff] %v1680_v0  ;;  %v584_v0 = vld [vmem:[%s3034_s19 + $0xab0] sm:$0xff]  ;;  %v1703_v5 = vadd.f32 %v1143_v62, %v583_v61  ;;  %v1163_v58 = vld [vmem:[%s3041_s14 + $0xb48] sm:$0xff] }
 0x1b1   : > { %2241 = vst [vmem:[%s3056_s20 + $0x9f8] sm:$0xff] %v1681_v3  ;;  %v585_v3 = vld [vmem:[%s3034_s19 + $0xab8] sm:$0xff]  ;;  %v1704_v8 = vadd.f32 %v1144_v1, %v584_v0  ;;  %v1164_v61 = vld [vmem:[%s3041_s14 + $0xb50] sm:$0xff] }
 0x1b2   : > { %2242 = vst [vmem:[%s3056_s20 + $0xa00] sm:$0xff] %v1682_v6  ;;  %v586_v6 = vld [vmem:[%s3034_s19 + $0xac0] sm:$0xff]  ;;  %v1705_v11 = vadd.f32 %v1145_v4, %v585_v3  ;;  %v1165_v0 = vld [vmem:[%s3041_s14 + $0xb58] sm:$0xff] }
 0x1b3   : > { %2243 = vst [vmem:[%s3056_s20 + $0xa08] sm:$0xff] %v1683_v9  ;;  %v587_v9 = vld [vmem:[%s3034_s19 + $0xac8] sm:$0xff]  ;;  %v1706_v14 = vadd.f32 %v1146_v7, %v586_v6  ;;  %v1166_v3 = vld [vmem:[%s3041_s14 + $0xb60] sm:$0xff] }
 0x1b4   : > { %2244 = vst [vmem:[%s3056_s20 + $0xa10] sm:$0xff] %v1684_v12  ;;  %v588_v12 = vld [vmem:[%s3034_s19 + $0xad0] sm:$0xff]  ;;  %v1707_v17 = vadd.f32 %v1147_v10, %v587_v9  ;;  %v1167_v6 = vld [vmem:[%s3041_s14 + $0xb68] sm:$0xff] }
 0x1b5   : > { %2245 = vst [vmem:[%s3056_s20 + $0xa18] sm:$0xff] %v1685_v15  ;;  %v589_v15 = vld [vmem:[%s3034_s19 + $0xad8] sm:$0xff]  ;;  %v1708_v20 = vadd.f32 %v1148_v13, %v588_v12  ;;  %v1168_v9 = vld [vmem:[%s3041_s14 + $0xb70] sm:$0xff] }
 0x1b6   : > { %2246 = vst [vmem:[%s3056_s20 + $0xa20] sm:$0xff] %v1686_v18  ;;  %v590_v18 = vld [vmem:[%s3034_s19 + $0xae0] sm:$0xff]  ;;  %v1709_v23 = vadd.f32 %v1149_v16, %v589_v15  ;;  %v1169_v12 = vld [vmem:[%s3041_s14 + $0xb78] sm:$0xff] }
 0x1b7   : > { %2247 = vst [vmem:[%s3056_s20 + $0xa28] sm:$0xff] %v1687_v21  ;;  %v591_v21 = vld [vmem:[%s3034_s19 + $0xae8] sm:$0xff]  ;;  %v1710_v26 = vadd.f32 %v1150_v19, %v590_v18  ;;  %v1170_v15 = vld [vmem:[%s3041_s14 + $0xb80] sm:$0xff] }
 0x1b8   : > { %2248 = vst [vmem:[%s3056_s20 + $0xa30] sm:$0xff] %v1688_v24  ;;  %v592_v24 = vld [vmem:[%s3034_s19 + $0xaf0] sm:$0xff]  ;;  %v1711_v29 = vadd.f32 %v1151_v22, %v591_v21  ;;  %v1171_v18 = vld [vmem:[%s3041_s14 + $0xb88] sm:$0xff] }
 0x1b9   : > { %2249 = vst [vmem:[%s3056_s20 + $0xa38] sm:$0xff] %v1689_v27  ;;  %v593_v27 = vld [vmem:[%s3034_s19 + $0xaf8] sm:$0xff]  ;;  %v1712_v32 = vadd.f32 %v1152_v25, %v592_v24  ;;  %v1172_v21 = vld [vmem:[%s3041_s14 + $0xb90] sm:$0xff] }
 0x1ba   : > { %2250 = vst [vmem:[%s3056_s20 + $0xa40] sm:$0xff] %v1690_v30  ;;  %v594_v30 = vld [vmem:[%s3034_s19 + $0xb00] sm:$0xff]  ;;  %v1713_v35 = vadd.f32 %v1153_v28, %v593_v27  ;;  %v1173_v24 = vld [vmem:[%s3041_s14 + $0xb98] sm:$0xff] }
 0x1bb   : > { %2251 = vst [vmem:[%s3056_s20 + $0xa48] sm:$0xff] %v1691_v33  ;;  %v595_v33 = vld [vmem:[%s3034_s19 + $0xb08] sm:$0xff]  ;;  %v1714_v38 = vadd.f32 %v1154_v31, %v594_v30  ;;  %v1174_v27 = vld [vmem:[%s3041_s14 + $0xba0] sm:$0xff] }
 0x1bc   : > { %2252 = vst [vmem:[%s3056_s20 + $0xa50] sm:$0xff] %v1692_v36  ;;  %v596_v36 = vld [vmem:[%s3034_s19 + $0xb10] sm:$0xff]  ;;  %v1715_v41 = vadd.f32 %v1155_v34, %v595_v33  ;;  %v1175_v30 = vld [vmem:[%s3041_s14 + $0xba8] sm:$0xff] }
 0x1bd   : > { %2253 = vst [vmem:[%s3056_s20 + $0xa58] sm:$0xff] %v1693_v39  ;;  %v597_v39 = vld [vmem:[%s3034_s19 + $0xb18] sm:$0xff]  ;;  %v1716_v44 = vadd.f32 %v1156_v37, %v596_v36  ;;  %v1176_v33 = vld [vmem:[%s3041_s14 + $0xbb0] sm:$0xff] }
 0x1be   : > { %2254 = vst [vmem:[%s3056_s20 + $0xa60] sm:$0xff] %v1694_v42  ;;  %v598_v42 = vld [vmem:[%s3034_s19 + $0xb20] sm:$0xff]  ;;  %v1717_v47 = vadd.f32 %v1157_v40, %v597_v39  ;;  %v1177_v36 = vld [vmem:[%s3041_s14 + $0xbb8] sm:$0xff] }
 0x1bf   : > { %2255 = vst [vmem:[%s3056_s20 + $0xa68] sm:$0xff] %v1695_v45  ;;  %v599_v45 = vld [vmem:[%s3034_s19 + $0xb28] sm:$0xff]  ;;  %v1718_v50 = vadd.f32 %v1158_v43, %v598_v42  ;;  %v1178_v39 = vld [vmem:[%s3041_s14 + $0xbc0] sm:$0xff] }
 0x1c0   : > { %2256 = vst [vmem:[%s3056_s20 + $0xa70] sm:$0xff] %v1696_v48  ;;  %v600_v48 = vld [vmem:[%s3034_s19 + $0xb30] sm:$0xff]  ;;  %v1719_v53 = vadd.f32 %v1159_v46, %v599_v45  ;;  %v1179_v42 = vld [vmem:[%s3041_s14 + $0xbc8] sm:$0xff] }
 0x1c1   : > { %2257 = vst [vmem:[%s3056_s20 + $0xa78] sm:$0xff] %v1697_v51  ;;  %v601_v51 = vld [vmem:[%s3034_s19 + $0xb38] sm:$0xff]  ;;  %v1720_v56 = vadd.f32 %v1160_v49, %v600_v48  ;;  %v1180_v45 = vld [vmem:[%s3041_s14 + $0xbd0] sm:$0xff] }
 0x1c2   : > { %2258 = vst [vmem:[%s3056_s20 + $0xa80] sm:$0xff] %v1698_v54  ;;  %v602_v54 = vld [vmem:[%s3034_s19 + $0xb40] sm:$0xff]  ;;  %v1721_v59 = vadd.f32 %v1161_v52, %v601_v51  ;;  %v1181_v48 = vld [vmem:[%s3041_s14 + $0xbd8] sm:$0xff] }
 0x1c3   : > { %2259 = vst [vmem:[%s3056_s20 + $0xa88] sm:$0xff] %v1699_v57  ;;  %v603_v57 = vld [vmem:[%s3034_s19 + $0xb48] sm:$0xff]  ;;  %v1722_v62 = vadd.f32 %v1162_v55, %v602_v54  ;;  %v1182_v51 = vld [vmem:[%s3041_s14 + $0xbe0] sm:$0xff] }
 0x1c4   : > { %2260 = vst [vmem:[%s3056_s20 + $0xa90] sm:$0xff] %v1700_v60  ;;  %v604_v60 = vld [vmem:[%s3034_s19 + $0xb50] sm:$0xff]  ;;  %v1723_v1 = vadd.f32 %v1163_v58, %v603_v57  ;;  %v1183_v54 = vld [vmem:[%s3041_s14 + $0xbe8] sm:$0xff] }
 0x1c5   : > { %2261 = vst [vmem:[%s3056_s20 + $0xa98] sm:$0xff] %v1701_v63  ;;  %v605_v63 = vld [vmem:[%s3034_s19 + $0xb58] sm:$0xff]  ;;  %v1724_v4 = vadd.f32 %v1164_v61, %v604_v60  ;;  %v1184_v57 = vld [vmem:[%s3041_s14 + $0xbf0] sm:$0xff] }
 0x1c6   : > { %2262 = vst [vmem:[%s3056_s20 + $0xaa0] sm:$0xff] %v1702_v2  ;;  %v606_v2 = vld [vmem:[%s3034_s19 + $0xb60] sm:$0xff]  ;;  %v1725_v7 = vadd.f32 %v1165_v0, %v605_v63  ;;  %v1185_v60 = vld [vmem:[%s3041_s14 + $0xbf8] sm:$0xff] }
 0x1c7   : > { %2263 = vst [vmem:[%s3056_s20 + $0xaa8] sm:$0xff] %v1703_v5  ;;  %v607_v5 = vld [vmem:[%s3034_s19 + $0xb68] sm:$0xff]  ;;  %v1726_v10 = vadd.f32 %v1166_v3, %v606_v2  ;;  %v1186_v63 = vld [vmem:[%s3041_s14 + $0xc00] sm:$0xff] }
 0x1c8   : > { %2264 = vst [vmem:[%s3056_s20 + $0xab0] sm:$0xff] %v1704_v8  ;;  %v608_v8 = vld [vmem:[%s3034_s19 + $0xb70] sm:$0xff]  ;;  %v1727_v13 = vadd.f32 %v1167_v6, %v607_v5  ;;  %v1187_v2 = vld [vmem:[%s3041_s14 + $0xc08] sm:$0xff] }
 0x1c9   : > { %2265 = vst [vmem:[%s3056_s20 + $0xab8] sm:$0xff] %v1705_v11  ;;  %v609_v11 = vld [vmem:[%s3034_s19 + $0xb78] sm:$0xff]  ;;  %v1728_v16 = vadd.f32 %v1168_v9, %v608_v8  ;;  %v1188_v5 = vld [vmem:[%s3041_s14 + $0xc10] sm:$0xff] }
 0x1ca   : > { %2266 = vst [vmem:[%s3056_s20 + $0xac0] sm:$0xff] %v1706_v14  ;;  %v610_v14 = vld [vmem:[%s3034_s19 + $0xb80] sm:$0xff]  ;;  %v1729_v19 = vadd.f32 %v1169_v12, %v609_v11  ;;  %v1189_v8 = vld [vmem:[%s3041_s14 + $0xc18] sm:$0xff] }
 0x1cb   : > { %2267 = vst [vmem:[%s3056_s20 + $0xac8] sm:$0xff] %v1707_v17  ;;  %v611_v17 = vld [vmem:[%s3034_s19 + $0xb88] sm:$0xff]  ;;  %v1730_v22 = vadd.f32 %v1170_v15, %v610_v14  ;;  %v1190_v11 = vld [vmem:[%s3041_s14 + $0xc20] sm:$0xff] }
 0x1cc   : > { %2268 = vst [vmem:[%s3056_s20 + $0xad0] sm:$0xff] %v1708_v20  ;;  %v612_v20 = vld [vmem:[%s3034_s19 + $0xb90] sm:$0xff]  ;;  %v1731_v25 = vadd.f32 %v1171_v18, %v611_v17  ;;  %v1191_v14 = vld [vmem:[%s3041_s14 + $0xc28] sm:$0xff] }
 0x1cd   : > { %2269 = vst [vmem:[%s3056_s20 + $0xad8] sm:$0xff] %v1709_v23  ;;  %v613_v23 = vld [vmem:[%s3034_s19 + $0xb98] sm:$0xff]  ;;  %v1732_v28 = vadd.f32 %v1172_v21, %v612_v20  ;;  %v1192_v17 = vld [vmem:[%s3041_s14 + $0xc30] sm:$0xff] }
 0x1ce   : > { %2270 = vst [vmem:[%s3056_s20 + $0xae0] sm:$0xff] %v1710_v26  ;;  %v614_v26 = vld [vmem:[%s3034_s19 + $0xba0] sm:$0xff]  ;;  %v1733_v31 = vadd.f32 %v1173_v24, %v613_v23  ;;  %v1193_v20 = vld [vmem:[%s3041_s14 + $0xc38] sm:$0xff] }
 0x1cf   : > { %2271 = vst [vmem:[%s3056_s20 + $0xae8] sm:$0xff] %v1711_v29  ;;  %v615_v29 = vld [vmem:[%s3034_s19 + $0xba8] sm:$0xff]  ;;  %v1734_v34 = vadd.f32 %v1174_v27, %v614_v26  ;;  %v1194_v23 = vld [vmem:[%s3041_s14 + $0xc40] sm:$0xff] }
 0x1d0   : > { %2272 = vst [vmem:[%s3056_s20 + $0xaf0] sm:$0xff] %v1712_v32  ;;  %v616_v32 = vld [vmem:[%s3034_s19 + $0xbb0] sm:$0xff]  ;;  %v1735_v37 = vadd.f32 %v1175_v30, %v615_v29  ;;  %v1195_v26 = vld [vmem:[%s3041_s14 + $0xc48] sm:$0xff] }
 0x1d1   : > { %2273 = vst [vmem:[%s3056_s20 + $0xaf8] sm:$0xff] %v1713_v35  ;;  %v617_v35 = vld [vmem:[%s3034_s19 + $0xbb8] sm:$0xff]  ;;  %v1736_v40 = vadd.f32 %v1176_v33, %v616_v32  ;;  %v1196_v29 = vld [vmem:[%s3041_s14 + $0xc50] sm:$0xff] }
 0x1d2   : > { %2274 = vst [vmem:[%s3056_s20 + $0xb00] sm:$0xff] %v1714_v38  ;;  %v618_v38 = vld [vmem:[%s3034_s19 + $0xbc0] sm:$0xff]  ;;  %v1737_v43 = vadd.f32 %v1177_v36, %v617_v35  ;;  %v1197_v32 = vld [vmem:[%s3041_s14 + $0xc58] sm:$0xff] }
 0x1d3   : > { %2275 = vst [vmem:[%s3056_s20 + $0xb08] sm:$0xff] %v1715_v41  ;;  %v619_v41 = vld [vmem:[%s3034_s19 + $0xbc8] sm:$0xff]  ;;  %v1738_v46 = vadd.f32 %v1178_v39, %v618_v38  ;;  %v1198_v35 = vld [vmem:[%s3041_s14 + $0xc60] sm:$0xff] }
 0x1d4   : > { %2276 = vst [vmem:[%s3056_s20 + $0xb10] sm:$0xff] %v1716_v44  ;;  %v620_v44 = vld [vmem:[%s3034_s19 + $0xbd0] sm:$0xff]  ;;  %v1739_v49 = vadd.f32 %v1179_v42, %v619_v41  ;;  %v1199_v38 = vld [vmem:[%s3041_s14 + $0xc68] sm:$0xff] }
 0x1d5   : > { %2277 = vst [vmem:[%s3056_s20 + $0xb18] sm:$0xff] %v1717_v47  ;;  %v621_v47 = vld [vmem:[%s3034_s19 + $0xbd8] sm:$0xff]  ;;  %v1740_v52 = vadd.f32 %v1180_v45, %v620_v44  ;;  %v1200_v41 = vld [vmem:[%s3041_s14 + $0xc70] sm:$0xff] }
 0x1d6   : > { %2278 = vst [vmem:[%s3056_s20 + $0xb20] sm:$0xff] %v1718_v50  ;;  %v622_v50 = vld [vmem:[%s3034_s19 + $0xbe0] sm:$0xff]  ;;  %v1741_v55 = vadd.f32 %v1181_v48, %v621_v47  ;;  %v1201_v44 = vld [vmem:[%s3041_s14 + $0xc78] sm:$0xff] }
 0x1d7   : > { %2279 = vst [vmem:[%s3056_s20 + $0xb28] sm:$0xff] %v1719_v53  ;;  %v623_v53 = vld [vmem:[%s3034_s19 + $0xbe8] sm:$0xff]  ;;  %v1742_v58 = vadd.f32 %v1182_v51, %v622_v50  ;;  %v1202_v47 = vld [vmem:[%s3041_s14 + $0xc80] sm:$0xff] }
 0x1d8   : > { %2280 = vst [vmem:[%s3056_s20 + $0xb30] sm:$0xff] %v1720_v56  ;;  %v624_v56 = vld [vmem:[%s3034_s19 + $0xbf0] sm:$0xff]  ;;  %v1743_v61 = vadd.f32 %v1183_v54, %v623_v53  ;;  %v1203_v50 = vld [vmem:[%s3041_s14 + $0xc88] sm:$0xff] }
 0x1d9   : > { %2281 = vst [vmem:[%s3056_s20 + $0xb38] sm:$0xff] %v1721_v59  ;;  %v625_v59 = vld [vmem:[%s3034_s19 + $0xbf8] sm:$0xff]  ;;  %v1744_v0 = vadd.f32 %v1184_v57, %v624_v56  ;;  %v1204_v53 = vld [vmem:[%s3041_s14 + $0xc90] sm:$0xff] }
 0x1da   : > { %2282 = vst [vmem:[%s3056_s20 + $0xb40] sm:$0xff] %v1722_v62  ;;  %v626_v62 = vld [vmem:[%s3034_s19 + $0xc00] sm:$0xff]  ;;  %v1745_v3 = vadd.f32 %v1185_v60, %v625_v59  ;;  %v1205_v56 = vld [vmem:[%s3041_s14 + $0xc98] sm:$0xff] }
 0x1db   : > { %2283 = vst [vmem:[%s3056_s20 + $0xb48] sm:$0xff] %v1723_v1  ;;  %v627_v1 = vld [vmem:[%s3034_s19 + $0xc08] sm:$0xff]  ;;  %v1746_v6 = vadd.f32 %v1186_v63, %v626_v62  ;;  %v1206_v59 = vld [vmem:[%s3041_s14 + $0xca0] sm:$0xff] }
 0x1dc   : > { %2284 = vst [vmem:[%s3056_s20 + $0xb50] sm:$0xff] %v1724_v4  ;;  %v628_v4 = vld [vmem:[%s3034_s19 + $0xc10] sm:$0xff]  ;;  %v1747_v9 = vadd.f32 %v1187_v2, %v627_v1  ;;  %v1207_v62 = vld [vmem:[%s3041_s14 + $0xca8] sm:$0xff] }
 0x1dd   : > { %2285 = vst [vmem:[%s3056_s20 + $0xb58] sm:$0xff] %v1725_v7  ;;  %v629_v7 = vld [vmem:[%s3034_s19 + $0xc18] sm:$0xff]  ;;  %v1748_v12 = vadd.f32 %v1188_v5, %v628_v4  ;;  %v1208_v1 = vld [vmem:[%s3041_s14 + $0xcb0] sm:$0xff] }
 0x1de   : > { %2286 = vst [vmem:[%s3056_s20 + $0xb60] sm:$0xff] %v1726_v10  ;;  %v630_v10 = vld [vmem:[%s3034_s19 + $0xc20] sm:$0xff]  ;;  %v1749_v15 = vadd.f32 %v1189_v8, %v629_v7  ;;  %v1209_v4 = vld [vmem:[%s3041_s14 + $0xcb8] sm:$0xff] }
 0x1df   : > { %2287 = vst [vmem:[%s3056_s20 + $0xb68] sm:$0xff] %v1727_v13  ;;  %v631_v13 = vld [vmem:[%s3034_s19 + $0xc28] sm:$0xff]  ;;  %v1750_v18 = vadd.f32 %v1190_v11, %v630_v10  ;;  %v1210_v7 = vld [vmem:[%s3041_s14 + $0xcc0] sm:$0xff] }
 0x1e0   : > { %2288 = vst [vmem:[%s3056_s20 + $0xb70] sm:$0xff] %v1728_v16  ;;  %v632_v16 = vld [vmem:[%s3034_s19 + $0xc30] sm:$0xff]  ;;  %v1751_v21 = vadd.f32 %v1191_v14, %v631_v13  ;;  %v1211_v10 = vld [vmem:[%s3041_s14 + $0xcc8] sm:$0xff] }
 0x1e1   : > { %2289 = vst [vmem:[%s3056_s20 + $0xb78] sm:$0xff] %v1729_v19  ;;  %v633_v19 = vld [vmem:[%s3034_s19 + $0xc38] sm:$0xff]  ;;  %v1752_v24 = vadd.f32 %v1192_v17, %v632_v16  ;;  %v1212_v13 = vld [vmem:[%s3041_s14 + $0xcd0] sm:$0xff] }
 0x1e2   : > { %2290 = vst [vmem:[%s3056_s20 + $0xb80] sm:$0xff] %v1730_v22  ;;  %v634_v22 = vld [vmem:[%s3034_s19 + $0xc40] sm:$0xff]  ;;  %v1753_v27 = vadd.f32 %v1193_v20, %v633_v19  ;;  %v1213_v16 = vld [vmem:[%s3041_s14 + $0xcd8] sm:$0xff] }
 0x1e3   : > { %2291 = vst [vmem:[%s3056_s20 + $0xb88] sm:$0xff] %v1731_v25  ;;  %v635_v25 = vld [vmem:[%s3034_s19 + $0xc48] sm:$0xff]  ;;  %v1754_v30 = vadd.f32 %v1194_v23, %v634_v22  ;;  %v1214_v19 = vld [vmem:[%s3041_s14 + $0xce0] sm:$0xff] }
 0x1e4   : > { %2292 = vst [vmem:[%s3056_s20 + $0xb90] sm:$0xff] %v1732_v28  ;;  %v636_v28 = vld [vmem:[%s3034_s19 + $0xc50] sm:$0xff]  ;;  %v1755_v33 = vadd.f32 %v1195_v26, %v635_v25  ;;  %v1215_v22 = vld [vmem:[%s3041_s14 + $0xce8] sm:$0xff] }
 0x1e5   : > { %2293 = vst [vmem:[%s3056_s20 + $0xb98] sm:$0xff] %v1733_v31  ;;  %v637_v31 = vld [vmem:[%s3034_s19 + $0xc58] sm:$0xff]  ;;  %v1756_v36 = vadd.f32 %v1196_v29, %v636_v28  ;;  %v1216_v25 = vld [vmem:[%s3041_s14 + $0xcf0] sm:$0xff] }
 0x1e6   : > { %2294 = vst [vmem:[%s3056_s20 + $0xba0] sm:$0xff] %v1734_v34  ;;  %v638_v34 = vld [vmem:[%s3034_s19 + $0xc60] sm:$0xff]  ;;  %v1757_v39 = vadd.f32 %v1197_v32, %v637_v31  ;;  %v1217_v28 = vld [vmem:[%s3041_s14 + $0xcf8] sm:$0xff] }
 0x1e7   : > { %2295 = vst [vmem:[%s3056_s20 + $0xba8] sm:$0xff] %v1735_v37  ;;  %v639_v37 = vld [vmem:[%s3034_s19 + $0xc68] sm:$0xff]  ;;  %v1758_v42 = vadd.f32 %v1198_v35, %v638_v34  ;;  %v1218_v31 = vld [vmem:[%s3041_s14 + $0xd00] sm:$0xff] }
 0x1e8   : > { %2296 = vst [vmem:[%s3056_s20 + $0xbb0] sm:$0xff] %v1736_v40  ;;  %v640_v40 = vld [vmem:[%s3034_s19 + $0xc70] sm:$0xff]  ;;  %v1759_v45 = vadd.f32 %v1199_v38, %v639_v37  ;;  %v1219_v34 = vld [vmem:[%s3041_s14 + $0xd08] sm:$0xff] }
 0x1e9   : > { %2297 = vst [vmem:[%s3056_s20 + $0xbb8] sm:$0xff] %v1737_v43  ;;  %v641_v43 = vld [vmem:[%s3034_s19 + $0xc78] sm:$0xff]  ;;  %v1760_v48 = vadd.f32 %v1200_v41, %v640_v40  ;;  %v1220_v37 = vld [vmem:[%s3041_s14 + $0xd10] sm:$0xff] }
 0x1ea   : > { %2298 = vst [vmem:[%s3056_s20 + $0xbc0] sm:$0xff] %v1738_v46  ;;  %v642_v46 = vld [vmem:[%s3034_s19 + $0xc80] sm:$0xff]  ;;  %v1761_v51 = vadd.f32 %v1201_v44, %v641_v43  ;;  %v1221_v40 = vld [vmem:[%s3041_s14 + $0xd18] sm:$0xff] }
 0x1eb   : > { %2299 = vst [vmem:[%s3056_s20 + $0xbc8] sm:$0xff] %v1739_v49  ;;  %v643_v49 = vld [vmem:[%s3034_s19 + $0xc88] sm:$0xff]  ;;  %v1762_v54 = vadd.f32 %v1202_v47, %v642_v46  ;;  %v1222_v43 = vld [vmem:[%s3041_s14 + $0xd20] sm:$0xff] }
 0x1ec   : > { %2300 = vst [vmem:[%s3056_s20 + $0xbd0] sm:$0xff] %v1740_v52  ;;  %v644_v52 = vld [vmem:[%s3034_s19 + $0xc90] sm:$0xff]  ;;  %v1763_v57 = vadd.f32 %v1203_v50, %v643_v49  ;;  %v1223_v46 = vld [vmem:[%s3041_s14 + $0xd28] sm:$0xff] }
 0x1ed   : > { %2301 = vst [vmem:[%s3056_s20 + $0xbd8] sm:$0xff] %v1741_v55  ;;  %v645_v55 = vld [vmem:[%s3034_s19 + $0xc98] sm:$0xff]  ;;  %v1764_v60 = vadd.f32 %v1204_v53, %v644_v52  ;;  %v1224_v49 = vld [vmem:[%s3041_s14 + $0xd30] sm:$0xff] }
 0x1ee   : > { %2302 = vst [vmem:[%s3056_s20 + $0xbe0] sm:$0xff] %v1742_v58  ;;  %v646_v58 = vld [vmem:[%s3034_s19 + $0xca0] sm:$0xff]  ;;  %v1765_v63 = vadd.f32 %v1205_v56, %v645_v55  ;;  %v1225_v52 = vld [vmem:[%s3041_s14 + $0xd38] sm:$0xff] }
 0x1ef   : > { %2303 = vst [vmem:[%s3056_s20 + $0xbe8] sm:$0xff] %v1743_v61  ;;  %v647_v61 = vld [vmem:[%s3034_s19 + $0xca8] sm:$0xff]  ;;  %v1766_v2 = vadd.f32 %v1206_v59, %v646_v58  ;;  %v1226_v55 = vld [vmem:[%s3041_s14 + $0xd40] sm:$0xff] }
 0x1f0   : > { %2304 = vst [vmem:[%s3056_s20 + $0xbf0] sm:$0xff] %v1744_v0  ;;  %v648_v0 = vld [vmem:[%s3034_s19 + $0xcb0] sm:$0xff]  ;;  %v1767_v5 = vadd.f32 %v1207_v62, %v647_v61  ;;  %v1227_v58 = vld [vmem:[%s3041_s14 + $0xd48] sm:$0xff] }
 0x1f1   : > { %2305 = vst [vmem:[%s3056_s20 + $0xbf8] sm:$0xff] %v1745_v3  ;;  %v649_v3 = vld [vmem:[%s3034_s19 + $0xcb8] sm:$0xff]  ;;  %v1768_v8 = vadd.f32 %v1208_v1, %v648_v0  ;;  %v1228_v61 = vld [vmem:[%s3041_s14 + $0xd50] sm:$0xff] }
 0x1f2   : > { %2306 = vst [vmem:[%s3056_s20 + $0xc00] sm:$0xff] %v1746_v6  ;;  %v650_v6 = vld [vmem:[%s3034_s19 + $0xcc0] sm:$0xff]  ;;  %v1769_v11 = vadd.f32 %v1209_v4, %v649_v3  ;;  %v1229_v0 = vld [vmem:[%s3041_s14 + $0xd58] sm:$0xff] }
 0x1f3   : > { %2307 = vst [vmem:[%s3056_s20 + $0xc08] sm:$0xff] %v1747_v9  ;;  %v651_v9 = vld [vmem:[%s3034_s19 + $0xcc8] sm:$0xff]  ;;  %v1770_v14 = vadd.f32 %v1210_v7, %v650_v6  ;;  %v1230_v3 = vld [vmem:[%s3041_s14 + $0xd60] sm:$0xff] }
 0x1f4   : > { %2308 = vst [vmem:[%s3056_s20 + $0xc10] sm:$0xff] %v1748_v12  ;;  %v652_v12 = vld [vmem:[%s3034_s19 + $0xcd0] sm:$0xff]  ;;  %v1771_v17 = vadd.f32 %v1211_v10, %v651_v9  ;;  %v1231_v6 = vld [vmem:[%s3041_s14 + $0xd68] sm:$0xff] }
 0x1f5   : > { %2309 = vst [vmem:[%s3056_s20 + $0xc18] sm:$0xff] %v1749_v15  ;;  %v653_v15 = vld [vmem:[%s3034_s19 + $0xcd8] sm:$0xff]  ;;  %v1772_v20 = vadd.f32 %v1212_v13, %v652_v12  ;;  %v1232_v9 = vld [vmem:[%s3041_s14 + $0xd70] sm:$0xff] }
 0x1f6   : > { %2310 = vst [vmem:[%s3056_s20 + $0xc20] sm:$0xff] %v1750_v18  ;;  %v654_v18 = vld [vmem:[%s3034_s19 + $0xce0] sm:$0xff]  ;;  %v1773_v23 = vadd.f32 %v1213_v16, %v653_v15  ;;  %v1233_v12 = vld [vmem:[%s3041_s14 + $0xd78] sm:$0xff] }
 0x1f7   : > { %2311 = vst [vmem:[%s3056_s20 + $0xc28] sm:$0xff] %v1751_v21  ;;  %v655_v21 = vld [vmem:[%s3034_s19 + $0xce8] sm:$0xff]  ;;  %v1774_v26 = vadd.f32 %v1214_v19, %v654_v18  ;;  %v1234_v15 = vld [vmem:[%s3041_s14 + $0xd80] sm:$0xff] }
 0x1f8   : > { %2312 = vst [vmem:[%s3056_s20 + $0xc30] sm:$0xff] %v1752_v24  ;;  %v656_v24 = vld [vmem:[%s3034_s19 + $0xcf0] sm:$0xff]  ;;  %v1775_v29 = vadd.f32 %v1215_v22, %v655_v21  ;;  %v1235_v18 = vld [vmem:[%s3041_s14 + $0xd88] sm:$0xff] }
 0x1f9   : > { %2313 = vst [vmem:[%s3056_s20 + $0xc38] sm:$0xff] %v1753_v27  ;;  %v657_v27 = vld [vmem:[%s3034_s19 + $0xcf8] sm:$0xff]  ;;  %v1776_v32 = vadd.f32 %v1216_v25, %v656_v24  ;;  %v1236_v21 = vld [vmem:[%s3041_s14 + $0xd90] sm:$0xff] }
 0x1fa   : > { %2314 = vst [vmem:[%s3056_s20 + $0xc40] sm:$0xff] %v1754_v30  ;;  %v658_v30 = vld [vmem:[%s3034_s19 + $0xd00] sm:$0xff]  ;;  %v1777_v35 = vadd.f32 %v1217_v28, %v657_v27  ;;  %v1237_v24 = vld [vmem:[%s3041_s14 + $0xd98] sm:$0xff] }
 0x1fb   : > { %2315 = vst [vmem:[%s3056_s20 + $0xc48] sm:$0xff] %v1755_v33  ;;  %v659_v33 = vld [vmem:[%s3034_s19 + $0xd08] sm:$0xff]  ;;  %v1778_v38 = vadd.f32 %v1218_v31, %v658_v30  ;;  %v1238_v27 = vld [vmem:[%s3041_s14 + $0xda0] sm:$0xff] }
 0x1fc   : > { %2316 = vst [vmem:[%s3056_s20 + $0xc50] sm:$0xff] %v1756_v36  ;;  %v660_v36 = vld [vmem:[%s3034_s19 + $0xd10] sm:$0xff]  ;;  %v1779_v41 = vadd.f32 %v1219_v34, %v659_v33  ;;  %v1239_v30 = vld [vmem:[%s3041_s14 + $0xda8] sm:$0xff] }
 0x1fd   : > { %2317 = vst [vmem:[%s3056_s20 + $0xc58] sm:$0xff] %v1757_v39  ;;  %v661_v39 = vld [vmem:[%s3034_s19 + $0xd18] sm:$0xff]  ;;  %v1780_v44 = vadd.f32 %v1220_v37, %v660_v36  ;;  %v1240_v33 = vld [vmem:[%s3041_s14 + $0xdb0] sm:$0xff] }
 0x1fe   : > { %2318 = vst [vmem:[%s3056_s20 + $0xc60] sm:$0xff] %v1758_v42  ;;  %v662_v42 = vld [vmem:[%s3034_s19 + $0xd20] sm:$0xff]  ;;  %v1781_v47 = vadd.f32 %v1221_v40, %v661_v39  ;;  %v1241_v36 = vld [vmem:[%s3041_s14 + $0xdb8] sm:$0xff] }
 0x1ff   : > { %2319 = vst [vmem:[%s3056_s20 + $0xc68] sm:$0xff] %v1759_v45  ;;  %v663_v45 = vld [vmem:[%s3034_s19 + $0xd28] sm:$0xff]  ;;  %v1782_v50 = vadd.f32 %v1222_v43, %v662_v42  ;;  %v1242_v39 = vld [vmem:[%s3041_s14 + $0xdc0] sm:$0xff] }
 0x200   : > { %2320 = vst [vmem:[%s3056_s20 + $0xc70] sm:$0xff] %v1760_v48  ;;  %v664_v48 = vld [vmem:[%s3034_s19 + $0xd30] sm:$0xff]  ;;  %v1783_v53 = vadd.f32 %v1223_v46, %v663_v45  ;;  %v1243_v42 = vld [vmem:[%s3041_s14 + $0xdc8] sm:$0xff] }
 0x201   : > { %2321 = vst [vmem:[%s3056_s20 + $0xc78] sm:$0xff] %v1761_v51  ;;  %v665_v51 = vld [vmem:[%s3034_s19 + $0xd38] sm:$0xff]  ;;  %v1784_v56 = vadd.f32 %v1224_v49, %v664_v48  ;;  %v1244_v45 = vld [vmem:[%s3041_s14 + $0xdd0] sm:$0xff] }
 0x202   : > { %2322 = vst [vmem:[%s3056_s20 + $0xc80] sm:$0xff] %v1762_v54  ;;  %v666_v54 = vld [vmem:[%s3034_s19 + $0xd40] sm:$0xff]  ;;  %v1785_v59 = vadd.f32 %v1225_v52, %v665_v51  ;;  %v1245_v48 = vld [vmem:[%s3041_s14 + $0xdd8] sm:$0xff] }
 0x203   : > { %2323 = vst [vmem:[%s3056_s20 + $0xc88] sm:$0xff] %v1763_v57  ;;  %v667_v57 = vld [vmem:[%s3034_s19 + $0xd48] sm:$0xff]  ;;  %v1786_v62 = vadd.f32 %v1226_v55, %v666_v54  ;;  %v1246_v51 = vld [vmem:[%s3041_s14 + $0xde0] sm:$0xff] }
 0x204   : > { %2324 = vst [vmem:[%s3056_s20 + $0xc90] sm:$0xff] %v1764_v60  ;;  %v668_v60 = vld [vmem:[%s3034_s19 + $0xd50] sm:$0xff]  ;;  %v1787_v1 = vadd.f32 %v1227_v58, %v667_v57  ;;  %v1247_v54 = vld [vmem:[%s3041_s14 + $0xde8] sm:$0xff] }
 0x205   : > { %2325 = vst [vmem:[%s3056_s20 + $0xc98] sm:$0xff] %v1765_v63  ;;  %v669_v63 = vld [vmem:[%s3034_s19 + $0xd58] sm:$0xff]  ;;  %v1788_v4 = vadd.f32 %v1228_v61, %v668_v60  ;;  %v1248_v57 = vld [vmem:[%s3041_s14 + $0xdf0] sm:$0xff] }
 0x206   : > { %2326 = vst [vmem:[%s3056_s20 + $0xca0] sm:$0xff] %v1766_v2  ;;  %v670_v2 = vld [vmem:[%s3034_s19 + $0xd60] sm:$0xff]  ;;  %v1789_v7 = vadd.f32 %v1229_v0, %v669_v63  ;;  %v1249_v60 = vld [vmem:[%s3041_s14 + $0xdf8] sm:$0xff] }
 0x207   : > { %2327 = vst [vmem:[%s3056_s20 + $0xca8] sm:$0xff] %v1767_v5  ;;  %v671_v5 = vld [vmem:[%s3034_s19 + $0xd68] sm:$0xff]  ;;  %v1790_v10 = vadd.f32 %v1230_v3, %v670_v2  ;;  %v1250_v63 = vld [vmem:[%s3041_s14 + $0xe00] sm:$0xff] }
 0x208   : > { %2328 = vst [vmem:[%s3056_s20 + $0xcb0] sm:$0xff] %v1768_v8  ;;  %v672_v8 = vld [vmem:[%s3034_s19 + $0xd70] sm:$0xff]  ;;  %v1791_v13 = vadd.f32 %v1231_v6, %v671_v5  ;;  %v1251_v2 = vld [vmem:[%s3041_s14 + $0xe08] sm:$0xff] }
 0x209   : > { %2329 = vst [vmem:[%s3056_s20 + $0xcb8] sm:$0xff] %v1769_v11  ;;  %v673_v11 = vld [vmem:[%s3034_s19 + $0xd78] sm:$0xff]  ;;  %v1792_v16 = vadd.f32 %v1232_v9, %v672_v8  ;;  %v1252_v5 = vld [vmem:[%s3041_s14 + $0xe10] sm:$0xff] }
 0x20a   : > { %2330 = vst [vmem:[%s3056_s20 + $0xcc0] sm:$0xff] %v1770_v14  ;;  %v674_v14 = vld [vmem:[%s3034_s19 + $0xd80] sm:$0xff]  ;;  %v1793_v19 = vadd.f32 %v1233_v12, %v673_v11  ;;  %v1253_v8 = vld [vmem:[%s3041_s14 + $0xe18] sm:$0xff] }
 0x20b   : > { %2331 = vst [vmem:[%s3056_s20 + $0xcc8] sm:$0xff] %v1771_v17  ;;  %v675_v17 = vld [vmem:[%s3034_s19 + $0xd88] sm:$0xff]  ;;  %v1794_v22 = vadd.f32 %v1234_v15, %v674_v14  ;;  %v1254_v11 = vld [vmem:[%s3041_s14 + $0xe20] sm:$0xff] }
 0x20c   : > { %2332 = vst [vmem:[%s3056_s20 + $0xcd0] sm:$0xff] %v1772_v20  ;;  %v676_v20 = vld [vmem:[%s3034_s19 + $0xd90] sm:$0xff]  ;;  %v1795_v25 = vadd.f32 %v1235_v18, %v675_v17  ;;  %v1255_v14 = vld [vmem:[%s3041_s14 + $0xe28] sm:$0xff] }
 0x20d   : > { %2333 = vst [vmem:[%s3056_s20 + $0xcd8] sm:$0xff] %v1773_v23  ;;  %v677_v23 = vld [vmem:[%s3034_s19 + $0xd98] sm:$0xff]  ;;  %v1796_v28 = vadd.f32 %v1236_v21, %v676_v20  ;;  %v1256_v17 = vld [vmem:[%s3041_s14 + $0xe30] sm:$0xff] }
 0x20e   : > { %2334 = vst [vmem:[%s3056_s20 + $0xce0] sm:$0xff] %v1774_v26  ;;  %v678_v26 = vld [vmem:[%s3034_s19 + $0xda0] sm:$0xff]  ;;  %v1797_v31 = vadd.f32 %v1237_v24, %v677_v23  ;;  %v1257_v20 = vld [vmem:[%s3041_s14 + $0xe38] sm:$0xff] }
 0x20f   : > { %2335 = vst [vmem:[%s3056_s20 + $0xce8] sm:$0xff] %v1775_v29  ;;  %v679_v29 = vld [vmem:[%s3034_s19 + $0xda8] sm:$0xff]  ;;  %v1798_v34 = vadd.f32 %v1238_v27, %v678_v26  ;;  %v1258_v23 = vld [vmem:[%s3041_s14 + $0xe40] sm:$0xff] }
 0x210   : > { %2336 = vst [vmem:[%s3056_s20 + $0xcf0] sm:$0xff] %v1776_v32  ;;  %v680_v32 = vld [vmem:[%s3034_s19 + $0xdb0] sm:$0xff]  ;;  %v1799_v37 = vadd.f32 %v1239_v30, %v679_v29  ;;  %v1259_v26 = vld [vmem:[%s3041_s14 + $0xe48] sm:$0xff] }
 0x211   : > { %2337 = vst [vmem:[%s3056_s20 + $0xcf8] sm:$0xff] %v1777_v35  ;;  %v681_v35 = vld [vmem:[%s3034_s19 + $0xdb8] sm:$0xff]  ;;  %v1800_v40 = vadd.f32 %v1240_v33, %v680_v32  ;;  %v1260_v29 = vld [vmem:[%s3041_s14 + $0xe50] sm:$0xff] }
 0x212   : > { %2338 = vst [vmem:[%s3056_s20 + $0xd00] sm:$0xff] %v1778_v38  ;;  %v682_v38 = vld [vmem:[%s3034_s19 + $0xdc0] sm:$0xff]  ;;  %v1801_v43 = vadd.f32 %v1241_v36, %v681_v35  ;;  %v1261_v32 = vld [vmem:[%s3041_s14 + $0xe58] sm:$0xff] }
 0x213   : > { %2339 = vst [vmem:[%s3056_s20 + $0xd08] sm:$0xff] %v1779_v41  ;;  %v683_v41 = vld [vmem:[%s3034_s19 + $0xdc8] sm:$0xff]  ;;  %v1802_v46 = vadd.f32 %v1242_v39, %v682_v38  ;;  %v1262_v35 = vld [vmem:[%s3041_s14 + $0xe60] sm:$0xff] }
 0x214   : > { %2340 = vst [vmem:[%s3056_s20 + $0xd10] sm:$0xff] %v1780_v44  ;;  %v684_v44 = vld [vmem:[%s3034_s19 + $0xdd0] sm:$0xff]  ;;  %v1803_v49 = vadd.f32 %v1243_v42, %v683_v41  ;;  %v1263_v38 = vld [vmem:[%s3041_s14 + $0xe68] sm:$0xff] }
 0x215   : > { %2341 = vst [vmem:[%s3056_s20 + $0xd18] sm:$0xff] %v1781_v47  ;;  %v685_v47 = vld [vmem:[%s3034_s19 + $0xdd8] sm:$0xff]  ;;  %v1804_v52 = vadd.f32 %v1244_v45, %v684_v44  ;;  %v1264_v41 = vld [vmem:[%s3041_s14 + $0xe70] sm:$0xff] }
 0x216   : > { %2342 = vst [vmem:[%s3056_s20 + $0xd20] sm:$0xff] %v1782_v50  ;;  %v686_v50 = vld [vmem:[%s3034_s19 + $0xde0] sm:$0xff]  ;;  %v1805_v55 = vadd.f32 %v1245_v48, %v685_v47  ;;  %v1265_v44 = vld [vmem:[%s3041_s14 + $0xe78] sm:$0xff] }
 0x217   : > { %2343 = vst [vmem:[%s3056_s20 + $0xd28] sm:$0xff] %v1783_v53  ;;  %v687_v53 = vld [vmem:[%s3034_s19 + $0xde8] sm:$0xff]  ;;  %v1806_v58 = vadd.f32 %v1246_v51, %v686_v50  ;;  %v1266_v47 = vld [vmem:[%s3041_s14 + $0xe80] sm:$0xff] }
 0x218   : > { %2344 = vst [vmem:[%s3056_s20 + $0xd30] sm:$0xff] %v1784_v56  ;;  %v688_v56 = vld [vmem:[%s3034_s19 + $0xdf0] sm:$0xff]  ;;  %v1807_v61 = vadd.f32 %v1247_v54, %v687_v53  ;;  %v1267_v50 = vld [vmem:[%s3041_s14 + $0xe88] sm:$0xff] }
 0x219   : > { %2345 = vst [vmem:[%s3056_s20 + $0xd38] sm:$0xff] %v1785_v59  ;;  %v689_v59 = vld [vmem:[%s3034_s19 + $0xdf8] sm:$0xff]  ;;  %v1808_v0 = vadd.f32 %v1248_v57, %v688_v56  ;;  %v1268_v53 = vld [vmem:[%s3041_s14 + $0xe90] sm:$0xff] }
 0x21a   : > { %2346 = vst [vmem:[%s3056_s20 + $0xd40] sm:$0xff] %v1786_v62  ;;  %v690_v62 = vld [vmem:[%s3034_s19 + $0xe00] sm:$0xff]  ;;  %v1809_v3 = vadd.f32 %v1249_v60, %v689_v59  ;;  %v1269_v56 = vld [vmem:[%s3041_s14 + $0xe98] sm:$0xff] }
 0x21b   : > { %2347 = vst [vmem:[%s3056_s20 + $0xd48] sm:$0xff] %v1787_v1  ;;  %v691_v1 = vld [vmem:[%s3034_s19 + $0xe08] sm:$0xff]  ;;  %v1810_v6 = vadd.f32 %v1250_v63, %v690_v62  ;;  %v1270_v59 = vld [vmem:[%s3041_s14 + $0xea0] sm:$0xff] }
 0x21c   : > { %2348 = vst [vmem:[%s3056_s20 + $0xd50] sm:$0xff] %v1788_v4  ;;  %v692_v4 = vld [vmem:[%s3034_s19 + $0xe10] sm:$0xff]  ;;  %v1811_v9 = vadd.f32 %v1251_v2, %v691_v1  ;;  %v1271_v62 = vld [vmem:[%s3041_s14 + $0xea8] sm:$0xff] }
 0x21d   : > { %2349 = vst [vmem:[%s3056_s20 + $0xd58] sm:$0xff] %v1789_v7  ;;  %v693_v7 = vld [vmem:[%s3034_s19 + $0xe18] sm:$0xff]  ;;  %v1812_v12 = vadd.f32 %v1252_v5, %v692_v4  ;;  %v1272_v1 = vld [vmem:[%s3041_s14 + $0xeb0] sm:$0xff] }
 0x21e   : > { %2350 = vst [vmem:[%s3056_s20 + $0xd60] sm:$0xff] %v1790_v10  ;;  %v694_v10 = vld [vmem:[%s3034_s19 + $0xe20] sm:$0xff]  ;;  %v1813_v15 = vadd.f32 %v1253_v8, %v693_v7  ;;  %v1273_v4 = vld [vmem:[%s3041_s14 + $0xeb8] sm:$0xff] }
 0x21f   : > { %2351 = vst [vmem:[%s3056_s20 + $0xd68] sm:$0xff] %v1791_v13  ;;  %v695_v13 = vld [vmem:[%s3034_s19 + $0xe28] sm:$0xff]  ;;  %v1814_v18 = vadd.f32 %v1254_v11, %v694_v10  ;;  %v1274_v7 = vld [vmem:[%s3041_s14 + $0xec0] sm:$0xff] }
 0x220   : > { %2352 = vst [vmem:[%s3056_s20 + $0xd70] sm:$0xff] %v1792_v16  ;;  %v696_v16 = vld [vmem:[%s3034_s19 + $0xe30] sm:$0xff]  ;;  %v1815_v21 = vadd.f32 %v1255_v14, %v695_v13  ;;  %v1275_v10 = vld [vmem:[%s3041_s14 + $0xec8] sm:$0xff] }
 0x221   : > { %2353 = vst [vmem:[%s3056_s20 + $0xd78] sm:$0xff] %v1793_v19  ;;  %v697_v19 = vld [vmem:[%s3034_s19 + $0xe38] sm:$0xff]  ;;  %v1816_v24 = vadd.f32 %v1256_v17, %v696_v16  ;;  %v1276_v13 = vld [vmem:[%s3041_s14 + $0xed0] sm:$0xff] }
 0x222   : > { %2354 = vst [vmem:[%s3056_s20 + $0xd80] sm:$0xff] %v1794_v22  ;;  %v698_v22 = vld [vmem:[%s3034_s19 + $0xe40] sm:$0xff]  ;;  %v1817_v27 = vadd.f32 %v1257_v20, %v697_v19  ;;  %v1277_v16 = vld [vmem:[%s3041_s14 + $0xed8] sm:$0xff] }
 0x223   : > { %2355 = vst [vmem:[%s3056_s20 + $0xd88] sm:$0xff] %v1795_v25  ;;  %v699_v25 = vld [vmem:[%s3034_s19 + $0xe48] sm:$0xff]  ;;  %v1818_v30 = vadd.f32 %v1258_v23, %v698_v22  ;;  %v1278_v19 = vld [vmem:[%s3041_s14 + $0xee0] sm:$0xff] }
 0x224   : > { %2356 = vst [vmem:[%s3056_s20 + $0xd90] sm:$0xff] %v1796_v28  ;;  %v700_v28 = vld [vmem:[%s3034_s19 + $0xe50] sm:$0xff]  ;;  %v1819_v33 = vadd.f32 %v1259_v26, %v699_v25  ;;  %v1279_v22 = vld [vmem:[%s3041_s14 + $0xee8] sm:$0xff] }
 0x225   : > { %2357 = vst [vmem:[%s3056_s20 + $0xd98] sm:$0xff] %v1797_v31  ;;  %v701_v31 = vld [vmem:[%s3034_s19 + $0xe58] sm:$0xff]  ;;  %v1820_v36 = vadd.f32 %v1260_v29, %v700_v28  ;;  %v1280_v25 = vld [vmem:[%s3041_s14 + $0xef0] sm:$0xff] }
 0x226   : > { %2358 = vst [vmem:[%s3056_s20 + $0xda0] sm:$0xff] %v1798_v34  ;;  %v702_v34 = vld [vmem:[%s3034_s19 + $0xe60] sm:$0xff]  ;;  %v1821_v39 = vadd.f32 %v1261_v32, %v701_v31  ;;  %v1281_v28 = vld [vmem:[%s3041_s14 + $0xef8] sm:$0xff] }
 0x227   : > { %2359 = vst [vmem:[%s3056_s20 + $0xda8] sm:$0xff] %v1799_v37  ;;  %v703_v37 = vld [vmem:[%s3034_s19 + $0xe68] sm:$0xff]  ;;  %v1822_v42 = vadd.f32 %v1262_v35, %v702_v34  ;;  %v1282_v31 = vld [vmem:[%s3041_s14 + $0xf00] sm:$0xff] }
 0x228   : > { %2360 = vst [vmem:[%s3056_s20 + $0xdb0] sm:$0xff] %v1800_v40  ;;  %v704_v40 = vld [vmem:[%s3034_s19 + $0xe70] sm:$0xff]  ;;  %v1823_v45 = vadd.f32 %v1263_v38, %v703_v37  ;;  %v1283_v34 = vld [vmem:[%s3041_s14 + $0xf08] sm:$0xff] }
 0x229   : > { %2361 = vst [vmem:[%s3056_s20 + $0xdb8] sm:$0xff] %v1801_v43  ;;  %v705_v43 = vld [vmem:[%s3034_s19 + $0xe78] sm:$0xff]  ;;  %v1824_v48 = vadd.f32 %v1264_v41, %v704_v40  ;;  %v1284_v37 = vld [vmem:[%s3041_s14 + $0xf10] sm:$0xff] }
 0x22a   : > { %2362 = vst [vmem:[%s3056_s20 + $0xdc0] sm:$0xff] %v1802_v46  ;;  %v706_v46 = vld [vmem:[%s3034_s19 + $0xe80] sm:$0xff]  ;;  %v1825_v51 = vadd.f32 %v1265_v44, %v705_v43  ;;  %v1285_v40 = vld [vmem:[%s3041_s14 + $0xf18] sm:$0xff] }
 0x22b   : > { %2363 = vst [vmem:[%s3056_s20 + $0xdc8] sm:$0xff] %v1803_v49  ;;  %v707_v49 = vld [vmem:[%s3034_s19 + $0xe88] sm:$0xff]  ;;  %v1826_v54 = vadd.f32 %v1266_v47, %v706_v46  ;;  %v1286_v43 = vld [vmem:[%s3041_s14 + $0xf20] sm:$0xff] }
 0x22c   : > { %2364 = vst [vmem:[%s3056_s20 + $0xdd0] sm:$0xff] %v1804_v52  ;;  %v708_v52 = vld [vmem:[%s3034_s19 + $0xe90] sm:$0xff]  ;;  %v1827_v57 = vadd.f32 %v1267_v50, %v707_v49  ;;  %v1287_v46 = vld [vmem:[%s3041_s14 + $0xf28] sm:$0xff] }
 0x22d   : > { %2365 = vst [vmem:[%s3056_s20 + $0xdd8] sm:$0xff] %v1805_v55  ;;  %v709_v55 = vld [vmem:[%s3034_s19 + $0xe98] sm:$0xff]  ;;  %v1828_v60 = vadd.f32 %v1268_v53, %v708_v52  ;;  %v1288_v49 = vld [vmem:[%s3041_s14 + $0xf30] sm:$0xff] }
 0x22e   : > { %2366 = vst [vmem:[%s3056_s20 + $0xde0] sm:$0xff] %v1806_v58  ;;  %v710_v58 = vld [vmem:[%s3034_s19 + $0xea0] sm:$0xff]  ;;  %v1829_v63 = vadd.f32 %v1269_v56, %v709_v55  ;;  %v1289_v52 = vld [vmem:[%s3041_s14 + $0xf38] sm:$0xff] }
 0x22f   : > { %2367 = vst [vmem:[%s3056_s20 + $0xde8] sm:$0xff] %v1807_v61  ;;  %v711_v61 = vld [vmem:[%s3034_s19 + $0xea8] sm:$0xff]  ;;  %v1830_v2 = vadd.f32 %v1270_v59, %v710_v58  ;;  %v1290_v55 = vld [vmem:[%s3041_s14 + $0xf40] sm:$0xff] }
 0x230   : > { %2368 = vst [vmem:[%s3056_s20 + $0xdf0] sm:$0xff] %v1808_v0  ;;  %v712_v0 = vld [vmem:[%s3034_s19 + $0xeb0] sm:$0xff]  ;;  %v1831_v5 = vadd.f32 %v1271_v62, %v711_v61  ;;  %v1291_v58 = vld [vmem:[%s3041_s14 + $0xf48] sm:$0xff] }
 0x231   : > { %2369 = vst [vmem:[%s3056_s20 + $0xdf8] sm:$0xff] %v1809_v3  ;;  %v713_v3 = vld [vmem:[%s3034_s19 + $0xeb8] sm:$0xff]  ;;  %v1832_v8 = vadd.f32 %v1272_v1, %v712_v0  ;;  %v1292_v61 = vld [vmem:[%s3041_s14 + $0xf50] sm:$0xff] }
 0x232   : > { %2370 = vst [vmem:[%s3056_s20 + $0xe00] sm:$0xff] %v1810_v6  ;;  %v714_v6 = vld [vmem:[%s3034_s19 + $0xec0] sm:$0xff]  ;;  %v1833_v11 = vadd.f32 %v1273_v4, %v713_v3  ;;  %v1293_v0 = vld [vmem:[%s3041_s14 + $0xf58] sm:$0xff] }
 0x233   : > { %2371 = vst [vmem:[%s3056_s20 + $0xe08] sm:$0xff] %v1811_v9  ;;  %v715_v9 = vld [vmem:[%s3034_s19 + $0xec8] sm:$0xff]  ;;  %v1834_v14 = vadd.f32 %v1274_v7, %v714_v6  ;;  %v1294_v3 = vld [vmem:[%s3041_s14 + $0xf60] sm:$0xff] }
 0x234   : > { %2372 = vst [vmem:[%s3056_s20 + $0xe10] sm:$0xff] %v1812_v12  ;;  %v716_v12 = vld [vmem:[%s3034_s19 + $0xed0] sm:$0xff]  ;;  %v1835_v17 = vadd.f32 %v1275_v10, %v715_v9  ;;  %v1295_v6 = vld [vmem:[%s3041_s14 + $0xf68] sm:$0xff] }
 0x235   : > { %2373 = vst [vmem:[%s3056_s20 + $0xe18] sm:$0xff] %v1813_v15  ;;  %v717_v15 = vld [vmem:[%s3034_s19 + $0xed8] sm:$0xff]  ;;  %v1836_v20 = vadd.f32 %v1276_v13, %v716_v12  ;;  %v1296_v9 = vld [vmem:[%s3041_s14 + $0xf70] sm:$0xff] }
 0x236   : > { %2374 = vst [vmem:[%s3056_s20 + $0xe20] sm:$0xff] %v1814_v18  ;;  %v718_v18 = vld [vmem:[%s3034_s19 + $0xee0] sm:$0xff]  ;;  %v1837_v23 = vadd.f32 %v1277_v16, %v717_v15  ;;  %v1297_v12 = vld [vmem:[%s3041_s14 + $0xf78] sm:$0xff] }
 0x237   : > { %2375 = vst [vmem:[%s3056_s20 + $0xe28] sm:$0xff] %v1815_v21  ;;  %v719_v21 = vld [vmem:[%s3034_s19 + $0xee8] sm:$0xff]  ;;  %v1838_v26 = vadd.f32 %v1278_v19, %v718_v18  ;;  %v1298_v15 = vld [vmem:[%s3041_s14 + $0xf80] sm:$0xff] }
 0x238   : > { %2376 = vst [vmem:[%s3056_s20 + $0xe30] sm:$0xff] %v1816_v24  ;;  %v720_v24 = vld [vmem:[%s3034_s19 + $0xef0] sm:$0xff]  ;;  %v1839_v29 = vadd.f32 %v1279_v22, %v719_v21  ;;  %v1299_v18 = vld [vmem:[%s3041_s14 + $0xf88] sm:$0xff] }
 0x239   : > { %2377 = vst [vmem:[%s3056_s20 + $0xe38] sm:$0xff] %v1817_v27  ;;  %v721_v27 = vld [vmem:[%s3034_s19 + $0xef8] sm:$0xff]  ;;  %v1840_v32 = vadd.f32 %v1280_v25, %v720_v24  ;;  %v1300_v21 = vld [vmem:[%s3041_s14 + $0xf90] sm:$0xff] }
 0x23a   : > { %2378 = vst [vmem:[%s3056_s20 + $0xe40] sm:$0xff] %v1818_v30  ;;  %v722_v30 = vld [vmem:[%s3034_s19 + $0xf00] sm:$0xff]  ;;  %v1841_v35 = vadd.f32 %v1281_v28, %v721_v27  ;;  %v1301_v24 = vld [vmem:[%s3041_s14 + $0xf98] sm:$0xff] }
 0x23b   : > { %2379 = vst [vmem:[%s3056_s20 + $0xe48] sm:$0xff] %v1819_v33  ;;  %v723_v33 = vld [vmem:[%s3034_s19 + $0xf08] sm:$0xff]  ;;  %v1842_v38 = vadd.f32 %v1282_v31, %v722_v30  ;;  %v1302_v27 = vld [vmem:[%s3041_s14 + $0xfa0] sm:$0xff] }
 0x23c   : > { %2380 = vst [vmem:[%s3056_s20 + $0xe50] sm:$0xff] %v1820_v36  ;;  %v724_v36 = vld [vmem:[%s3034_s19 + $0xf10] sm:$0xff]  ;;  %v1843_v41 = vadd.f32 %v1283_v34, %v723_v33  ;;  %v1303_v30 = vld [vmem:[%s3041_s14 + $0xfa8] sm:$0xff] }
 0x23d   : > { %2381 = vst [vmem:[%s3056_s20 + $0xe58] sm:$0xff] %v1821_v39  ;;  %v725_v39 = vld [vmem:[%s3034_s19 + $0xf18] sm:$0xff]  ;;  %v1844_v44 = vadd.f32 %v1284_v37, %v724_v36  ;;  %v1304_v33 = vld [vmem:[%s3041_s14 + $0xfb0] sm:$0xff] }
 0x23e   : > { %2382 = vst [vmem:[%s3056_s20 + $0xe60] sm:$0xff] %v1822_v42  ;;  %v726_v42 = vld [vmem:[%s3034_s19 + $0xf20] sm:$0xff]  ;;  %v1845_v47 = vadd.f32 %v1285_v40, %v725_v39  ;;  %v1305_v36 = vld [vmem:[%s3041_s14 + $0xfb8] sm:$0xff] }
 0x23f   : > { %2383 = vst [vmem:[%s3056_s20 + $0xe68] sm:$0xff] %v1823_v45  ;;  %v727_v45 = vld [vmem:[%s3034_s19 + $0xf28] sm:$0xff]  ;;  %v1846_v50 = vadd.f32 %v1286_v43, %v726_v42  ;;  %v1306_v39 = vld [vmem:[%s3041_s14 + $0xfc0] sm:$0xff] }
 0x240   : > { %2384 = vst [vmem:[%s3056_s20 + $0xe70] sm:$0xff] %v1824_v48  ;;  %v728_v48 = vld [vmem:[%s3034_s19 + $0xf30] sm:$0xff]  ;;  %v1847_v53 = vadd.f32 %v1287_v46, %v727_v45  ;;  %v1307_v42 = vld [vmem:[%s3041_s14 + $0xfc8] sm:$0xff] }
 0x241   : > { %2385 = vst [vmem:[%s3056_s20 + $0xe78] sm:$0xff] %v1825_v51  ;;  %v729_v51 = vld [vmem:[%s3034_s19 + $0xf38] sm:$0xff]  ;;  %v1848_v56 = vadd.f32 %v1288_v49, %v728_v48  ;;  %v1308_v45 = vld [vmem:[%s3041_s14 + $0xfd0] sm:$0xff] }
 0x242   : > { %2386 = vst [vmem:[%s3056_s20 + $0xe80] sm:$0xff] %v1826_v54  ;;  %v730_v54 = vld [vmem:[%s3034_s19 + $0xf40] sm:$0xff]  ;;  %v1849_v59 = vadd.f32 %v1289_v52, %v729_v51  ;;  %v1309_v48 = vld [vmem:[%s3041_s14 + $0xfd8] sm:$0xff] }
 0x243   : > { %2387 = vst [vmem:[%s3056_s20 + $0xe88] sm:$0xff] %v1827_v57  ;;  %v731_v57 = vld [vmem:[%s3034_s19 + $0xf48] sm:$0xff]  ;;  %v1850_v62 = vadd.f32 %v1290_v55, %v730_v54  ;;  %v1310_v51 = vld [vmem:[%s3041_s14 + $0xfe0] sm:$0xff] }
 0x244   : > { %2388 = vst [vmem:[%s3056_s20 + $0xe90] sm:$0xff] %v1828_v60  ;;  %v732_v60 = vld [vmem:[%s3034_s19 + $0xf50] sm:$0xff]  ;;  %v1851_v1 = vadd.f32 %v1291_v58, %v731_v57  ;;  %v1311_v54 = vld [vmem:[%s3041_s14 + $0xfe8] sm:$0xff] }
 0x245   : > { %2389 = vst [vmem:[%s3056_s20 + $0xe98] sm:$0xff] %v1829_v63  ;;  %v733_v63 = vld [vmem:[%s3034_s19 + $0xf58] sm:$0xff]  ;;  %v1852_v4 = vadd.f32 %v1292_v61, %v732_v60  ;;  %v1312_v57 = vld [vmem:[%s3041_s14 + $0xff0] sm:$0xff] }
 0x246   : > { %2390 = vst [vmem:[%s3056_s20 + $0xea0] sm:$0xff] %v1830_v2  ;;  %v734_v2 = vld [vmem:[%s3034_s19 + $0xf60] sm:$0xff]  ;;  %v1853_v7 = vadd.f32 %v1293_v0, %v733_v63  ;;  %v1313_v60 = vld [vmem:[%s3041_s14 + $0xff8] sm:$0xff] }
 0x247   : > { %2391 = vst [vmem:[%s3056_s20 + $0xea8] sm:$0xff] %v1831_v5  ;;  %v735_v5 = vld [vmem:[%s3034_s19 + $0xf68] sm:$0xff]  ;;  %v1854_v10 = vadd.f32 %v1294_v3, %v734_v2  ;;  %v1314_v63 = vld [vmem:[%s3041_s14 + $0x1000] sm:$0xff] }
 0x248   : > { %2392 = vst [vmem:[%s3056_s20 + $0xeb0] sm:$0xff] %v1832_v8  ;;  %v736_v8 = vld [vmem:[%s3034_s19 + $0xf70] sm:$0xff]  ;;  %v1855_v13 = vadd.f32 %v1295_v6, %v735_v5  ;;  %v1315_v2 = vld [vmem:[%s3041_s14 + $0x1008] sm:$0xff] }
 0x249   : > { %2393 = vst [vmem:[%s3056_s20 + $0xeb8] sm:$0xff] %v1833_v11  ;;  %v737_v11 = vld [vmem:[%s3034_s19 + $0xf78] sm:$0xff]  ;;  %v1856_v16 = vadd.f32 %v1296_v9, %v736_v8  ;;  %v1316_v5 = vld [vmem:[%s3041_s14 + $0x1010] sm:$0xff] }
 0x24a   : > { %2394 = vst [vmem:[%s3056_s20 + $0xec0] sm:$0xff] %v1834_v14  ;;  %v738_v14 = vld [vmem:[%s3034_s19 + $0xf80] sm:$0xff]  ;;  %v1857_v19 = vadd.f32 %v1297_v12, %v737_v11  ;;  %v1317_v8 = vld [vmem:[%s3041_s14 + $0x1018] sm:$0xff] }
 0x24b   : > { %2395 = vst [vmem:[%s3056_s20 + $0xec8] sm:$0xff] %v1835_v17  ;;  %v739_v17 = vld [vmem:[%s3034_s19 + $0xf88] sm:$0xff]  ;;  %v1858_v22 = vadd.f32 %v1298_v15, %v738_v14  ;;  %v1318_v11 = vld [vmem:[%s3041_s14 + $0x1020] sm:$0xff] }
 0x24c   : > { %2396 = vst [vmem:[%s3056_s20 + $0xed0] sm:$0xff] %v1836_v20  ;;  %v740_v20 = vld [vmem:[%s3034_s19 + $0xf90] sm:$0xff]  ;;  %v1859_v25 = vadd.f32 %v1299_v18, %v739_v17  ;;  %v1319_v14 = vld [vmem:[%s3041_s14 + $0x1028] sm:$0xff] }
 0x24d   : > { %2397 = vst [vmem:[%s3056_s20 + $0xed8] sm:$0xff] %v1837_v23  ;;  %v741_v23 = vld [vmem:[%s3034_s19 + $0xf98] sm:$0xff]  ;;  %v1860_v28 = vadd.f32 %v1300_v21, %v740_v20  ;;  %v1320_v17 = vld [vmem:[%s3041_s14 + $0x1030] sm:$0xff] }
 0x24e   : > { %2398 = vst [vmem:[%s3056_s20 + $0xee0] sm:$0xff] %v1838_v26  ;;  %v742_v26 = vld [vmem:[%s3034_s19 + $0xfa0] sm:$0xff]  ;;  %v1861_v31 = vadd.f32 %v1301_v24, %v741_v23  ;;  %v1321_v20 = vld [vmem:[%s3041_s14 + $0x1038] sm:$0xff] }
 0x24f   : > { %2399 = vst [vmem:[%s3056_s20 + $0xee8] sm:$0xff] %v1839_v29  ;;  %v743_v29 = vld [vmem:[%s3034_s19 + $0xfa8] sm:$0xff]  ;;  %v1862_v34 = vadd.f32 %v1302_v27, %v742_v26  ;;  %v1322_v23 = vld [vmem:[%s3041_s14 + $0x1040] sm:$0xff] }
 0x250   : > { %2400 = vst [vmem:[%s3056_s20 + $0xef0] sm:$0xff] %v1840_v32  ;;  %v744_v32 = vld [vmem:[%s3034_s19 + $0xfb0] sm:$0xff]  ;;  %v1863_v37 = vadd.f32 %v1303_v30, %v743_v29  ;;  %v1323_v26 = vld [vmem:[%s3041_s14 + $0x1048] sm:$0xff] }
 0x251   : > { %2401 = vst [vmem:[%s3056_s20 + $0xef8] sm:$0xff] %v1841_v35  ;;  %v745_v35 = vld [vmem:[%s3034_s19 + $0xfb8] sm:$0xff]  ;;  %v1864_v40 = vadd.f32 %v1304_v33, %v744_v32  ;;  %v1324_v29 = vld [vmem:[%s3041_s14 + $0x1050] sm:$0xff] }
 0x252   : > { %2402 = vst [vmem:[%s3056_s20 + $0xf00] sm:$0xff] %v1842_v38  ;;  %v746_v38 = vld [vmem:[%s3034_s19 + $0xfc0] sm:$0xff]  ;;  %v1865_v43 = vadd.f32 %v1305_v36, %v745_v35  ;;  %v1325_v32 = vld [vmem:[%s3041_s14 + $0x1058] sm:$0xff] }
 0x253   : > { %2403 = vst [vmem:[%s3056_s20 + $0xf08] sm:$0xff] %v1843_v41  ;;  %v747_v41 = vld [vmem:[%s3034_s19 + $0xfc8] sm:$0xff]  ;;  %v1866_v46 = vadd.f32 %v1306_v39, %v746_v38  ;;  %v1326_v35 = vld [vmem:[%s3041_s14 + $0x1060] sm:$0xff] }
 0x254   : > { %2404 = vst [vmem:[%s3056_s20 + $0xf10] sm:$0xff] %v1844_v44  ;;  %v748_v44 = vld [vmem:[%s3034_s19 + $0xfd0] sm:$0xff]  ;;  %v1867_v49 = vadd.f32 %v1307_v42, %v747_v41  ;;  %v1327_v38 = vld [vmem:[%s3041_s14 + $0x1068] sm:$0xff] }
 0x255   : > { %2405 = vst [vmem:[%s3056_s20 + $0xf18] sm:$0xff] %v1845_v47  ;;  %v749_v47 = vld [vmem:[%s3034_s19 + $0xfd8] sm:$0xff]  ;;  %v1868_v52 = vadd.f32 %v1308_v45, %v748_v44  ;;  %v1328_v41 = vld [vmem:[%s3041_s14 + $0x1070] sm:$0xff] }
 0x256   : > { %2406 = vst [vmem:[%s3056_s20 + $0xf20] sm:$0xff] %v1846_v50  ;;  %v750_v50 = vld [vmem:[%s3034_s19 + $0xfe0] sm:$0xff]  ;;  %v1869_v55 = vadd.f32 %v1309_v48, %v749_v47  ;;  %v1329_v44 = vld [vmem:[%s3041_s14 + $0x1078] sm:$0xff] }
 0x257   : > { %2407 = vst [vmem:[%s3056_s20 + $0xf28] sm:$0xff] %v1847_v53  ;;  %v751_v53 = vld [vmem:[%s3034_s19 + $0xfe8] sm:$0xff]  ;;  %v1870_v58 = vadd.f32 %v1310_v51, %v750_v50  ;;  %v1330_v47 = vld [vmem:[%s3041_s14 + $0x1080] sm:$0xff] }
 0x258   : > { %2408 = vst [vmem:[%s3056_s20 + $0xf30] sm:$0xff] %v1848_v56  ;;  %v752_v56 = vld [vmem:[%s3034_s19 + $0xff0] sm:$0xff]  ;;  %v1871_v61 = vadd.f32 %v1311_v54, %v751_v53  ;;  %v1331_v50 = vld [vmem:[%s3041_s14 + $0x1088] sm:$0xff] }
 0x259   : > { %2409 = vst [vmem:[%s3056_s20 + $0xf38] sm:$0xff] %v1849_v59  ;;  %v753_v59 = vld [vmem:[%s3034_s19 + $0xff8] sm:$0xff]  ;;  %v1872_v0 = vadd.f32 %v1312_v57, %v752_v56  ;;  %v1332_v53 = vld [vmem:[%s3041_s14 + $0x1090] sm:$0xff] }
 0x25a   : > { %2410 = vst [vmem:[%s3056_s20 + $0xf40] sm:$0xff] %v1850_v62  ;;  %v754_v62 = vld [vmem:[%s3034_s19 + $0x1000] sm:$0xff]  ;;  %v1873_v3 = vadd.f32 %v1313_v60, %v753_v59  ;;  %v1333_v56 = vld [vmem:[%s3041_s14 + $0x1098] sm:$0xff] }
 0x25b   : > { %2411 = vst [vmem:[%s3056_s20 + $0xf48] sm:$0xff] %v1851_v1  ;;  %v755_v1 = vld [vmem:[%s3034_s19 + $0x1008] sm:$0xff]  ;;  %v1874_v6 = vadd.f32 %v1314_v63, %v754_v62  ;;  %v1334_v59 = vld [vmem:[%s3041_s14 + $0x10a0] sm:$0xff] }
 0x25c   : > { %2412 = vst [vmem:[%s3056_s20 + $0xf50] sm:$0xff] %v1852_v4  ;;  %v756_v4 = vld [vmem:[%s3034_s19 + $0x1010] sm:$0xff]  ;;  %v1875_v9 = vadd.f32 %v1315_v2, %v755_v1  ;;  %v1335_v62 = vld [vmem:[%s3041_s14 + $0x10a8] sm:$0xff] }
 0x25d   : > { %2413 = vst [vmem:[%s3056_s20 + $0xf58] sm:$0xff] %v1853_v7  ;;  %v757_v7 = vld [vmem:[%s3034_s19 + $0x1018] sm:$0xff]  ;;  %v1876_v12 = vadd.f32 %v1316_v5, %v756_v4  ;;  %v1336_v1 = vld [vmem:[%s3041_s14 + $0x10b0] sm:$0xff] }
 0x25e   : > { %2414 = vst [vmem:[%s3056_s20 + $0xf60] sm:$0xff] %v1854_v10  ;;  %v758_v10 = vld [vmem:[%s3034_s19 + $0x1020] sm:$0xff]  ;;  %v1877_v15 = vadd.f32 %v1317_v8, %v757_v7  ;;  %v1337_v4 = vld [vmem:[%s3041_s14 + $0x10b8] sm:$0xff] }
 0x25f   : > { %2415 = vst [vmem:[%s3056_s20 + $0xf68] sm:$0xff] %v1855_v13  ;;  %v759_v13 = vld [vmem:[%s3034_s19 + $0x1028] sm:$0xff]  ;;  %v1878_v18 = vadd.f32 %v1318_v11, %v758_v10  ;;  %v1338_v7 = vld [vmem:[%s3041_s14 + $0x10c0] sm:$0xff] }
 0x260   : > { %2416 = vst [vmem:[%s3056_s20 + $0xf70] sm:$0xff] %v1856_v16  ;;  %v760_v16 = vld [vmem:[%s3034_s19 + $0x1030] sm:$0xff]  ;;  %v1879_v21 = vadd.f32 %v1319_v14, %v759_v13  ;;  %v1339_v10 = vld [vmem:[%s3041_s14 + $0x10c8] sm:$0xff] }
 0x261   : > { %2417 = vst [vmem:[%s3056_s20 + $0xf78] sm:$0xff] %v1857_v19  ;;  %v761_v19 = vld [vmem:[%s3034_s19 + $0x1038] sm:$0xff]  ;;  %v1880_v24 = vadd.f32 %v1320_v17, %v760_v16  ;;  %v1340_v13 = vld [vmem:[%s3041_s14 + $0x10d0] sm:$0xff] }
 0x262   : > { %2418 = vst [vmem:[%s3056_s20 + $0xf80] sm:$0xff] %v1858_v22  ;;  %v762_v22 = vld [vmem:[%s3034_s19 + $0x1040] sm:$0xff]  ;;  %v1881_v27 = vadd.f32 %v1321_v20, %v761_v19  ;;  %v1341_v16 = vld [vmem:[%s3041_s14 + $0x10d8] sm:$0xff] }
 0x263   : > { %2419 = vst [vmem:[%s3056_s20 + $0xf88] sm:$0xff] %v1859_v25  ;;  %v763_v25 = vld [vmem:[%s3034_s19 + $0x1048] sm:$0xff]  ;;  %v1882_v30 = vadd.f32 %v1322_v23, %v762_v22  ;;  %v1342_v19 = vld [vmem:[%s3041_s14 + $0x10e0] sm:$0xff] }
 0x264   : > { %2420 = vst [vmem:[%s3056_s20 + $0xf90] sm:$0xff] %v1860_v28  ;;  %v764_v28 = vld [vmem:[%s3034_s19 + $0x1050] sm:$0xff]  ;;  %v1883_v33 = vadd.f32 %v1323_v26, %v763_v25  ;;  %v1343_v22 = vld [vmem:[%s3041_s14 + $0x10e8] sm:$0xff] }
 0x265   : > { %2421 = vst [vmem:[%s3056_s20 + $0xf98] sm:$0xff] %v1861_v31  ;;  %v765_v31 = vld [vmem:[%s3034_s19 + $0x1058] sm:$0xff]  ;;  %v1884_v36 = vadd.f32 %v1324_v29, %v764_v28  ;;  %v1344_v25 = vld [vmem:[%s3041_s14 + $0x10f0] sm:$0xff] }
 0x266   : > { %2422 = vst [vmem:[%s3056_s20 + $0xfa0] sm:$0xff] %v1862_v34  ;;  %v766_v34 = vld [vmem:[%s3034_s19 + $0x1060] sm:$0xff]  ;;  %v1885_v39 = vadd.f32 %v1325_v32, %v765_v31  ;;  %v1345_v28 = vld [vmem:[%s3041_s14 + $0x10f8] sm:$0xff] }
 0x267   : > { %2423 = vst [vmem:[%s3056_s20 + $0xfa8] sm:$0xff] %v1863_v37  ;;  %v767_v37 = vld [vmem:[%s3034_s19 + $0x1068] sm:$0xff]  ;;  %v1886_v42 = vadd.f32 %v1326_v35, %v766_v34  ;;  %v1346_v31 = vld [vmem:[%s3041_s14 + $0x1100] sm:$0xff] }
 0x268   : > { %2424 = vst [vmem:[%s3056_s20 + $0xfb0] sm:$0xff] %v1864_v40  ;;  %v768_v40 = vld [vmem:[%s3034_s19 + $0x1070] sm:$0xff]  ;;  %v1887_v45 = vadd.f32 %v1327_v38, %v767_v37  ;;  %v1347_v34 = vld [vmem:[%s3041_s14 + $0x1108] sm:$0xff] }
 0x269   : > { %2425 = vst [vmem:[%s3056_s20 + $0xfb8] sm:$0xff] %v1865_v43  ;;  %v769_v43 = vld [vmem:[%s3034_s19 + $0x1078] sm:$0xff]  ;;  %v1888_v48 = vadd.f32 %v1328_v41, %v768_v40  ;;  %v1348_v37 = vld [vmem:[%s3041_s14 + $0x1110] sm:$0xff] }
 0x26a   : > { %2426 = vst [vmem:[%s3056_s20 + $0xfc0] sm:$0xff] %v1866_v46  ;;  %v770_v46 = vld [vmem:[%s3034_s19 + $0x1080] sm:$0xff]  ;;  %v1889_v51 = vadd.f32 %v1329_v44, %v769_v43  ;;  %v1349_v40 = vld [vmem:[%s3041_s14 + $0x1118] sm:$0xff] }
 0x26b   : > { %2427 = vst [vmem:[%s3056_s20 + $0xfc8] sm:$0xff] %v1867_v49  ;;  %v771_v49 = vld [vmem:[%s3034_s19 + $0x1088] sm:$0xff]  ;;  %v1890_v54 = vadd.f32 %v1330_v47, %v770_v46  ;;  %v1350_v43 = vld [vmem:[%s3041_s14 + $0x1120] sm:$0xff] }
 0x26c   : > { %2428 = vst [vmem:[%s3056_s20 + $0xfd0] sm:$0xff] %v1868_v52  ;;  %v772_v52 = vld [vmem:[%s3034_s19 + $0x1090] sm:$0xff]  ;;  %v1891_v57 = vadd.f32 %v1331_v50, %v771_v49  ;;  %v1351_v46 = vld [vmem:[%s3041_s14 + $0x1128] sm:$0xff] }
 0x26d   : > { %2429 = vst [vmem:[%s3056_s20 + $0xfd8] sm:$0xff] %v1869_v55  ;;  %v773_v55 = vld [vmem:[%s3034_s19 + $0x1098] sm:$0xff]  ;;  %v1892_v60 = vadd.f32 %v1332_v53, %v772_v52  ;;  %v1352_v49 = vld [vmem:[%s3041_s14 + $0x1130] sm:$0xff] }
 0x26e   : > { %2430 = vst [vmem:[%s3056_s20 + $0xfe0] sm:$0xff] %v1870_v58  ;;  %v774_v58 = vld [vmem:[%s3034_s19 + $0x10a0] sm:$0xff]  ;;  %v1893_v63 = vadd.f32 %v1333_v56, %v773_v55  ;;  %v1353_v52 = vld [vmem:[%s3041_s14 + $0x1138] sm:$0xff] }
 0x26f   : > { %2431 = vst [vmem:[%s3056_s20 + $0xfe8] sm:$0xff] %v1871_v61  ;;  %v775_v61 = vld [vmem:[%s3034_s19 + $0x10a8] sm:$0xff]  ;;  %v1894_v2 = vadd.f32 %v1334_v59, %v774_v58  ;;  %v1354_v55 = vld [vmem:[%s3041_s14 + $0x1140] sm:$0xff] }
 0x270   : > { %2432 = vst [vmem:[%s3056_s20 + $0xff0] sm:$0xff] %v1872_v0  ;;  %v776_v0 = vld [vmem:[%s3034_s19 + $0x10b0] sm:$0xff]  ;;  %v1895_v5 = vadd.f32 %v1335_v62, %v775_v61  ;;  %v1355_v58 = vld [vmem:[%s3041_s14 + $0x1148] sm:$0xff] }
 0x271   : > { %2433 = vst [vmem:[%s3056_s20 + $0xff8] sm:$0xff] %v1873_v3  ;;  %v777_v3 = vld [vmem:[%s3034_s19 + $0x10b8] sm:$0xff]  ;;  %v1896_v8 = vadd.f32 %v1336_v1, %v776_v0  ;;  %v1356_v61 = vld [vmem:[%s3041_s14 + $0x1150] sm:$0xff] }
 0x272   : > { %2434 = vst [vmem:[%s3056_s20 + $0x1000] sm:$0xff] %v1874_v6  ;;  %v778_v6 = vld [vmem:[%s3034_s19 + $0x10c0] sm:$0xff]  ;;  %v1897_v11 = vadd.f32 %v1337_v4, %v777_v3  ;;  %v1357_v0 = vld [vmem:[%s3041_s14 + $0x1158] sm:$0xff] }
 0x273   : > { %2435 = vst [vmem:[%s3056_s20 + $0x1008] sm:$0xff] %v1875_v9  ;;  %v779_v9 = vld [vmem:[%s3034_s19 + $0x10c8] sm:$0xff]  ;;  %v1898_v14 = vadd.f32 %v1338_v7, %v778_v6  ;;  %v1358_v3 = vld [vmem:[%s3041_s14 + $0x1160] sm:$0xff] }
 0x274   : > { %2436 = vst [vmem:[%s3056_s20 + $0x1010] sm:$0xff] %v1876_v12  ;;  %v780_v12 = vld [vmem:[%s3034_s19 + $0x10d0] sm:$0xff]  ;;  %v1899_v17 = vadd.f32 %v1339_v10, %v779_v9  ;;  %v1359_v6 = vld [vmem:[%s3041_s14 + $0x1168] sm:$0xff] }
 0x275   : > { %2437 = vst [vmem:[%s3056_s20 + $0x1018] sm:$0xff] %v1877_v15  ;;  %v781_v15 = vld [vmem:[%s3034_s19 + $0x10d8] sm:$0xff]  ;;  %v1900_v20 = vadd.f32 %v1340_v13, %v780_v12  ;;  %v1360_v9 = vld [vmem:[%s3041_s14 + $0x1170] sm:$0xff] }
 0x276   : > { %2438 = vst [vmem:[%s3056_s20 + $0x1020] sm:$0xff] %v1878_v18  ;;  %v782_v18 = vld [vmem:[%s3034_s19 + $0x10e0] sm:$0xff]  ;;  %v1901_v23 = vadd.f32 %v1341_v16, %v781_v15  ;;  %v1361_v12 = vld [vmem:[%s3041_s14 + $0x1178] sm:$0xff] }
 0x277   : > { %2439 = vst [vmem:[%s3056_s20 + $0x1028] sm:$0xff] %v1879_v21  ;;  %v783_v21 = vld [vmem:[%s3034_s19 + $0x10e8] sm:$0xff]  ;;  %v1902_v26 = vadd.f32 %v1342_v19, %v782_v18 }
 0x278   : > { %2440 = vst [vmem:[%s3056_s20 + $0x1030] sm:$0xff] %v1880_v24  ;;  %v784_v24 = vld [vmem:[%s3034_s19 + $0x10f0] sm:$0xff]  ;;  %v1903_v29 = vadd.f32 %v1343_v22, %v783_v21 }
 0x279   : > { %2441 = vst [vmem:[%s3056_s20 + $0x1038] sm:$0xff] %v1881_v27  ;;  %v785_v27 = vld [vmem:[%s3034_s19 + $0x10f8] sm:$0xff]  ;;  %v1904_v32 = vadd.f32 %v1344_v25, %v784_v24 }
 0x27a   : > { %2442 = vst [vmem:[%s3056_s20 + $0x1040] sm:$0xff] %v1882_v30  ;;  %v786_v30 = vld [vmem:[%s3034_s19 + $0x1100] sm:$0xff]  ;;  %v1905_v35 = vadd.f32 %v1345_v28, %v785_v27 }
 0x27b   : > { %2443 = vst [vmem:[%s3056_s20 + $0x1048] sm:$0xff] %v1883_v33  ;;  %v787_v33 = vld [vmem:[%s3034_s19 + $0x1108] sm:$0xff]  ;;  %v1906_v38 = vadd.f32 %v1346_v31, %v786_v30 }
 0x27c   : > { %2444 = vst [vmem:[%s3056_s20 + $0x1050] sm:$0xff] %v1884_v36  ;;  %v788_v36 = vld [vmem:[%s3034_s19 + $0x1110] sm:$0xff]  ;;  %v1907_v41 = vadd.f32 %v1347_v34, %v787_v33 }
 0x27d   : > { %2445 = vst [vmem:[%s3056_s20 + $0x1058] sm:$0xff] %v1885_v39  ;;  %v789_v39 = vld [vmem:[%s3034_s19 + $0x1118] sm:$0xff]  ;;  %v1908_v44 = vadd.f32 %v1348_v37, %v788_v36 }
 0x27e   : > { %2446 = vst [vmem:[%s3056_s20 + $0x1060] sm:$0xff] %v1886_v42  ;;  %v790_v42 = vld [vmem:[%s3034_s19 + $0x1120] sm:$0xff]  ;;  %v1909_v47 = vadd.f32 %v1349_v40, %v789_v39 }
 0x27f   : > { %2447 = vst [vmem:[%s3056_s20 + $0x1068] sm:$0xff] %v1887_v45  ;;  %v791_v45 = vld [vmem:[%s3034_s19 + $0x1128] sm:$0xff]  ;;  %v1910_v50 = vadd.f32 %v1350_v43, %v790_v42 }
 0x280   : > { %2448 = vst [vmem:[%s3056_s20 + $0x1070] sm:$0xff] %v1888_v48  ;;  %v792_v48 = vld [vmem:[%s3034_s19 + $0x1130] sm:$0xff]  ;;  %v1911_v53 = vadd.f32 %v1351_v46, %v791_v45 }
 0x281   : > { %2449 = vst [vmem:[%s3056_s20 + $0x1078] sm:$0xff] %v1889_v51  ;;  %v793_v51 = vld [vmem:[%s3034_s19 + $0x1138] sm:$0xff]  ;;  %v1912_v56 = vadd.f32 %v1352_v49, %v792_v48 }
 0x282   : > { %2450 = vst [vmem:[%s3056_s20 + $0x1080] sm:$0xff] %v1890_v54  ;;  %v794_v54 = vld [vmem:[%s3034_s19 + $0x1140] sm:$0xff]  ;;  %v1913_v59 = vadd.f32 %v1353_v52, %v793_v51 }
 0x283   : > { %2451 = vst [vmem:[%s3056_s20 + $0x1088] sm:$0xff] %v1891_v57  ;;  %v795_v57 = vld [vmem:[%s3034_s19 + $0x1148] sm:$0xff]  ;;  %v1914_v62 = vadd.f32 %v1354_v55, %v794_v54 }
 0x284   : > { %2452 = vst [vmem:[%s3056_s20 + $0x1090] sm:$0xff] %v1892_v60  ;;  %v796_v60 = vld [vmem:[%s3034_s19 + $0x1150] sm:$0xff]  ;;  %v1915_v1 = vadd.f32 %v1355_v58, %v795_v57 }
 0x285   : > { %2453 = vst [vmem:[%s3056_s20 + $0x1098] sm:$0xff] %v1893_v63  ;;  %v797_v63 = vld [vmem:[%s3034_s19 + $0x1158] sm:$0xff]  ;;  %v1916_v4 = vadd.f32 %v1356_v61, %v796_v60 }
 0x286   : > { %2454 = vst [vmem:[%s3056_s20 + $0x10a0] sm:$0xff] %v1894_v2  ;;  %v798_v2 = vld [vmem:[%s3034_s19 + $0x1160] sm:$0xff]  ;;  %v1917_v7 = vadd.f32 %v1357_v0, %v797_v63 }
 0x287   : > { %2455 = vst [vmem:[%s3056_s20 + $0x10a8] sm:$0xff] %v1895_v5  ;;  %v799_v5 = vld [vmem:[%s3034_s19 + $0x1168] sm:$0xff]  ;;  %v1918_v10 = vadd.f32 %v1358_v3, %v798_v2 }
 0x288   : > { %2456 = vst [vmem:[%s3056_s20 + $0x10b0] sm:$0xff] %v1896_v8  ;;  %v800_v8 = vld [vmem:[%s3034_s19 + $0x1170] sm:$0xff]  ;;  %v1919_v13 = vadd.f32 %v1359_v6, %v799_v5 }
 0x289   : > { %2457 = vst [vmem:[%s3056_s20 + $0x10b8] sm:$0xff] %v1897_v11  ;;  %v801_v11 = vld [vmem:[%s3034_s19 + $0x1178] sm:$0xff] }
 0x28a   : > { %2458 = vst [vmem:[%s3056_s20 + $0x10c0] sm:$0xff] %v1898_v14  ;;  %v1920_v14 = vadd.f32 %v1360_v9, %v800_v8  ;;  %v1921_v15 = vadd.f32 %v1361_v12, %v801_v11 }
 0x28b   : > { %2459 = vst [vmem:[%s3056_s20 + $0x10c8] sm:$0xff] %v1899_v17 }
 0x28c   : > { %2460 = vst [vmem:[%s3056_s20 + $0x10d0] sm:$0xff] %v1900_v20 }
 0x28d   : > { %2461 = vst [vmem:[%s3056_s20 + $0x10d8] sm:$0xff] %v1901_v23 }
 0x28e   : > { %2462 = vst [vmem:[%s3056_s20 + $0x10e0] sm:$0xff] %v1902_v26 }
 0x28f   : > { %2463 = vst [vmem:[%s3056_s20 + $0x10e8] sm:$0xff] %v1903_v29 }
 0x290   : > { %2464 = vst [vmem:[%s3056_s20 + $0x10f0] sm:$0xff] %v1904_v32 }
 0x291   : > { %2465 = vst [vmem:[%s3056_s20 + $0x10f8] sm:$0xff] %v1905_v35 }
 0x292   : > { %2466 = vst [vmem:[%s3056_s20 + $0x1100] sm:$0xff] %v1906_v38 }
 0x293   : > { %2467 = vst [vmem:[%s3056_s20 + $0x1108] sm:$0xff] %v1907_v41 }
 0x294   : > { %2468 = vst [vmem:[%s3056_s20 + $0x1110] sm:$0xff] %v1908_v44 }
 0x295   : > { %2469 = vst [vmem:[%s3056_s20 + $0x1118] sm:$0xff] %v1909_v47 }
 0x296   : > { %2470 = vst [vmem:[%s3056_s20 + $0x1120] sm:$0xff] %v1910_v50 }
 0x297   : > { %2471 = vst [vmem:[%s3056_s20 + $0x1128] sm:$0xff] %v1911_v53 }
 0x298   : > { %2472 = vst [vmem:[%s3056_s20 + $0x1130] sm:$0xff] %v1912_v56 }
 0x299   : > { %2473 = vst [vmem:[%s3056_s20 + $0x1138] sm:$0xff] %v1913_v59 }
 0x29a   : > { %2474 = vst [vmem:[%s3056_s20 + $0x1140] sm:$0xff] %v1914_v62 }
 0x29b   : > { %2475 = vst [vmem:[%s3056_s20 + $0x1148] sm:$0xff] %v1915_v1 }
 0x29c   : > { %2476 = vst [vmem:[%s3056_s20 + $0x1150] sm:$0xff] %v1916_v4 }
 0x29d   : > { %2477 = vst [vmem:[%s3056_s20 + $0x1158] sm:$0xff] %v1917_v7  ;;  %2489 = sbr.rel (!%p2924_p9) target bundleno = 705 (0x2c1), region = 40 }
 0x29e   : > { %2478 = vst [vmem:[%s3056_s20 + $0x1160] sm:$0xff] %v1918_v10 }
 0x29f   : > { %2479 = vst [vmem:[%s3056_s20 + $0x1168] sm:$0xff] %v1919_v13 }
 0x2a0   : > { %2480 = vst [vmem:[%s3056_s20 + $0x1170] sm:$0xff] %v1920_v14 }
 0x2a1   : > { %2481 = vst [vmem:[%s3056_s20 + $0x1178] sm:$0xff] %v1921_v15 }
 0x2a2   : > { %s4811_s23 = smov (!%p2492_p6, %s2491_s23), 140 }
 0x2a3   : > { %s2636_s8 = sshll.u32 %s4811_s23, 5 }
 0x2a4   : > { %s2496_s4 = ssub.s32 4480, %s2636_s8 }
 0x2a5   : > { %s2497_s26 = sshll.u32 %s2496_s4, 4 }
 0x2a6   : > { %2498 = vsyncadd %s2483_s6, %s2497_s26  ;;  %p4738_p5 = scmp.ne.s32.totalorder %s2636_s8, 0  ;;  %s2641_s30 = smul.u32 4480, %s2897_s13 }
 0x2a7   : > { %s2504_s17 = sshll.u32 %s3056_s20, 4  ;;  %s2627_s16 = sshll.u32 %s4811_s23, 9  ;;  %s4748_s17 = int_to_ptr.vmem [resolvable:$true] %s2504_s17 }
 0x2a8   : > { %s2502_s28 = scalar_lea.hbm %s4793_s2, %s2641_s30  ;;  %s2769_s5 = sshra.s32 %s4748_s17, 4  ;;  %s2770_s5 = int_to_ptr.vmem [resolvable:$true] %s2769_s5 }
 0x2a9   : > { %s2506_s29 = sshll.u32 %s2502_s28, 4  ;;  %s2771_s19 = sshrl.u32 %s2627_s16, 4  ;;  %s4750_s29 = int_to_ptr.hbm [resolvable:$true] %s2506_s29 }
 0x2aa   : > { %s2776_s3 = scalar_lea.vmem %s2770_s5, %s2771_s19  ;;  %s2858_s13 = smov [#allocation7]  }
 0x2ab   : > { %p2777_p9 = scmp.ne.s32.totalorder %s2770_s5, %s2776_s3  ;;  %s2780_s14 = scalar_lea.vmem %s2858_s13, 8960 }
 0x2ac   : > { %p2782_p11 = scmp.lt.s32.totalorder %s2780_s14, %s2776_s3 }
 0x2ad   : > { %p2778_p7 = pnand %p2777_p9, %p4738_p5 }
 0x2af   : > { %p2779_p8 = pneg %p2778_p7 }
 0x2b1   : > { %p2784_p12 = pnand %p2782_p11, %p2779_p8 }
 0x2b3   : > { %2787 = shalt.err (!%p2784_p12)
}
 0x2b4   : > { %s2788_s20 = sshra.s32 %s4750_s29, 4  ;;  %s2799_s26 = scalar_lea.hbm %s4793_s2, 17504  ;;  %s2789_s20 = int_to_ptr.hbm [resolvable:$true] %s2788_s20 }
 0x2b5   : > { %s2795_s7 = scalar_lea.hbm %s2789_s20, %s2771_s19  ;;  %p2800_p13 = scmp.lt.s32.totalorder %s2789_s20, %s4793_s2 }
 0x2b6   : > { %p2796_p0 = scmp.ne.s32.totalorder %s2789_s20, %s2795_s7  ;;  %p2801_p2 = scmp.lt.s32.totalorder %s2799_s26, %s2795_s7 }
 0x2b8   : > { %p2797_p1 = pnand %p2796_p0, %p4738_p5  ;;  %p2802_p3 = por %p2801_p2, %p2800_p13 }
 0x2ba   : > { %p2798_p10 = pneg %p2797_p1 }
 0x2bc   : > { %p2803_p4 = pnand %p2802_p3, %p2798_p10 }
 0x2be   : > { %2806 = shalt.err (!%p2803_p4)
}
 0x2bf   : > { %s2859_s25 = smov 512   ;;  %s2860_s28 = smov 32  }
 0x2c0   : > { %2512 = dma.vmem_to_hbm [thread:$0]  (%p4738_p5), %s4748_s17, %s2627_s16, %s4750_s29, %s2483_s6, %s2859_s25, %s2859_s25, %s2860_s28  }
 0x2c1 PF: > { %p2652_p6 = scmp.ge.s32.totalorder %s2850_s12, 2  ;;  %s2521_s5 = sand.u32 1, %s2838_s9  }
 0x2c2   : > { %p4801_p9 = scmp.ne.s32.totalorder %s4797_s22, 0  ;;  %s2522_s19 = scalar_lea.sflag [#allocation4], %s2521_s5 }
 0x2c4   : > { %p2649_p7 = pnand %p2652_p6, %p4801_p9 }
 0x2c6   : > { %p2650_p8 = pneg %p2649_p7 }
 0x2c8   : > { %2833 = dma.done.wait (%p2650_p8), %s2522_s19, 71680  }
 0x2c9   : > { %2835 = vsyncadd (%p2650_p8), %s2522_s19, 4294895616  ;;  %p18_p11 = scmp.ge.s32.totalorder %s2901_s15, 6   ;;  %s4802_s9 = smov %s2842_s10 }
 0x2ca   : > { %s4803_s10 = smov %s2846_s11  ;;  %s4804_s11 = smov %s2913_s18 }
 0x2cb   : > { %s4805_s12 = smov %s2901_s15  ;;  %20 = sbr.rel (!%p18_p11) target bundleno = 7 (0x7), region = 86 }
 0x2d0   :  { %2528 = vsyncpa [#allocation3], 1 }
 0x2d1   :  { %2530 = vsyncpa [#allocation3 + $0x1], 1 }
 0x2d2   :  { %2531 = vsyncpa [#allocation6], 1 }
 0x2d3   :  { %2533 = vsyncpa [#allocation6 + $0x1], 1 }
 0x2d4   :  { %2534 = vsyncpa [#allocation4], 1 }
 0x2d5   :  { %2536 = vsyncpa [#allocation4 + $0x1], 1 }

</bundles_post_ra>
